<compile_context>
chip_gen: v7x
topology: tpu7x:2x2x1
jax: 0.10.0
libtpu: 0.0.40
codegen_flags: <defaults>
</compile_context>

<pallas_src>
import functools

import jax
import jax.numpy as jnp
from jax.experimental import pallas as pl
from jax.experimental.pallas import tpu as pltpu

N_EMBD = 384
N_HEAD = 1
BLOCK_SIZE = 128  # max sequence length for the causal mask
LN_EPS = 1e-5

# Row indices inside the packed (6, E) parameter table.
_BPROJ, _G1, _BT1, _B2, _G2, _BT2 = range(6)


def _layer_norm(h, gamma, beta):
    # h: (BT, E) f32, gamma/beta: (1, E) f32
    mean = jnp.mean(h, axis=-1, keepdims=True)
    c = h - mean
    var = jnp.mean(c * c, axis=-1, keepdims=True)
    return c * jax.lax.rsqrt(var + LN_EPS) * gamma + beta


def _block_kernel(x_ref, wqkv_ref, wproj_ref, w1_ref, w2_ref, b1_ref, p_ref,
                  o_ref, attn_scr, *, batch, seq):
    # x_ref: (B*T, E) f32.  Big weights are bf16; biases / LN params are f32.
    E = x_ref.shape[-1]

    x = x_ref[...]                        # f32 copy for residual / LayerNorm path
    xb = x.astype(jnp.bfloat16)           # bf16 operand for the MXU

    # ---- fused QKV projection over ALL batch rows: (B*T,E)@(E,3E) ---------
    qkv = jnp.dot(xb, wqkv_ref[...], preferred_element_type=jnp.float32)  # (B*T, 3E)

    # ---- per-batch causal attention (B is a tiny static constant) ---------
    for b in range(batch):
        r0 = b * seq
        q = qkv[r0:r0 + seq, :E].astype(jnp.bfloat16)       # scale folded into W_q
        k = qkv[r0:r0 + seq, E:2 * E].astype(jnp.bfloat16)
        v = qkv[r0:r0 + seq, 2 * E:].astype(jnp.bfloat16)

        # scores: q @ k^T (contract head dim of both) -> (T, T) f32
        wei = jax.lax.dot_general(q, k, (((1,), (1,)), ((), ())),
                                  preferred_element_type=jnp.float32)
        row = jax.lax.broadcasted_iota(jnp.int32, wei.shape, 0)
        col = jax.lax.broadcasted_iota(jnp.int32, wei.shape, 1)
        wei = jnp.where(col <= row, wei, -1e30)  # large finite negative (pad-safe)

        # numerically-stable softmax (f32)
        wei_max = jnp.max(wei, axis=-1, keepdims=True)
        pexp = jnp.exp(wei - wei_max)
        denom = jnp.sum(pexp, axis=-1, keepdims=True)
        attn_w = pexp * pl.reciprocal(denom, approx=True)
        # TODO(synk): training-mode dropout on attn_w not applied.

        attn = jnp.dot(attn_w.astype(jnp.bfloat16), v,
                       preferred_element_type=jnp.float32)              # (T, E)
        attn_scr[r0:r0 + seq, :] = attn

    # ---- attention output projection on the full (B*T, E) slab ------------
    attn_all = attn_scr[...].astype(jnp.bfloat16)
    sa = jnp.dot(attn_all, wproj_ref[...],
                 preferred_element_type=jnp.float32) + p_ref[_BPROJ:_BPROJ + 1, :]

    # ---- residual + LayerNorm 1 --------------------------------------------
    x1 = _layer_norm(x + sa, p_ref[_G1:_G1 + 1, :], p_ref[_BT1:_BT1 + 1, :])

    # ---- FeedForward: Linear(E,4E) -> ReLU -> Linear(4E,E) ------------------
    hdn = jnp.dot(x1.astype(jnp.bfloat16), w1_ref[...],
                  preferred_element_type=jnp.float32) + b1_ref[...]
    hdn = jnp.maximum(hdn, 0.0)
    ff = jnp.dot(hdn.astype(jnp.bfloat16), w2_ref[...],
                 preferred_element_type=jnp.float32) + p_ref[_B2:_B2 + 1, :]

    # ---- residual + LayerNorm 2 --------------------------------------------
    out = _layer_norm(x1 + ff, p_ref[_G2:_G2 + 1, :], p_ref[_BT2:_BT2 + 1, :])
    o_ref[...] = out.astype(o_ref.dtype)


def transformer_block(x, wq, wk, wv, wproj, bproj, g1, bt1, w1, b1, w2, b2, g2, bt2):
    """x: (B, T, E) f32.  All params f32, linear weights as (in, out)."""
    B, T, E = x.shape
    H = wq.shape[-1]
    assert E == N_EMBD and T <= BLOCK_SIZE and H * N_HEAD == E

    scale = jnp.float32(H) ** -0.5
    # Fold the 1/sqrt(H) score scale into W_q; fuse [Wq, Wk, Wv] -> (E, 3E); bf16 weights.
    w_qkv = jnp.concatenate([wq * scale, wk, wv], axis=-1).astype(jnp.bfloat16)
    wproj_b = wproj.astype(jnp.bfloat16)
    w1_b = w1.astype(jnp.bfloat16)
    w2_b = w2.astype(jnp.bfloat16)

    # Pack the six E-wide vector params into a single (6, E) table (one DMA).
    params = jnp.stack([bproj, g1, bt1, b2, g2, bt2], axis=0).astype(jnp.float32)
    b1_2 = b1.reshape(1, 4 * E).astype(jnp.float32)

    x2 = x.reshape(B * T, E)   # free, contiguous reshape outside the kernel

    vmem_spec = pl.BlockSpec(memory_space=pltpu.MemorySpace.VMEM)
    kernel = functools.partial(_block_kernel, batch=B, seq=T)

    out = pl.pallas_call(
        kernel,
        out_shape=jax.ShapeDtypeStruct((B * T, E), x.dtype),
        in_specs=[vmem_spec] * 7,
        out_specs=vmem_spec,
        scratch_shapes=[pltpu.VMEM((B * T, E), jnp.float32)],
    )(x2, w_qkv, wproj_b, w1_b, w2_b, b1_2, params)
    return out.reshape(B, T, E)


def _ln_ref(h, gamma, beta):
    mean = jnp.mean(h, axis=-1, keepdims=True)
    var = jnp.mean((h - mean) ** 2, axis=-1, keepdims=True)
    return (h - mean) / jnp.sqrt(var + LN_EPS) * gamma + beta


def _reference(x, wq, wk, wv, wproj, bproj, g1, bt1, w1, b1, w2, b2, g2, bt2):
    # Pure-f32 reference matching the PyTorch eval-mode forward.
    q = x @ wq
    k = x @ wk
    v = x @ wv
    H = k.shape[-1]
    wei = (q @ jnp.swapaxes(k, -2, -1)) * (H ** -0.5)
    T = x.shape[1]
    mask = jnp.tril(jnp.ones((T, T), dtype=bool))
    wei = jnp.where(mask, wei, -jnp.inf)
    wei = jax.nn.softmax(wei, axis=-1)
    attn = wei @ v
    sa = attn @ wproj + bproj
    x1 = _ln_ref(x + sa, g1, bt1)
    ff = jax.nn.relu(x1 @ w1 + b1) @ w2 + b2
    return _ln_ref(x1 + ff, g2, bt2)


if __name__ == "__main__":
    B, T = 2, 8
    E = N_EMBD
    H = E // N_HEAD

    key = jax.random.PRNGKey(0)
    keys = jax.random.split(key, 14)

    x = jax.random.normal(keys[0], (B, T, E), dtype=jnp.float32)

    def linear_w(k, fan_in, fan_out):
        bound = 1.0 / (fan_in ** 0.5)
        return jax.random.uniform(k, (fan_in, fan_out), jnp.float32, -bound, bound)

    def linear_b(k, fan_in, fan_out):
        bound = 1.0 / (fan_in ** 0.5)
        return jax.random.uniform(k, (fan_out,), jnp.float32, -bound, bound)

    wq = linear_w(keys[1], E, H)
    wk = linear_w(keys[2], E, H)
    wv = linear_w(keys[3], E, H)
    wproj = linear_w(keys[4], H * N_HEAD, E)
    bproj = linear_b(keys[5], H * N_HEAD, E)
    w1 = linear_w(keys[6], E, 4 * E)
    b1 = linear_b(keys[7], E, 4 * E)
    w2 = linear_w(keys[8], 4 * E, E)
    b2 = linear_b(keys[9], 4 * E, E)
    g1 = 1.0 + 0.1 * jax.random.normal(keys[10], (E,), jnp.float32)
    bt1 = 0.1 * jax.random.normal(keys[11], (E,), jnp.float32)
    g2 = 1.0 + 0.1 * jax.random.normal(keys[12], (E,), jnp.float32)
    bt2 = 0.1 * jax.random.normal(keys[13], (E,), jnp.float32)

    out = transformer_block(x, wq, wk, wv, wproj, bproj,
                            g1, bt1, w1, b1, w2, b2, g2, bt2)
    out = jax.block_until_ready(out)

    ref = _reference(x, wq, wk, wv, wproj, bproj,
                     g1, bt1, w1, b1, w2, b2, g2, bt2)

    assert out.shape == (B, T, E)
    # Kernel uses bf16 MXU operands with f32 accumulation; compare vs f32
    # reference with a correspondingly relaxed tolerance.
    assert jnp.allclose(out, ref, atol=5e-2, rtol=5e-2), "mismatch vs reference"

    print("KERNEL_OK")
</pallas_src>

<mosaic_0001>
module attributes {stable_mosaic.version = 11 : i64} {
  func.func @_block_kernel(%arg0: memref<16x384xf32, #tpu.memory_space<vmem>>, %arg1: memref<384x1152xbf16, #tpu.memory_space<vmem>>, %arg2: memref<384x384xbf16, #tpu.memory_space<vmem>>, %arg3: memref<384x1536xbf16, #tpu.memory_space<vmem>>, %arg4: memref<1536x384xbf16, #tpu.memory_space<vmem>>, %arg5: memref<1x1536xf32, #tpu.memory_space<vmem>>, %arg6: memref<6x384xf32, #tpu.memory_space<vmem>>, %arg7: memref<16x384xf32, #tpu.memory_space<vmem>>, %arg8: memref<16x384xf32, #tpu.memory_space<vmem>>) attributes {dimension_semantics = [], scalar_prefetch = 0 : i64, scratch_operands = 1 : i64, tpu.core_type = #tpu.core_type<tc>} {
    %c0 = arith.constant 0 : index
    %c0_0 = arith.constant 0 : index
    %0 = vector.load %arg0[%c0, %c0_0] : memref<16x384xf32, #tpu.memory_space<vmem>>, vector<16x384xf32>
    %1 = arith.truncf %0 : vector<16x384xf32> to vector<16x384xbf16>
    %c0_1 = arith.constant 0 : index
    %c0_2 = arith.constant 0 : index
    %2 = vector.load %arg1[%c0_1, %c0_2] : memref<384x1152xbf16, #tpu.memory_space<vmem>>, vector<384x1152xbf16>
    %cst = arith.constant dense<0.000000e+00> : vector<16x1152xf32>
    %3 = tpu.matmul %1, %2, %cst {dimension_numbers = #tpu.dot_dimension_numbers<[1], [0], [0], [1], [0, 0, 1, 1], [], []>} : vector<16x384xbf16>, vector<384x1152xbf16>, vector<16x1152xf32> -> vector<16x1152xf32>
    %4 = vector.extract_strided_slice %3 {offsets = [0, 0], sizes = [8, 384], strides = [1, 1]} : vector<16x1152xf32> to vector<8x384xf32>
    %5 = arith.truncf %4 : vector<8x384xf32> to vector<8x384xbf16>
    %6 = vector.extract_strided_slice %3 {offsets = [0, 384], sizes = [8, 384], strides = [1, 1]} : vector<16x1152xf32> to vector<8x384xf32>
    %7 = arith.truncf %6 : vector<8x384xf32> to vector<8x384xbf16>
    %8 = vector.extract_strided_slice %3 {offsets = [0, 768], sizes = [8, 384], strides = [1, 1]} : vector<16x1152xf32> to vector<8x384xf32>
    %9 = arith.truncf %8 : vector<8x384xf32> to vector<8x384xbf16>
    %cst_3 = arith.constant dense<0.000000e+00> : vector<8x8xf32>
    %10 = tpu.matmul %5, %7, %cst_3 {dimension_numbers = #tpu.dot_dimension_numbers<[1], [1], [0], [0], [0, 0, 1, 0], [], []>} : vector<8x384xbf16>, vector<8x384xbf16>, vector<8x8xf32> -> vector<8x8xf32>
    %11 = tpu.iota {dimensions = array<i32: 0>} : vector<8x8xi32>
    %12 = tpu.iota {dimensions = array<i32: 1>} : vector<8x8xi32>
    %13 = arith.cmpi sle, %12, %11 : vector<8x8xi32>
    %cst_4 = arith.constant -1.000000e+30 : f32
    %14 = vector.broadcast %cst_4 : f32 to vector<8x8xf32>
    %15 = arith.select %13, %10, %14 : vector<8x8xi1>, vector<8x8xf32>
    %cst_5 = arith.constant dense<0xFF800000> : vector<8xf32>
    %16 = vector.multi_reduction <maximumf>, %15, %cst_5 [1] : vector<8x8xf32> to vector<8xf32>
    %17 = vector.shape_cast %16 : vector<8xf32> to vector<8x1xf32>
    %18 = vector.broadcast %17 : vector<8x1xf32> to vector<8x8xf32>
    %19 = arith.subf %15, %18 : vector<8x8xf32>
    %20 = math.exp %19 : vector<8x8xf32>
    %cst_6 = arith.constant dense<0.000000e+00> : vector<8xf32>
    %21 = vector.multi_reduction <add>, %20, %cst_6 [1] : vector<8x8xf32> to vector<8xf32>
    %22 = vector.shape_cast %21 : vector<8xf32> to vector<8x1xf32>
    %23 = tpu.reciprocal %22 {approx = true} : vector<8x1xf32> -> vector<8x1xf32>
    %24 = vector.broadcast %23 : vector<8x1xf32> to vector<8x8xf32>
    %25 = arith.mulf %20, %24 : vector<8x8xf32>
    %26 = arith.truncf %25 : vector<8x8xf32> to vector<8x8xbf16>
    %cst_7 = arith.constant dense<0.000000e+00> : vector<8x384xf32>
    %27 = tpu.matmul %26, %9, %cst_7 {dimension_numbers = #tpu.dot_dimension_numbers<[1], [0], [0], [1], [0, 0, 1, 1], [], []>} : vector<8x8xbf16>, vector<8x384xbf16>, vector<8x384xf32> -> vector<8x384xf32>
    %c0_8 = arith.constant 0 : index
    %c0_9 = arith.constant 0 : index
    %28 = vector.load %arg8[%c0_8, %c0_9] : memref<16x384xf32, #tpu.memory_space<vmem>>, vector<8x384xf32>
    tpu.vector_store %arg8[%c0_8, %c0_9], %27 {strides = array<i32>} : memref<16x384xf32, #tpu.memory_space<vmem>>, vector<8x384xf32>,
    %29 = vector.extract_strided_slice %3 {offsets = [8, 0], sizes = [8, 384], strides = [1, 1]} : vector<16x1152xf32> to vector<8x384xf32>
    %30 = arith.truncf %29 : vector<8x384xf32> to vector<8x384xbf16>
    %31 = vector.extract_strided_slice %3 {offsets = [8, 384], sizes = [8, 384], strides = [1, 1]} : vector<16x1152xf32> to vector<8x384xf32>
    %32 = arith.truncf %31 : vector<8x384xf32> to vector<8x384xbf16>
    %33 = vector.extract_strided_slice %3 {offsets = [8, 768], sizes = [8, 384], strides = [1, 1]} : vector<16x1152xf32> to vector<8x384xf32>
    %34 = arith.truncf %33 : vector<8x384xf32> to vector<8x384xbf16>
    %cst_10 = arith.constant dense<0.000000e+00> : vector<8x8xf32>
    %35 = tpu.matmul %30, %32, %cst_10 {dimension_numbers = #tpu.dot_dimension_numbers<[1], [1], [0], [0], [0, 0, 1, 0], [], []>} : vector<8x384xbf16>, vector<8x384xbf16>, vector<8x8xf32> -> vector<8x8xf32>
    %36 = tpu.iota {dimensions = array<i32: 0>} : vector<8x8xi32>
    %37 = tpu.iota {dimensions = array<i32: 1>} : vector<8x8xi32>
    %38 = arith.cmpi sle, %37, %36 : vector<8x8xi32>
    %cst_11 = arith.constant -1.000000e+30 : f32
    %39 = vector.broadcast %cst_11 : f32 to vector<8x8xf32>
    %40 = arith.select %38, %35, %39 : vector<8x8xi1>, vector<8x8xf32>
    %cst_12 = arith.constant dense<0xFF800000> : vector<8xf32>
    %41 = vector.multi_reduction <maximumf>, %40, %cst_12 [1] : vector<8x8xf32> to vector<8xf32>
    %42 = vector.shape_cast %41 : vector<8xf32> to vector<8x1xf32>
    %43 = vector.broadcast %42 : vector<8x1xf32> to vector<8x8xf32>
    %44 = arith.subf %40, %43 : vector<8x8xf32>
    %45 = math.exp %44 : vector<8x8xf32>
    %cst_13 = arith.constant dense<0.000000e+00> : vector<8xf32>
    %46 = vector.multi_reduction <add>, %45, %cst_13 [1] : vector<8x8xf32> to vector<8xf32>
    %47 = vector.shape_cast %46 : vector<8xf32> to vector<8x1xf32>
    %48 = tpu.reciprocal %47 {approx = true} : vector<8x1xf32> -> vector<8x1xf32>
    %49 = vector.broadcast %48 : vector<8x1xf32> to vector<8x8xf32>
    %50 = arith.mulf %45, %49 : vector<8x8xf32>
    %51 = arith.truncf %50 : vector<8x8xf32> to vector<8x8xbf16>
    %cst_14 = arith.constant dense<0.000000e+00> : vector<8x384xf32>
    %52 = tpu.matmul %51, %34, %cst_14 {dimension_numbers = #tpu.dot_dimension_numbers<[1], [0], [0], [1], [0, 0, 1, 1], [], []>} : vector<8x8xbf16>, vector<8x384xbf16>, vector<8x384xf32> -> vector<8x384xf32>
    %c8 = arith.constant 8 : index
    %c0_15 = arith.constant 0 : index
    %53 = vector.load %arg8[%c8, %c0_15] : memref<16x384xf32, #tpu.memory_space<vmem>>, vector<8x384xf32>
    tpu.vector_store %arg8[%c8, %c0_15], %52 {strides = array<i32>} : memref<16x384xf32, #tpu.memory_space<vmem>>, vector<8x384xf32>,
    %c0_16 = arith.constant 0 : index
    %c0_17 = arith.constant 0 : index
    %54 = vector.load %arg8[%c0_16, %c0_17] : memref<16x384xf32, #tpu.memory_space<vmem>>, vector<16x384xf32>
    %55 = arith.truncf %54 : vector<16x384xf32> to vector<16x384xbf16>
    %c0_18 = arith.constant 0 : index
    %c0_19 = arith.constant 0 : index
    %56 = vector.load %arg2[%c0_18, %c0_19] : memref<384x384xbf16, #tpu.memory_space<vmem>>, vector<384x384xbf16>
    %cst_20 = arith.constant dense<0.000000e+00> : vector<16x384xf32>
    %57 = tpu.matmul %55, %56, %cst_20 {dimension_numbers = #tpu.dot_dimension_numbers<[1], [0], [0], [1], [0, 0, 1, 1], [], []>} : vector<16x384xbf16>, vector<384x384xbf16>, vector<16x384xf32> -> vector<16x384xf32>
    %c0_21 = arith.constant 0 : index
    %c0_22 = arith.constant 0 : index
    %58 = vector.load %arg6[%c0_21, %c0_22] : memref<6x384xf32, #tpu.memory_space<vmem>>, vector<1x384xf32>
    %59 = vector.broadcast %58 : vector<1x384xf32> to vector<16x384xf32>
    %60 = arith.addf %57, %59 : vector<16x384xf32>
    %61 = arith.addf %0, %60 : vector<16x384xf32>
    %c1 = arith.constant 1 : index
    %c0_23 = arith.constant 0 : index
    %62 = vector.load %arg6[%c1, %c0_23] : memref<6x384xf32, #tpu.memory_space<vmem>>, vector<1x384xf32>
    %c2 = arith.constant 2 : index
    %c0_24 = arith.constant 0 : index
    %63 = vector.load %arg6[%c2, %c0_24] : memref<6x384xf32, #tpu.memory_space<vmem>>, vector<1x384xf32>
    %cst_25 = arith.constant dense<0.000000e+00> : vector<16xf32>
    %64 = vector.multi_reduction <add>, %61, %cst_25 [1] : vector<16x384xf32> to vector<16xf32>
    %65 = vector.shape_cast %64 : vector<16xf32> to vector<16x1xf32>
    %cst_26 = arith.constant 3.840000e+02 : f32
    %66 = vector.broadcast %cst_26 : f32 to vector<16x1xf32>
    %67 = arith.divf %65, %66 : vector<16x1xf32>
    %68 = vector.broadcast %67 : vector<16x1xf32> to vector<16x384xf32>
    %69 = arith.subf %61, %68 : vector<16x384xf32>
    %70 = arith.mulf %69, %69 : vector<16x384xf32>
    %cst_27 = arith.constant dense<0.000000e+00> : vector<16xf32>
    %71 = vector.multi_reduction <add>, %70, %cst_27 [1] : vector<16x384xf32> to vector<16xf32>
    %72 = vector.shape_cast %71 : vector<16xf32> to vector<16x1xf32>
    %cst_28 = arith.constant 3.840000e+02 : f32
    %73 = vector.broadcast %cst_28 : f32 to vector<16x1xf32>
    %74 = arith.divf %72, %73 : vector<16x1xf32>
    %cst_29 = arith.constant 9.99999974E-6 : f32
    %75 = vector.broadcast %cst_29 : f32 to vector<16x1xf32>
    %76 = arith.addf %74, %75 : vector<16x1xf32>
    %77 = math.rsqrt %76 : vector<16x1xf32>
    %78 = vector.broadcast %77 : vector<16x1xf32> to vector<16x384xf32>
    %79 = arith.mulf %69, %78 : vector<16x384xf32>
    %80 = vector.broadcast %62 : vector<1x384xf32> to vector<16x384xf32>
    %81 = arith.mulf %79, %80 : vector<16x384xf32>
    %82 = vector.broadcast %63 : vector<1x384xf32> to vector<16x384xf32>
    %83 = arith.addf %81, %82 : vector<16x384xf32>
    %84 = arith.truncf %83 : vector<16x384xf32> to vector<16x384xbf16>
    %c0_30 = arith.constant 0 : index
    %c0_31 = arith.constant 0 : index
    %85 = vector.load %arg3[%c0_30, %c0_31] : memref<384x1536xbf16, #tpu.memory_space<vmem>>, vector<384x1536xbf16>
    %cst_32 = arith.constant dense<0.000000e+00> : vector<16x1536xf32>
    %86 = tpu.matmul %84, %85, %cst_32 {dimension_numbers = #tpu.dot_dimension_numbers<[1], [0], [0], [1], [0, 0, 1, 1], [], []>} : vector<16x384xbf16>, vector<384x1536xbf16>, vector<16x1536xf32> -> vector<16x1536xf32>
    %c0_33 = arith.constant 0 : index
    %c0_34 = arith.constant 0 : index
    %87 = vector.load %arg5[%c0_33, %c0_34] : memref<1x1536xf32, #tpu.memory_space<vmem>>, vector<1x1536xf32>
    %88 = vector.broadcast %87 : vector<1x1536xf32> to vector<16x1536xf32>
    %89 = arith.addf %86, %88 : vector<16x1536xf32>
    %cst_35 = arith.constant 0.000000e+00 : f32
    %90 = vector.broadcast %cst_35 : f32 to vector<16x1536xf32>
    %91 = arith.maximumf %89, %90 : vector<16x1536xf32>
    %92 = arith.truncf %91 : vector<16x1536xf32> to vector<16x1536xbf16>
    %c0_36 = arith.constant 0 : index
    %c0_37 = arith.constant 0 : index
    %93 = vector.load %arg4[%c0_36, %c0_37] : memref<1536x384xbf16, #tpu.memory_space<vmem>>, vector<1536x384xbf16>
    %cst_38 = arith.constant dense<0.000000e+00> : vector<16x384xf32>
    %94 = tpu.matmul %92, %93, %cst_38 {dimension_numbers = #tpu.dot_dimension_numbers<[1], [0], [0], [1], [0, 0, 1, 1], [], []>} : vector<16x1536xbf16>, vector<1536x384xbf16>, vector<16x384xf32> -> vector<16x384xf32>
    %c3 = arith.constant 3 : index
    %c0_39 = arith.constant 0 : index
    %95 = vector.load %arg6[%c3, %c0_39] : memref<6x384xf32, #tpu.memory_space<vmem>>, vector<1x384xf32>
    %96 = vector.broadcast %95 : vector<1x384xf32> to vector<16x384xf32>
    %97 = arith.addf %94, %96 : vector<16x384xf32>
    %98 = arith.addf %83, %97 : vector<16x384xf32>
    %c4 = arith.constant 4 : index
    %c0_40 = arith.constant 0 : index
    %99 = vector.load %arg6[%c4, %c0_40] : memref<6x384xf32, #tpu.memory_space<vmem>>, vector<1x384xf32>
    %c5 = arith.constant 5 : index
    %c0_41 = arith.constant 0 : index
    %100 = vector.load %arg6[%c5, %c0_41] : memref<6x384xf32, #tpu.memory_space<vmem>>, vector<1x384xf32>
    %cst_42 = arith.constant dense<0.000000e+00> : vector<16xf32>
    %101 = vector.multi_reduction <add>, %98, %cst_42 [1] : vector<16x384xf32> to vector<16xf32>
    %102 = vector.shape_cast %101 : vector<16xf32> to vector<16x1xf32>
    %cst_43 = arith.constant 3.840000e+02 : f32
    %103 = vector.broadcast %cst_43 : f32 to vector<16x1xf32>
    %104 = arith.divf %102, %103 : vector<16x1xf32>
    %105 = vector.broadcast %104 : vector<16x1xf32> to vector<16x384xf32>
    %106 = arith.subf %98, %105 : vector<16x384xf32>
    %107 = arith.mulf %106, %106 : vector<16x384xf32>
    %cst_44 = arith.constant dense<0.000000e+00> : vector<16xf32>
    %108 = vector.multi_reduction <add>, %107, %cst_44 [1] : vector<16x384xf32> to vector<16xf32>
    %109 = vector.shape_cast %108 : vector<16xf32> to vector<16x1xf32>
    %cst_45 = arith.constant 3.840000e+02 : f32
    %110 = vector.broadcast %cst_45 : f32 to vector<16x1xf32>
    %111 = arith.divf %109, %110 : vector<16x1xf32>
    %cst_46 = arith.constant 9.99999974E-6 : f32
    %112 = vector.broadcast %cst_46 : f32 to vector<16x1xf32>
    %113 = arith.addf %111, %112 : vector<16x1xf32>
    %114 = math.rsqrt %113 : vector<16x1xf32>
    %115 = vector.broadcast %114 : vector<16x1xf32> to vector<16x384xf32>
    %116 = arith.mulf %106, %115 : vector<16x384xf32>
    %117 = vector.broadcast %99 : vector<1x384xf32> to vector<16x384xf32>
    %118 = arith.mulf %116, %117 : vector<16x384xf32>
    %119 = vector.broadcast %100 : vector<1x384xf32> to vector<16x384xf32>
    %120 = arith.addf %118, %119 : vector<16x384xf32>
    %c0_47 = arith.constant 0 : index
    %c0_48 = arith.constant 0 : index
    %121 = vector.load %arg7[%c0_47, %c0_48] : memref<16x384xf32, #tpu.memory_space<vmem>>, vector<16x384xf32>
    tpu.vector_store %arg7[%c0_47, %c0_48], %120 {strides = array<i32>} : memref<16x384xf32, #tpu.memory_space<vmem>>, vector<16x384xf32>,
    return
  }
}

</mosaic_0001>

<bundles_post_ra>
// kernel: tpu_custom_call.1
= control target key start
LH: loop header
LB: loop body
LE: loop exit
PB: predicated region body
PF: predicated region fallthrough
CT: control target
= control target key end

     0   :  { %12 = vsyncpa [#allocation4], 0  ;;  %s11194_s0 = inlined_call_operand.hbm [shape: f32[16,384], index: 0, kind: input, shape index: {}]   ;;  %s11195_s1 = inlined_call_operand.hbm [shape: bf16[384,1152], index: 1, kind: input, shape index: {}]   ;;  %s11196_s2 = inlined_call_operand.hbm [shape: bf16[384,384], index: 2, kind: input, shape index: {}]   ;;  %s11197_s3 = inlined_call_operand.hbm [shape: bf16[384,1536], index: 3, kind: input, shape index: {}]   ;;  %s11198_s4 = inlined_call_operand.hbm [shape: bf16[1536,384], index: 4, kind: input, shape index: {}]   ;;  %s11199_s5 = inlined_call_operand.hbm [shape: f32[1,1536], index: 5, kind: input, shape index: {}]   ;;  %s11200_s6 = inlined_call_operand.hbm [shape: f32[6,384], index: 6, kind: input, shape index: {}]   ;;  %s11201_s7 = inlined_call_operand.hbm [shape: f32[16,384], index: 7, kind: output, shape index: {}]  }
   0x1   :  { %13 = vsyncpa [#allocation7], 0 }
   0x2   :  { %14 = vsyncpa [#allocation10], 0 }
   0x3   :  { %15 = vsyncpa [#allocation13], 0 }
   0x4   :  { %16 = vsyncpa [#allocation5], 0  ;;  %s10674_s24 = smov [#allocation6]   ;;  %s10488_s28 = scalar_lea.hbm %s11195_s1, 27648 }
   0x5   :  { %s34_s25 = sshll.u32 %s10674_s24, 4  ;;  %p10489_p0 = scmp.ne.s32.totalorder %s11195_s1, %s10488_s28  ;;  %s35_s25 = int_to_ptr.vmem [resolvable:$true] %s34_s25 }
   0x6   :  { %p10492_p1 = scmp.lt.u32.totalorder %s10488_s28, %s11195_s1 }
   0x8   :  { %p10494_p2 = pnand %p10492_p1, %p10489_p0 }
   0xa   :  { %10497 = shalt.err (!%p10494_p2)
}
   0xb   :  { %s10498_s10 = scalar_lea.vmem %s35_s25, 27648  ;;  %p10503_p4 = scmp.lt.s32.totalorder %s35_s25, %s35_s25 }
   0xc   :  { %p10499_p3 = scmp.ne.s32.totalorder %s35_s25, %s10498_s10  ;;  %p10504_p5 = scmp.lt.s32.totalorder %s10498_s10, %s10498_s10 }
   0xe   :  { %p10505_p6 = por %p10504_p5, %p10503_p4 }
  0x10   :  { %p10506_p7 = pnand %p10505_p6, %p10499_p3 }
  0x12   :  { %10509 = shalt.err (!%p10506_p7)
}
  0x13   :  { %s10675_s11 = smov 576   ;;  %s10676_s12 = smov 36  }
  0x14   :  { %40 = dma.hbm_to_vmem [thread:$0]  %s11195_s1, 27648, %s35_s25, [#allocation7], %s10675_s11, %s10675_s11, %s10676_s12  }
  0x15   :  { %s10677_s15 = smov [#allocation9]   ;;  %s10510_s19 = scalar_lea.hbm %s11197_s3, 36864 }
  0x16   :  { %s58_s16 = sshll.u32 %s10677_s15, 4  ;;  %p10511_p8 = scmp.ne.s32.totalorder %s11197_s3, %s10510_s19  ;;  %s59_s16 = int_to_ptr.vmem [resolvable:$true] %s58_s16 }
  0x17   :  { %p10514_p9 = scmp.lt.u32.totalorder %s10510_s19, %s11197_s3 }
  0x19   :  { %p10516_p10 = pnand %p10514_p9, %p10511_p8 }
  0x1b   :  { %10519 = shalt.err (!%p10516_p10)
}
  0x1c   :  { %s10520_s24 = scalar_lea.vmem %s59_s16, 36864  ;;  %p10525_p12 = scmp.lt.s32.totalorder %s59_s16, %s59_s16 }
  0x1d   :  { %p10521_p11 = scmp.ne.s32.totalorder %s59_s16, %s10520_s24  ;;  %p10526_p13 = scmp.lt.s32.totalorder %s10520_s24, %s10520_s24 }
  0x1f   :  { %p10527_p0 = por %p10526_p13, %p10525_p12 }
  0x21   :  { %p10528_p1 = pnand %p10527_p0, %p10521_p11 }
  0x23   :  { %10531 = shalt.err (!%p10528_p1)
}
  0x24   :  { %s10678_s1 = smov 768   ;;  %s10679_s25 = smov 48  }
  0x25   :  { %64 = dma.hbm_to_vmem [thread:$0]  %s11197_s3, 36864, %s59_s16, [#allocation10], %s10678_s1, %s10678_s1, %s10679_s25  }
  0x26   :  { %s10680_s28 = smov [#allocation12]   ;;  %s10681_s30 = smov [#allocation3]  }
  0x27   :  { %s83_s29 = sshll.u32 %s10680_s28, 4  ;;  %s22_s8 = sshll.u32 %s10681_s30, 4  ;;  %s84_s29 = int_to_ptr.vmem [resolvable:$true] %s83_s29  ;;  %s10757_s8 = int_to_ptr.vmem [resolvable:$true] %s22_s8 }
  0x28   :  { %s10532_s11 = scalar_lea.hbm %s11199_s5, 192 }
  0x29   :  { %p10533_p2 = scmp.ne.s32.totalorder %s11199_s5, %s10532_s11  ;;  %p10536_p3 = scmp.lt.u32.totalorder %s10532_s11, %s11199_s5 }
  0x2b   :  { %p10538_p4 = pnand %p10536_p3, %p10533_p2 }
  0x2d   :  { %10541 = shalt.err (!%p10538_p4)
}
  0x2e   :  { %s10542_s3 = scalar_lea.vmem %s84_s29, 192  ;;  %p10547_p6 = scmp.lt.s32.totalorder %s84_s29, %s84_s29 }
  0x2f   :  { %p10543_p5 = scmp.ne.s32.totalorder %s84_s29, %s10542_s3  ;;  %p10548_p7 = scmp.lt.s32.totalorder %s10542_s3, %s10542_s3 }
  0x31   :  { %p10549_p8 = por %p10548_p7, %p10547_p6 }
  0x33   :  { %p10550_p9 = pnand %p10549_p8, %p10543_p5 }
  0x35   :  { %10553 = shalt.err (!%p10550_p9)
}
  0x36   :  { %86 = dma.hbm_to_vmem [thread:$0]  %s11199_s5, 192, %s84_s29, [#allocation13]  }
  0x37   :  { %s10554_s20 = scalar_lea.hbm %s11194_s0, 768 }
  0x38   :  { %p10555_p10 = scmp.ne.s32.totalorder %s11194_s0, %s10554_s20  ;;  %p10558_p11 = scmp.lt.u32.totalorder %s10554_s20, %s11194_s0 }
  0x3a   :  { %p10560_p12 = pnand %p10558_p11, %p10555_p10 }
  0x3c   :  { %10563 = shalt.err (!%p10560_p12)
}
  0x3d   :  { %s10564_s1 = scalar_lea.vmem %s10757_s8, 768  ;;  %p10569_p0 = scmp.lt.s32.totalorder %s10757_s8, %s10757_s8 }
  0x3e   :  { %p10565_p13 = scmp.ne.s32.totalorder %s10757_s8, %s10564_s1  ;;  %p10570_p1 = scmp.lt.s32.totalorder %s10564_s1, %s10564_s1 }
  0x40   :  { %p10571_p2 = por %p10570_p1, %p10569_p0 }
  0x42   :  { %p10572_p3 = pnand %p10571_p2, %p10565_p13 }
  0x44   :  { %10575 = shalt.err (!%p10572_p3)
}
  0x45   :  { %s10682_s5 = smov 384   ;;  %s10683_s25 = smov 24  }
  0x46   :  { %28 = dma.hbm_to_vmem [thread:$0]  %s11194_s0, 768, %s10757_s8, [#allocation4], %s10682_s5, %s10682_s5, %s10683_s25  }
  0x47   :  { %s10684_s28 = smov [#allocation8]   ;;  %s10576_s10 = scalar_lea.hbm %s11196_s2, 9216 }
  0x48   :  { %s46_s29 = sshll.u32 %s10684_s28, 4  ;;  %p10577_p4 = scmp.ne.s32.totalorder %s11196_s2, %s10576_s10  ;;  %s47_s29 = int_to_ptr.vmem [resolvable:$true] %s46_s29 }
  0x49   :  { %p10580_p5 = scmp.lt.u32.totalorder %s10576_s10, %s11196_s2 }
  0x4b   :  { %p10582_p6 = pnand %p10580_p5, %p10577_p4 }
  0x4d   :  { %10585 = shalt.err (!%p10582_p6)
}
  0x4e   :  { %s10586_s15 = scalar_lea.vmem %s47_s29, 9216  ;;  %p10591_p8 = scmp.lt.s32.totalorder %s47_s29, %s47_s29 }
  0x4f   :  { %p10587_p7 = scmp.ne.s32.totalorder %s47_s29, %s10586_s15  ;;  %p10592_p9 = scmp.lt.s32.totalorder %s10586_s15, %s10586_s15 }
  0x51   :  { %p10593_p10 = por %p10592_p9, %p10591_p8 }
  0x53   :  { %p10594_p11 = pnand %p10593_p10, %p10587_p7 }
  0x55   :  { %10597 = shalt.err (!%p10594_p11)
}
  0x56   :  { %s10685_s0 = smov 192   ;;  %s10686_s8 = smov 12  }
  0x57   :  { %52 = dma.hbm_to_vmem [thread:$0]  %s11196_s2, 9216, %s47_s29, [#allocation7], %s10685_s0, %s10685_s0, %s10686_s8  }
  0x58   :  { %s10687_s17 = smov [#allocation11]   ;;  %s10688_s19 = smov [#allocation14]  }
  0x59   :  { %s70_s18 = sshll.u32 %s10687_s17, 4  ;;  %s93_s20 = sshll.u32 %s10688_s19, 4  ;;  %s71_s18 = int_to_ptr.vmem [resolvable:$true] %s70_s18  ;;  %s94_s20 = int_to_ptr.vmem [resolvable:$true] %s93_s20 }
  0x5a   :  { %s10598_s23 = scalar_lea.hbm %s11198_s4, 36864 }
  0x5b   :  { %p10599_p12 = scmp.ne.s32.totalorder %s11198_s4, %s10598_s23  ;;  %p10602_p13 = scmp.lt.u32.totalorder %s10598_s23, %s11198_s4 }
  0x5d   :  { %p10604_p0 = pnand %p10602_p13, %p10599_p12 }
  0x5f   :  { %10607 = shalt.err (!%p10604_p0)
}
  0x60   :  { %s10608_s2 = scalar_lea.vmem %s71_s18, 36864  ;;  %p10613_p2 = scmp.lt.s32.totalorder %s71_s18, %s71_s18 }
  0x61   :  { %p10609_p1 = scmp.ne.s32.totalorder %s71_s18, %s10608_s2  ;;  %p10614_p3 = scmp.lt.s32.totalorder %s10608_s2, %s10608_s2 }
  0x63   :  { %p10615_p4 = por %p10614_p3, %p10613_p2 }
  0x65   :  { %p10616_p5 = pnand %p10615_p4, %p10609_p1 }
  0x67   :  { %10619 = shalt.err (!%p10616_p5)
}
  0x68   :  { %76 = dma.hbm_to_vmem [thread:$0]  %s11198_s4, 36864, %s71_s18, [#allocation10], %s10685_s0, %s10685_s0, %s10686_s8  }
  0x69   :  { %s10620_s10 = scalar_lea.hbm %s11200_s6, 384 }
  0x6a   :  { %p10621_p6 = scmp.ne.s32.totalorder %s11200_s6, %s10620_s10  ;;  %p10624_p7 = scmp.lt.u32.totalorder %s10620_s10, %s11200_s6 }
  0x6c   :  { %p10626_p8 = pnand %p10624_p7, %p10621_p6 }
  0x6e   :  { %10629 = shalt.err (!%p10626_p8)
}
  0x6f   :  { %s10630_s15 = scalar_lea.vmem %s94_s20, 384  ;;  %p10635_p10 = scmp.lt.s32.totalorder %s94_s20, %s94_s20 }
  0x70   :  { %p10631_p9 = scmp.ne.s32.totalorder %s94_s20, %s10630_s15  ;;  %p10636_p11 = scmp.lt.s32.totalorder %s10630_s15, %s10630_s15 }
  0x72   :  { %p10637_p12 = por %p10636_p11, %p10635_p10 }
  0x74   :  { %p10638_p13 = pnand %p10637_p12, %p10631_p9 }
  0x76   :  { %10641 = shalt.err (!%p10638_p13)
}
  0x77   :  { %96 = dma.hbm_to_vmem [thread:$0]  %s11200_s6, 384, %s94_s20, [#allocation13]  }
  0x78   :  { %10664 = dma.done.wait [#allocation4], 768  }
  0x79   :  { %10665 = vsyncadd [#allocation4], 4294966528 }
  0x7a   :  { %10666 = dma.done.wait [#allocation7], 36864  }
  0x7b   :  { %10667 = vsyncadd [#allocation7], 4294930432 }
  0x7c   :  { %10668 = dma.done.wait [#allocation10], 73728  }
  0x7d   :  { %10669 = vsyncadd [#allocation10], 4294893568 }
  0x7e   :  { %10670 = dma.done.wait [#allocation13], 576  }
  0x7f   :  { %10671 = vsyncadd [#allocation13], 4294966720  ;;  %v10689_v0 = vmov 0   ;;  %v9242_v1 = vld [vmem:[#allocation6 + $0x4] ss:$36 sps:$4 sm:$0xff]   ;;  %v120_v14 = vld [vmem:[#allocation3 + $0x8] sm:$0xff] }
  0x80   :  { %1633 = vmatprep.mubr.bf16.mxu1 %v10689_v0  ;;  %v9244_v2 = vld [vmem:[#allocation6] ss:$36 sps:$4 sm:$0xff]   ;;  %1472 = vmatprep.subr.bf16.mxu0 %v9242_v1  ;;  %v9245_v3 = vld [vmem:[#allocation6 + $0x4c] ss:$36 sps:$4 sm:$0xff]   ;;  %v9248_v5 = vld [vmem:[#allocation6 + $0x94] ss:$36 sps:$4 sm:$0xff]  }
  0x81   :  { %1473 = vmatpush1.bf16.msra.mxu0 %v9244_v2  ;;  %v9247_v4 = vld [vmem:[#allocation6 + $0x48] ss:$36 sps:$4 sm:$0xff]   ;;  %v9250_v6 = vld [vmem:[#allocation6 + $0x90] ss:$36 sps:$4 sm:$0xff]   ;;  %v9251_v7 = vld [vmem:[#allocation6 + $0xdc] ss:$36 sps:$4 sm:$0xff]  }
  0x82   :  { %1474 = vmatprep.subr.bf16.mxu0 %v9245_v3  ;;  %v9253_v8 = vld [vmem:[#allocation6 + $0xd8] ss:$36 sps:$4 sm:$0xff]   ;;  %v9254_v9 = vld [vmem:[#allocation6 + $0x124] ss:$36 sps:$4 sm:$0xff]   ;;  %v9257_v11 = vld [vmem:[#allocation6 + $0x16c] ss:$36 sps:$4 sm:$0xff]  }
  0x83   :  { %v9256_v10 = vld [vmem:[#allocation6 + $0x120] ss:$36 sps:$4 sm:$0xff]   ;;  %v9259_v12 = vld [vmem:[#allocation6 + $0x168] ss:$36 sps:$4 sm:$0xff]   ;;  %v9260_v13 = vld [vmem:[#allocation6 + $0x1b4] ss:$36 sps:$4 sm:$0xff]  }
  0x84   :  { %v123_v15 = vld [vmem:[#allocation3 + $0x20] sm:$0xff]  ;;  %v9263_v18 = vld [vmem:[#allocation6 + $0x1fc] ss:$36 sps:$4 sm:$0xff]   ;;  %v9266_v20 = vld [vmem:[#allocation6 + $0x244] ss:$36 sps:$4 sm:$0xff]   ;;  %vm10691_vm0 = vmmov 0  }
  0x85   :  { %1475 = vmatpush1.bf16.msra.mxu0 %v9247_v4  ;;  %v10828_v16 = vpack.c.bf16 %v123_v15, %v120_v14  ;;  %v9262_v17 = vld [vmem:[#allocation6 + $0x1b0] ss:$36 sps:$4 sm:$0xff]   ;;  %v9265_v19 = vld [vmem:[#allocation6 + $0x1f8] ss:$36 sps:$4 sm:$0xff]   ;;  %v9268_v21 = vld [vmem:[#allocation6 + $0x240] ss:$36 sps:$4 sm:$0xff]  }
  0x86   :  { %1476 = vmatprep.subr.bf16.mxu0 %v9248_v5  ;;  %v9269_v22 = vld [vmem:[#allocation6 + $0x28c] ss:$36 sps:$4 sm:$0xff]   ;;  %v9272_v24 = vld [vmem:[#allocation6 + $0x2d4] ss:$36 sps:$4 sm:$0xff]   ;;  %v9275_v26 = vld [vmem:[#allocation6 + $0x31c] ss:$36 sps:$4 sm:$0xff]  }
  0x87   :  { %1504 = vmatprep.mubr.bf16.mxu0 %v10828_v16  ;;  %v9271_v23 = vld [vmem:[#allocation6 + $0x288] ss:$36 sps:$4 sm:$0xff]   ;;  %v9274_v25 = vld [vmem:[#allocation6 + $0x2d0] ss:$36 sps:$4 sm:$0xff]   ;;  %v9277_v27 = vld [vmem:[#allocation6 + $0x318] ss:$36 sps:$4 sm:$0xff]  }
  0x88   :  { %v9278_v28 = vld [vmem:[#allocation6 + $0x364] ss:$36 sps:$4 sm:$0xff]   ;;  %v9341_v30 = vld [vmem:[#allocation6 + $0x48c] ss:$36 sps:$4 sm:$0xff]   ;;  %v9347_v33 = vld [vmem:[#allocation6 + $0x4d4] ss:$36 sps:$4 sm:$0xff]  }
  0x89   :  { %1477 = vmatpush1.bf16.msra.mxu0 %v9250_v6  ;;  %v9280_v29 = vld [vmem:[#allocation6 + $0x360] ss:$36 sps:$4 sm:$0xff]   ;;  %v9343_v31 = vld [vmem:[#allocation6 + $0x488] ss:$36 sps:$4 sm:$0xff]   ;;  %1601 = vmatprep.subr.bf16.mxu1 %v9341_v30  ;;  %v9349_v34 = vld [vmem:[#allocation6 + $0x4d0] ss:$36 sps:$4 sm:$0xff]  }
  0x8a   :  { %1478 = vmatprep.subr.bf16.mxu0 %v9251_v7  ;;  %v9281_v32 = vld [vmem:[#allocation6 + $0x3ac] ss:$36 sps:$4 sm:$0xff]   ;;  %1602 = vmatpush1.bf16.msra.mxu1 %v9343_v31  ;;  %v9284_v36 = vld [vmem:[#allocation6 + $0x3f4] ss:$36 sps:$4 sm:$0xff]   ;;  %v9353_v37 = vld [vmem:[#allocation6 + $0x51c] ss:$36 sps:$4 sm:$0xff]  }
  0x8b   :  { %v9283_v35 = vld [vmem:[#allocation6 + $0x3a8] ss:$36 sps:$4 sm:$0xff]   ;;  %1603 = vmatprep.subr.bf16.mxu1 %v9347_v33  ;;  %v9355_v38 = vld [vmem:[#allocation6 + $0x518] ss:$36 sps:$4 sm:$0xff]   ;;  %v9286_v40 = vld [vmem:[#allocation6 + $0x3f0] ss:$36 sps:$4 sm:$0xff]  }
  0x8c   :  { %v9359_v39 = vld [vmem:[#allocation6 + $0x564] ss:$36 sps:$4 sm:$0xff]   ;;  %v9287_v41 = vld [vmem:[#allocation6 + $0x43c] ss:$36 sps:$4 sm:$0xff]   ;;  %v119_v43 = vld [vmem:[#allocation3] sm:$0xff]  ;;  %vm2009_vm1 = vcmask 1043456  }
  0x8d   :  { %1479 = vmatpush1.bf16.msra.mxu0 %v9253_v8  ;;  %v9289_v42 = vld [vmem:[#allocation6 + $0x438] ss:$36 sps:$4 sm:$0xff]   ;;  %v9361_v44 = vld [vmem:[#allocation6 + $0x560] ss:$36 sps:$4 sm:$0xff]   ;;  %v9365_v45 = vld [vmem:[#allocation6 + $0x5ac] ss:$36 sps:$4 sm:$0xff]  }
  0x8e   :  { %1480 = vmatprep.subr.bf16.mxu0 %v9254_v9  ;;  %1604 = vmatpush1.bf16.msra.mxu1 %v9349_v34  ;;  %v122_v46 = vld [vmem:[#allocation3 + $0x18] sm:$0xff]  ;;  %v9371_v50 = vld [vmem:[#allocation6 + $0x5f4] ss:$36 sps:$4 sm:$0xff]   ;;  %v9290_v51 = vld [vmem:[#allocation6 + $0x480] ss:$36 sps:$4 sm:$0xff]   ;;  %vm1993_vm3 = vcmask 64512  }
  0x8f   :  { %1605 = vmatprep.subr.bf16.mxu1 %v9353_v37  ;;  %v9292_v47 = vld [vmem:[#allocation6 + $0x484] ss:$36 sps:$4 sm:$0xff]   ;;  %v10831_v49 = vpack.c.bf16 %v122_v46, %v119_v43  ;;  %v9295_v52 = vld [vmem:[#allocation6 + $0x4cc] ss:$36 sps:$4 sm:$0xff]   ;;  %v9377_v54 = vld [vmem:[#allocation6 + $0x63c] ss:$36 sps:$4 sm:$0xff]  }
  0x90   :  { %v9367_v48 = vld [vmem:[#allocation6 + $0x5a8] ss:$36 sps:$4 sm:$0xff]   ;;  %v9373_v53 = vld [vmem:[#allocation6 + $0x5f0] ss:$36 sps:$4 sm:$0xff]   ;;  %v9379_v57 = vld [vmem:[#allocation6 + $0x638] ss:$36 sps:$4 sm:$0xff]  }
  0x91   :  { %1481 = vmatpush1.bf16.msra.mxu0 %v9256_v10  ;;  %v9293_v55 = vld [vmem:[#allocation6 + $0x4c8] ss:$36 sps:$4 sm:$0xff]   ;;  %v9298_v56 = vld [vmem:[#allocation6 + $0x514] ss:$36 sps:$4 sm:$0xff]   ;;  %v9301_v60 = vld [vmem:[#allocation6 + $0x55c] ss:$36 sps:$4 sm:$0xff]  }
  0x92   :  { %1482 = vmatprep.subr.bf16.mxu0 %v9257_v11  ;;  %1606 = vmatpush1.bf16.msra.mxu1 %v9355_v38  ;;  %v9383_v58 = vld [vmem:[#allocation6 + $0x684] ss:$36 sps:$4 sm:$0xff]   ;;  %v9296_v59 = vld [vmem:[#allocation6 + $0x510] ss:$36 sps:$4 sm:$0xff]   ;;  %v9299_v61 = vld [vmem:[#allocation6 + $0x558] ss:$36 sps:$4 sm:$0xff]  }
  0x93   :  { %1607 = vmatprep.subr.bf16.mxu1 %v9359_v39  ;;  %v9385_v62 = vld [vmem:[#allocation6 + $0x680] ss:$36 sps:$4 sm:$0xff]   ;;  %v124_v1 = vld [vmem:[#allocation3 + $0x28] sm:$0xff]  ;;  %v9307_v5 = vld [vmem:[#allocation6 + $0x5ec] ss:$36 sps:$4 sm:$0xff]   ;;  %s10692_s6 = smov [#allocation15]  }
  0x94   :  { %v121_v63 = vld [vmem:[#allocation3 + $0x10] sm:$0xff]  ;;  %v9305_v6 = vld [vmem:[#allocation6 + $0x5e8] ss:$36 sps:$4 sm:$0xff]   ;;  %v9310_v7 = vld [vmem:[#allocation6 + $0x634] ss:$36 sps:$4 sm:$0xff]   ;;  %s7968_s8 = sshll.u32 %s10692_s6, 4  ;;  %s7969_s8 = int_to_ptr.vmem [resolvable:$true] %s7968_s8 }
  0x95   :  { %1483 = vmatpush1.bf16.msra.mxu0 %v9259_v12  ;;  %v9304_v2 = vld [vmem:[#allocation6 + $0x5a4] ss:$36 sps:$4 sm:$0xff]   ;;  %v10835_v3 = vpack.c.bf16 %v124_v1, %v121_v63  ;;  %v9308_v8 = vld [vmem:[#allocation6 + $0x630] ss:$36 sps:$4 sm:$0xff]   ;;  %v9313_v9 = vld [vmem:[#allocation6 + $0x67c] ss:$36 sps:$4 sm:$0xff]   ;;  %p10647_p1 = scmp.lt.s32.totalorder %s7969_s8, %s7969_s8 }
  0x96   :  { %1484 = vmatprep.subr.bf16.mxu0 %v9260_v13  ;;  %1608 = vmatpush1.bf16.msra.mxu1 %v9361_v44  ;;  %v9302_v4 = vld [vmem:[#allocation6 + $0x5a0] ss:$36 sps:$4 sm:$0xff]   ;;  %v9311_v10 = vld [vmem:[#allocation6 + $0x678] ss:$36 sps:$4 sm:$0xff]   ;;  %v9316_v11 = vld [vmem:[#allocation6 + $0xc] ss:$36 sps:$4 sm:$0xff]  }
  0x97   :  { %1609 = vmatprep.subr.bf16.mxu1 %v9365_v45  ;;  %v9314_v12 = vld [vmem:[#allocation6 + $0x8] ss:$36 sps:$4 sm:$0xff]   ;;  %v9319_v13 = vld [vmem:[#allocation6 + $0x54] ss:$36 sps:$4 sm:$0xff]   ;;  %v9322_v15 = vld [vmem:[#allocation6 + $0x9c] ss:$36 sps:$4 sm:$0xff]  }
  0x98   :  { %v9317_v14 = vld [vmem:[#allocation6 + $0x50] ss:$36 sps:$4 sm:$0xff]   ;;  %v9350_v33 = vld [vmem:[#allocation6 + $0x2d8] ss:$36 sps:$4 sm:$0xff]   ;;  %v9358_v34 = vld [vmem:[#allocation6 + $0x324] ss:$36 sps:$4 sm:$0xff]  }
  0x99   :  { %1485 = vmatpush1.bf16.msra.mxu0 %v9262_v17  ;;  %v9320_v17 = vld [vmem:[#allocation6 + $0x98] ss:$36 sps:$4 sm:$0xff]   ;;  %v9344_v31 = vld [vmem:[#allocation6 + $0x290] ss:$36 sps:$4 sm:$0xff]   ;;  %v9362_v37 = vld [vmem:[#allocation6 + $0x368] ss:$36 sps:$4 sm:$0xff]  }
  0x9a   :  { %1486 = vmatprep.subr.bf16.mxu0 %v9263_v18  ;;  %1610 = vmatpush1.bf16.msra.mxu1 %v9367_v48  ;;  %v9325_v18 = vld [vmem:[#allocation6 + $0xe4] ss:$36 sps:$4 sm:$0xff]   ;;  %v9346_v30 = vld [vmem:[#allocation6 + $0x294] ss:$36 sps:$4 sm:$0xff]   ;;  %v9391_v46 = vld [vmem:[#allocation6 + $0x5c] ss:$36 sps:$4 sm:$0xff]  }
  0x9b   :  { %1611 = vmatprep.subr.bf16.mxu1 %v9371_v50  ;;  %v9370_v38 = vld [vmem:[#allocation6 + $0x3b4] ss:$36 sps:$4 sm:$0xff]   ;;  %v9380_v43 = vld [vmem:[#allocation6 + $0x440] ss:$36 sps:$4 sm:$0xff]   ;;  %v9407_v63 = vld [vmem:[#allocation6 + $0x208] ss:$36 sps:$4 sm:$0xff]  }
  0x9c   :  { %v9368_v39 = vld [vmem:[#allocation6 + $0x3b0] ss:$36 sps:$4 sm:$0xff]   ;;  %v9394_v48 = vld [vmem:[#allocation6 + $0xa4] ss:$36 sps:$4 sm:$0xff]   ;;  %s10642_s3 = scalar_lea.vmem %s7969_s8, 768 }
  0x9d   :  { %1487 = vmatpush1.bf16.msra.mxu0 %v9265_v19  ;;  %v9323_v19 = vld [vmem:[#allocation6 + $0xe0] ss:$36 sps:$4 sm:$0xff]   ;;  %v9388_v44 = vld [vmem:[#allocation6 + $0x14] ss:$36 sps:$4 sm:$0xff]   ;;  %p10643_p0 = scmp.ne.s32.totalorder %s7969_s8, %s10642_s3  ;;  %p10648_p2 = scmp.lt.s32.totalorder %s10642_s3, %s10642_s3 }
  0x9e   :  { %1488 = vmatprep.subr.bf16.mxu0 %v9266_v20  ;;  %1612 = vmatpush1.bf16.msra.mxu1 %v9373_v53  ;;  %v9328_v20 = vld [vmem:[#allocation6 + $0x12c] ss:$36 sps:$4 sm:$0xff]   ;;  %v9392_v50 = vld [vmem:[#allocation6 + $0xa0] ss:$36 sps:$4 sm:$0xff]   ;;  %v9400_v53 = vld [vmem:[#allocation6 + $0x134] ss:$36 sps:$4 sm:$0xff]  }
  0x9f   :  { %1613 = vmatprep.subr.bf16.mxu1 %v9377_v54  ;;  %v9386_v45 = vld [vmem:[#allocation6 + $0x10] ss:$36 sps:$4 sm:$0xff]   ;;  %p10649_p3 = por %p10648_p2, %p10647_p1 }
  0xa0   :  { %v9398_v54 = vld [vmem:[#allocation6 + $0x130] ss:$36 sps:$4 sm:$0xff]  }
  0xa1   :  { %1489 = vmatpush1.bf16.msra.mxu0 %v9268_v21  ;;  %v9326_v21 = vld [vmem:[#allocation6 + $0x128] ss:$36 sps:$4 sm:$0xff]   ;;  %v9412_v1 = vld [vmem:[#allocation6 + $0x254] ss:$36 sps:$4 sm:$0xff]   ;;  %p10650_p4 = pnand %p10649_p3, %p10643_p0 }
  0xa2   :  { %1490 = vmatprep.subr.bf16.mxu0 %v9269_v22  ;;  %1614 = vmatpush1.bf16.msra.mxu1 %v9379_v57  ;;  %v9331_v22 = vld [vmem:[#allocation6 + $0x174] ss:$36 sps:$4 sm:$0xff]   ;;  %v9406_v57 = vld [vmem:[#allocation6 + $0x1c4] ss:$36 sps:$4 sm:$0xff]  }
  0xa3   :  { %1615 = vmatprep.subr.bf16.mxu1 %v9383_v58  ;;  %v9404_v58 = vld [vmem:[#allocation6 + $0x1c0] ss:$36 sps:$4 sm:$0xff]  }
  0xa5   :  { %1491 = vmatpush1.bf16.msra.mxu0 %v9271_v23  ;;  %v9329_v23 = vld [vmem:[#allocation6 + $0x170] ss:$36 sps:$4 sm:$0xff]  }
  0xa6   :  { %1492 = vmatprep.subr.bf16.mxu0 %v9272_v24  ;;  %1616 = vmatpush1.bf16.msra.mxu1 %v9385_v62  ;;  %v9334_v24 = vld [vmem:[#allocation6 + $0x1bc] ss:$36 sps:$4 sm:$0xff]   ;;  %v9479_v62 = vld [vmem:[#allocation6 + $0x64] ss:$36 sps:$4 sm:$0xff]  }
  0xa9   :  { %1493 = vmatpush1.bf16.msra.mxu0 %v9274_v25  ;;  %1634 = vmatmul.mubr.bf16.vlgmr.msra.gmra.mrb[0].mxu1 %v10835_v3  ;;  %v9332_v25 = vld [vmem:[#allocation6 + $0x1b8] ss:$36 sps:$4 sm:$0xff]  }
  0xaa   :  { %1494 = vmatprep.subr.bf16.mxu0 %v9275_v26  ;;  %1762 = vmatprep.mubr.bf16.mxu1 %v10828_v16  ;;  %v9337_v26 = vld [vmem:[#allocation6 + $0x204] ss:$36 sps:$4 sm:$0xff]  }
  0xad   :  { %1495 = vmatpush1.bf16.msra.mxu0 %v9277_v27  ;;  %v9335_v27 = vld [vmem:[#allocation6 + $0x200] ss:$36 sps:$4 sm:$0xff]  }
  0xae   :  { %1496 = vmatprep.subr.bf16.mxu0 %v9278_v28  ;;  %v9340_v28 = vld [vmem:[#allocation6 + $0x24c] ss:$36 sps:$4 sm:$0xff]  }
  0xb1   :  { %1497 = vmatpush1.bf16.msra.mxu0 %v9280_v29  ;;  %v9338_v29 = vld [vmem:[#allocation6 + $0x248] ss:$36 sps:$4 sm:$0xff]  }
  0xb2   :  { %1498 = vmatprep.subr.bf16.mxu0 %v9281_v32  ;;  %v9352_v32 = vld [vmem:[#allocation6 + $0x2dc] ss:$36 sps:$4 sm:$0xff]  }
  0xb5   :  { %1499 = vmatpush1.bf16.msra.mxu0 %v9283_v35  ;;  %v9356_v35 = vld [vmem:[#allocation6 + $0x320] ss:$36 sps:$4 sm:$0xff]  }
  0xb6   :  { %1500 = vmatprep.subr.bf16.mxu0 %v9284_v36  ;;  %v9364_v36 = vld [vmem:[#allocation6 + $0x36c] ss:$36 sps:$4 sm:$0xff]  }
  0xb9   :  { %1501 = vmatpush1.bf16.msra.mxu0 %v9286_v40  ;;  %v9376_v40 = vld [vmem:[#allocation6 + $0x3fc] ss:$36 sps:$4 sm:$0xff]  }
  0xba   :  { %1502 = vmatprep.subr.bf16.mxu0 %v9287_v41  ;;  %v9374_v41 = vld [vmem:[#allocation6 + $0x3f8] ss:$36 sps:$4 sm:$0xff]  }
  0xbd   :  { %1503 = vmatpush1.bf16.msra.mxu0 %v9289_v42  ;;  %v9382_v42 = vld [vmem:[#allocation6 + $0x444] ss:$36 sps:$4 sm:$0xff]  }
  0xbe   :  { %1515 = vmatprep.subr.bf16.mxu0 %v9292_v47  ;;  %v9389_v47 = vld [vmem:[#allocation6 + $0x58] ss:$36 sps:$4 sm:$0xff]  }
  0xc0   :  { %1505 = vmatmul.mubr.bf16.vlgmr.msra.gmra.mrb[0].mxu0 %v10831_v49 }
  0xc1   :  { %1516 = vmatpush1.bf16.msra.mxu0 %v9290_v51  ;;  %1547 = vmatprep.mubr.bf16.mxu0 %v10689_v0  ;;  %v9397_v51 = vld [vmem:[#allocation6 + $0xec] ss:$36 sps:$4 sm:$0xff]  }
  0xc2   :  { %1517 = vmatprep.subr.bf16.mxu0 %v9295_v52  ;;  %v9395_v52 = vld [vmem:[#allocation6 + $0xe8] ss:$36 sps:$4 sm:$0xff]  }
  0xc5   :  { %1518 = vmatpush1.bf16.msra.mxu0 %v9293_v55  ;;  %v9403_v55 = vld [vmem:[#allocation6 + $0x17c] ss:$36 sps:$4 sm:$0xff]  }
  0xc6   :  { %1519 = vmatprep.subr.bf16.mxu0 %v9298_v56  ;;  %v9401_v56 = vld [vmem:[#allocation6 + $0x178] ss:$36 sps:$4 sm:$0xff]  }
  0xc9   :  { %1520 = vmatpush1.bf16.msra.mxu0 %v9296_v59  ;;  %v9409_v59 = vld [vmem:[#allocation6 + $0x20c] ss:$36 sps:$4 sm:$0xff]  }
  0xca   :  { %1521 = vmatprep.subr.bf16.mxu0 %v9301_v60  ;;  %v9474_v60 = vld [vmem:[#allocation6 + $0x18] ss:$36 sps:$4 sm:$0xff]  }
  0xcd   :  { %1522 = vmatpush1.bf16.msra.mxu0 %v9299_v61  ;;  %v9476_v61 = vld [vmem:[#allocation6 + $0x1c] ss:$36 sps:$4 sm:$0xff]  }
  0xce   :  { %1523 = vmatprep.subr.bf16.mxu0 %v9304_v2  ;;  %1730 = vmatprep.subr.bf16.mxu1 %v9476_v61  ;;  %v9477_v2 = vld [vmem:[#allocation6 + $0x60] ss:$36 sps:$4 sm:$0xff]   ;;  %v9461_v61 = vld [vmem:[#allocation6 + $0x68] ss:$36 sps:$4 sm:$0xff]  }
  0xcf   :  { %1731 = vmatpush1.bf16.msra.mxu1 %v9474_v60  ;;  %v9512_v60 = vld [vmem:[#allocation6 + $0x37c] ss:$36 sps:$4 sm:$0xff]  }
  0xd0   :  { %1732 = vmatprep.subr.bf16.mxu1 %v9479_v62  ;;  %v9462_v62 = vld [vmem:[#allocation6 + $0x2f0] ss:$36 sps:$4 sm:$0xff]  }
  0xd1   :  { %1524 = vmatpush1.bf16.msra.mxu0 %v9302_v4  ;;  %v9410_v4 = vld [vmem:[#allocation6 + $0x250] ss:$36 sps:$4 sm:$0xff]  }
  0xd2   :  { %1525 = vmatprep.subr.bf16.mxu0 %v9307_v5  ;;  %v9482_v5 = vld [vmem:[#allocation6 + $0xac] ss:$36 sps:$4 sm:$0xff]  }
  0xd3   :  { %1733 = vmatpush1.bf16.msra.mxu1 %v9477_v2  ;;  %v9464_v2 = vld [vmem:[#allocation6 + $0x338] ss:$36 sps:$4 sm:$0xff]  }
  0xd4   :  { %1734 = vmatprep.subr.bf16.mxu1 %v9482_v5  ;;  %v9513_v5 = vld [vmem:[#allocation6 + $0x3c0] ss:$36 sps:$4 sm:$0xff]  }
  0xd5   :  { %1526 = vmatpush1.bf16.msra.mxu0 %v9305_v6  ;;  %v9415_v6 = vld [vmem:[#allocation6 + $0x29c] ss:$36 sps:$4 sm:$0xff]  }
  0xd6   :  { %1527 = vmatprep.subr.bf16.mxu0 %v9310_v7  ;;  %v9480_v7 = vld [vmem:[#allocation6 + $0xa8] ss:$36 sps:$4 sm:$0xff]  }
  0xd7   :  { %1735 = vmatpush1.bf16.msra.mxu1 %v9480_v7  ;;  %v9465_v7 = vld [vmem:[#allocation6 + $0xf8] ss:$36 sps:$4 sm:$0xff]  }
  0xd9   :  { %1528 = vmatpush1.bf16.msra.mxu0 %v9308_v8  ;;  %v9485_v8 = vld [vmem:[#allocation6 + $0xf4] ss:$36 sps:$4 sm:$0xff]  }
  0xda   :  { %1529 = vmatprep.subr.bf16.mxu0 %v9313_v9  ;;  %v9413_v9 = vld [vmem:[#allocation6 + $0x298] ss:$36 sps:$4 sm:$0xff]   ;;  %1736 = vmatprep.subr.bf16.mxu1 %v9485_v8  ;;  %v9466_v8 = vld [vmem:[#allocation6 + $0x380] ss:$36 sps:$4 sm:$0xff]  }
  0xdd   :  { %1530 = vmatpush1.bf16.msra.mxu0 %v9311_v10  ;;  %v9418_v10 = vld [vmem:[#allocation6 + $0x2e4] ss:$36 sps:$4 sm:$0xff]  }
  0xde   :  { %1558 = vmatprep.subr.bf16.mxu0 %v9316_v11  ;;  %v9483_v11 = vld [vmem:[#allocation6 + $0xf0] ss:$36 sps:$4 sm:$0xff]  }
  0xdf   :  { %1737 = vmatpush1.bf16.msra.mxu1 %v9483_v11  ;;  %v9468_v11 = vld [vmem:[#allocation6 + $0x3c8] ss:$36 sps:$4 sm:$0xff]  }
  0xe0   :  { %1548 = vmatmul.mubr.bf16.vlgmr.msra.gmra.mrb[0].mxu0 %v10835_v3 }
  0xe1   :  { %1559 = vmatpush1.bf16.msra.mxu0 %v9314_v12  ;;  %1590 = vmatprep.mubr.bf16.mxu0 %v10828_v16  ;;  %v9488_v12 = vld [vmem:[#allocation6 + $0x13c] ss:$36 sps:$4 sm:$0xff]  }
  0xe2   :  { %1560 = vmatprep.subr.bf16.mxu0 %v9319_v13  ;;  %v9416_v13 = vld [vmem:[#allocation6 + $0x2e0] ss:$36 sps:$4 sm:$0xff]   ;;  %1738 = vmatprep.subr.bf16.mxu1 %v9488_v12  ;;  %v9519_v12 = vld [vmem:[#allocation6 + $0x450] ss:$36 sps:$4 sm:$0xff]  }
  0xe5   :  { %1561 = vmatpush1.bf16.msra.mxu0 %v9317_v14  ;;  %v9421_v14 = vld [vmem:[#allocation6 + $0x32c] ss:$36 sps:$4 sm:$0xff]  }
  0xe6   :  { %1562 = vmatprep.subr.bf16.mxu0 %v9322_v15  ;;  %v9486_v15 = vld [vmem:[#allocation6 + $0x138] ss:$36 sps:$4 sm:$0xff]  }
  0xe7   :  { %1739 = vmatpush1.bf16.msra.mxu1 %v9486_v15  ;;  %v9470_v15 = vld [vmem:[#allocation6 + $0x410] ss:$36 sps:$4 sm:$0xff]  }
  0xe9   :  { %1563 = vmatpush1.bf16.msra.mxu0 %v9320_v17  ;;  %v9491_v17 = vld [vmem:[#allocation6 + $0x184] ss:$36 sps:$4 sm:$0xff]  }
  0xea   :  { %1564 = vmatprep.subr.bf16.mxu0 %v9325_v18  ;;  %v9419_v18 = vld [vmem:[#allocation6 + $0x328] ss:$36 sps:$4 sm:$0xff]   ;;  %1740 = vmatprep.subr.bf16.mxu1 %v9491_v17  ;;  %v9522_v17 = vld [vmem:[#allocation6 + $0x498] ss:$36 sps:$4 sm:$0xff]  }
  0xed   :  { %1565 = vmatpush1.bf16.msra.mxu0 %v9323_v19  ;;  %v9424_v19 = vld [vmem:[#allocation6 + $0x374] ss:$36 sps:$4 sm:$0xff]  }
  0xee   :  { %1566 = vmatprep.subr.bf16.mxu0 %v9328_v20  ;;  %v9489_v20 = vld [vmem:[#allocation6 + $0x180] ss:$36 sps:$4 sm:$0xff]  }
  0xef   :  { %1741 = vmatpush1.bf16.msra.mxu1 %v9489_v20  ;;  %v9472_v20 = vld [vmem:[#allocation6 + $0x458] ss:$36 sps:$4 sm:$0xff]  }
  0xf1   :  { %1567 = vmatpush1.bf16.msra.mxu0 %v9326_v21  ;;  %v9494_v21 = vld [vmem:[#allocation6 + $0x1cc] ss:$36 sps:$4 sm:$0xff]  }
  0xf2   :  { %1568 = vmatprep.subr.bf16.mxu0 %v9331_v22  ;;  %v9422_v22 = vld [vmem:[#allocation6 + $0x370] ss:$36 sps:$4 sm:$0xff]   ;;  %1742 = vmatprep.subr.bf16.mxu1 %v9494_v21  ;;  %v9525_v21 = vld [vmem:[#allocation6 + $0x4e0] ss:$36 sps:$4 sm:$0xff]  }
  0xf5   :  { %1569 = vmatpush1.bf16.msra.mxu0 %v9329_v23  ;;  %v9427_v23 = vld [vmem:[#allocation6 + $0x3bc] ss:$36 sps:$4 sm:$0xff]  }
  0xf6   :  { %1570 = vmatprep.subr.bf16.mxu0 %v9334_v24  ;;  %v9492_v24 = vld [vmem:[#allocation6 + $0x1c8] ss:$36 sps:$4 sm:$0xff]  }
  0xf7   :  { %1743 = vmatpush1.bf16.msra.mxu1 %v9492_v24  ;;  %v9528_v24 = vld [vmem:[#allocation6 + $0x528] ss:$36 sps:$4 sm:$0xff]  }
  0xf9   :  { %1571 = vmatpush1.bf16.msra.mxu0 %v9332_v25  ;;  %v9497_v25 = vld [vmem:[#allocation6 + $0x214] ss:$36 sps:$4 sm:$0xff]  }
  0xfa   :  { %1572 = vmatprep.subr.bf16.mxu0 %v9337_v26  ;;  %v9425_v26 = vld [vmem:[#allocation6 + $0x3b8] ss:$36 sps:$4 sm:$0xff]   ;;  %1744 = vmatprep.subr.bf16.mxu1 %v9497_v25 }
  0xfb   :  { %v9533_v25 = vld [vmem:[#allocation6 + $0x574] ss:$36 sps:$4 sm:$0xff]  }
  0xfd   :  { %1573 = vmatpush1.bf16.msra.mxu0 %v9335_v27  ;;  %v9430_v27 = vld [vmem:[#allocation6 + $0x404] ss:$36 sps:$4 sm:$0xff]  }
  0xfe   :  { %1574 = vmatprep.subr.bf16.mxu0 %v9340_v28  ;;  %v9495_v28 = vld [vmem:[#allocation6 + $0x210] ss:$36 sps:$4 sm:$0xff]  }
  0xff   :  { %1745 = vmatpush1.bf16.msra.mxu1 %v9495_v28 }
 0x101   :  { %1575 = vmatpush1.bf16.msra.mxu0 %v9338_v29  ;;  %v9428_v29 = vld [vmem:[#allocation6 + $0x400] ss:$36 sps:$4 sm:$0xff]  }
 0x102   :  { %1576 = vmatprep.subr.bf16.mxu0 %v9346_v30  ;;  %v9433_v30 = vld [vmem:[#allocation6 + $0x44c] ss:$36 sps:$4 sm:$0xff]  }
 0x105   :  { %1577 = vmatpush1.bf16.msra.mxu0 %v9344_v31  ;;  %v9431_v31 = vld [vmem:[#allocation6 + $0x448] ss:$36 sps:$4 sm:$0xff]  }
 0x106   :  { %1578 = vmatprep.subr.bf16.mxu0 %v9352_v32  ;;  %v9436_v32 = vld [vmem:[#allocation6 + $0x494] ss:$36 sps:$4 sm:$0xff]  }
 0x109   :  { %1579 = vmatpush1.bf16.msra.mxu0 %v9350_v33  ;;  %v9434_v33 = vld [vmem:[#allocation6 + $0x490] ss:$36 sps:$4 sm:$0xff]  }
 0x10a   :  { %1580 = vmatprep.subr.bf16.mxu0 %v9358_v34  ;;  %v9439_v34 = vld [vmem:[#allocation6 + $0x4dc] ss:$36 sps:$4 sm:$0xff]  }
 0x10d   :  { %1581 = vmatpush1.bf16.msra.mxu0 %v9356_v35  ;;  %v9437_v35 = vld [vmem:[#allocation6 + $0x4d8] ss:$36 sps:$4 sm:$0xff]  }
 0x10e   :  { %1582 = vmatprep.subr.bf16.mxu0 %v9364_v36  ;;  %v9442_v36 = vld [vmem:[#allocation6 + $0x524] ss:$36 sps:$4 sm:$0xff]  }
 0x111   :  { %1583 = vmatpush1.bf16.msra.mxu0 %v9362_v37  ;;  %v9440_v37 = vld [vmem:[#allocation6 + $0x520] ss:$36 sps:$4 sm:$0xff]  }
 0x112   :  { %1584 = vmatprep.subr.bf16.mxu0 %v9370_v38  ;;  %v9445_v38 = vld [vmem:[#allocation6 + $0x56c] ss:$36 sps:$4 sm:$0xff]  }
 0x115   :  { %1585 = vmatpush1.bf16.msra.mxu0 %v9368_v39  ;;  %v9443_v39 = vld [vmem:[#allocation6 + $0x568] ss:$36 sps:$4 sm:$0xff]  }
 0x116   :  { %1586 = vmatprep.subr.bf16.mxu0 %v9376_v40  ;;  %v9448_v40 = vld [vmem:[#allocation6 + $0x5b4] ss:$36 sps:$4 sm:$0xff]  }
 0x119   :  { %1587 = vmatpush1.bf16.msra.mxu0 %v9374_v41  ;;  %v9446_v41 = vld [vmem:[#allocation6 + $0x5b0] ss:$36 sps:$4 sm:$0xff]  }
 0x11a   :  { %1588 = vmatprep.subr.bf16.mxu0 %v9382_v42  ;;  %v9451_v42 = vld [vmem:[#allocation6 + $0x5fc] ss:$36 sps:$4 sm:$0xff]  }
 0x11d   :  { %1589 = vmatpush1.bf16.msra.mxu0 %v9380_v43  ;;  %v9449_v43 = vld [vmem:[#allocation6 + $0x5f8] ss:$36 sps:$4 sm:$0xff]  }
 0x11e   :  { %1644 = vmatprep.subr.bf16.mxu0 %v9388_v44  ;;  %v9454_v44 = vld [vmem:[#allocation6 + $0x644] ss:$36 sps:$4 sm:$0xff]  }
 0x120   :  { %1591 = vmatmul.mubr.bf16.vlgmr.msra.gmra.mrb[4].mxu0 %v10831_v49 }
 0x121   :  { %1645 = vmatpush1.bf16.msra.mxu0 %v9386_v45  ;;  %1676 = vmatprep.mubr.bf16.mxu0 %v10828_v16  ;;  %v9452_v45 = vld [vmem:[#allocation6 + $0x640] ss:$36 sps:$4 sm:$0xff]  }
 0x122   :  { %1646 = vmatprep.subr.bf16.mxu0 %v9391_v46  ;;  %v9457_v46 = vld [vmem:[#allocation6 + $0x68c] ss:$36 sps:$4 sm:$0xff]  }
 0x125   :  { %1647 = vmatpush1.bf16.msra.mxu0 %v9389_v47  ;;  %v9500_v47 = vld [vmem:[#allocation6 + $0x25c] ss:$36 sps:$4 sm:$0xff]  }
 0x126   :  { %1648 = vmatprep.subr.bf16.mxu0 %v9394_v48  ;;  %v9498_v48 = vld [vmem:[#allocation6 + $0x258] ss:$36 sps:$4 sm:$0xff]   ;;  %1746 = vmatprep.subr.bf16.mxu1 %v9500_v47 }
 0x127   :  { %1747 = vmatpush1.bf16.msra.mxu1 %v9498_v48  ;;  %v9549_v47 = vld [vmem:[#allocation6 + $0x578] ss:$36 sps:$4 sm:$0xff]   ;;  %v9550_v48 = vld [vmem:[#allocation6 + $0x5c0] ss:$36 sps:$4 sm:$0xff]  }
 0x129   :  { %1649 = vmatpush1.bf16.msra.mxu0 %v9392_v50  ;;  %v9503_v50 = vld [vmem:[#allocation6 + $0x2a4] ss:$36 sps:$4 sm:$0xff]  }
 0x12a   :  { %1650 = vmatprep.subr.bf16.mxu0 %v9397_v51  ;;  %v9455_v51 = vld [vmem:[#allocation6 + $0x688] ss:$36 sps:$4 sm:$0xff]   ;;  %1748 = vmatprep.subr.bf16.mxu1 %v9503_v50 }
 0x12b   :  { %v9551_v50 = vld [vmem:[#allocation6 + $0x608] ss:$36 sps:$4 sm:$0xff]  }
 0x12d   :  { %1651 = vmatpush1.bf16.msra.mxu0 %v9395_v52  ;;  %v9501_v52 = vld [vmem:[#allocation6 + $0x2a0] ss:$36 sps:$4 sm:$0xff]  }
 0x12e   :  { %1652 = vmatprep.subr.bf16.mxu0 %v9400_v53  ;;  %v9506_v53 = vld [vmem:[#allocation6 + $0x2ec] ss:$36 sps:$4 sm:$0xff]   ;;  %1749 = vmatpush1.bf16.msra.mxu1 %v9501_v52  ;;  %v9553_v52 = vld [vmem:[#allocation6 + $0x698] ss:$36 sps:$4 sm:$0xff]  }
 0x12f   :  { %1750 = vmatprep.subr.bf16.mxu1 %v9506_v53 }
 0x131   :  { %1653 = vmatpush1.bf16.msra.mxu0 %v9398_v54  ;;  %v9458_v54 = vld [vmem:[#allocation6 + $0x260] ss:$36 sps:$4 sm:$0xff]  }
 0x132   :  { %1654 = vmatprep.subr.bf16.mxu0 %v9403_v55  ;;  %v9504_v55 = vld [vmem:[#allocation6 + $0x2e8] ss:$36 sps:$4 sm:$0xff]  }
 0x133   :  { %1751 = vmatpush1.bf16.msra.mxu1 %v9504_v55 }
 0x135   :  { %1655 = vmatpush1.bf16.msra.mxu0 %v9401_v56  ;;  %v9509_v56 = vld [vmem:[#allocation6 + $0x334] ss:$36 sps:$4 sm:$0xff]  }
 0x136   :  { %1656 = vmatprep.subr.bf16.mxu0 %v9406_v57  ;;  %v9459_v57 = vld [vmem:[#allocation6 + $0x20] ss:$36 sps:$4 sm:$0xff]   ;;  %1752 = vmatprep.subr.bf16.mxu1 %v9509_v56 }
 0x139   :  { %1657 = vmatpush1.bf16.msra.mxu0 %v9404_v58  ;;  %v9460_v58 = vld [vmem:[#allocation6 + $0x2a8] ss:$36 sps:$4 sm:$0xff]  }
 0x13a   :  { %1658 = vmatprep.subr.bf16.mxu0 %v9409_v59  ;;  %v9507_v59 = vld [vmem:[#allocation6 + $0x330] ss:$36 sps:$4 sm:$0xff]  }
 0x13b   :  { %1753 = vmatpush1.bf16.msra.mxu1 %v9507_v59 }
 0x13c   :  { %1754 = vmatprep.subr.bf16.mxu1 %v9512_v60 }
 0x13d   :  { %1659 = vmatpush1.bf16.msra.mxu0 %v9407_v63  ;;  %v9510_v63 = vld [vmem:[#allocation6 + $0x378] ss:$36 sps:$4 sm:$0xff]  }
 0x13e   :  { %1660 = vmatprep.subr.bf16.mxu0 %v9412_v1  ;;  %v9463_v1 = vld [vmem:[#allocation6 + $0xb0] ss:$36 sps:$4 sm:$0xff]  }
 0x13f   :  { %1755 = vmatpush1.bf16.msra.mxu1 %v9510_v63 }
 0x141   :  { %1661 = vmatpush1.bf16.msra.mxu0 %v9410_v4  ;;  %v9515_v4 = vld [vmem:[#allocation6 + $0x3c4] ss:$36 sps:$4 sm:$0xff]  }
 0x142   :  { %1662 = vmatprep.subr.bf16.mxu0 %v9415_v6  ;;  %v9518_v6 = vld [vmem:[#allocation6 + $0x40c] ss:$36 sps:$4 sm:$0xff]   ;;  %1756 = vmatprep.subr.bf16.mxu1 %v9515_v4 }
 0x143   :  { %1757 = vmatpush1.bf16.msra.mxu1 %v9513_v5 }
 0x144   :  { %1758 = vmatprep.subr.bf16.mxu1 %v9518_v6 }
 0x145   :  { %1663 = vmatpush1.bf16.msra.mxu0 %v9413_v9  ;;  %v9516_v9 = vld [vmem:[#allocation6 + $0x408] ss:$36 sps:$4 sm:$0xff]  }
 0x146   :  { %1664 = vmatprep.subr.bf16.mxu0 %v9418_v10  ;;  %v9467_v10 = vld [vmem:[#allocation6 + $0x140] ss:$36 sps:$4 sm:$0xff]  }
 0x147   :  { %1759 = vmatpush1.bf16.msra.mxu1 %v9516_v9 }
 0x149   :  { %1665 = vmatpush1.bf16.msra.mxu0 %v9416_v13  ;;  %v9524_v13 = vld [vmem:[#allocation6 + $0x49c] ss:$36 sps:$4 sm:$0xff]  }
 0x14a   :  { %1666 = vmatprep.subr.bf16.mxu0 %v9421_v14  ;;  %v9469_v14 = vld [vmem:[#allocation6 + $0x188] ss:$36 sps:$4 sm:$0xff]  }
 0x14d   :  { %1667 = vmatpush1.bf16.msra.mxu0 %v9419_v18  ;;  %v9527_v18 = vld [vmem:[#allocation6 + $0x4e4] ss:$36 sps:$4 sm:$0xff]  }
 0x14e   :  { %1668 = vmatprep.subr.bf16.mxu0 %v9424_v19  ;;  %v9471_v19 = vld [vmem:[#allocation6 + $0x1d0] ss:$36 sps:$4 sm:$0xff]  }
 0x151   :  { %1669 = vmatpush1.bf16.msra.mxu0 %v9422_v22  ;;  %v9530_v22 = vld [vmem:[#allocation6 + $0x52c] ss:$36 sps:$4 sm:$0xff]  }
 0x152   :  { %1670 = vmatprep.subr.bf16.mxu0 %v9427_v23  ;;  %v9473_v23 = vld [vmem:[#allocation6 + $0x218] ss:$36 sps:$4 sm:$0xff]  }
 0x155   :  { %1671 = vmatpush1.bf16.msra.mxu0 %v9425_v26  ;;  %v9531_v26 = vld [vmem:[#allocation6 + $0x570] ss:$36 sps:$4 sm:$0xff]  }
 0x156   :  { %1672 = vmatprep.subr.bf16.mxu0 %v9430_v27  ;;  %v9536_v27 = vld [vmem:[#allocation6 + $0x5bc] ss:$36 sps:$4 sm:$0xff]  }
 0x159   :  { %1673 = vmatpush1.bf16.msra.mxu0 %v9428_v29  ;;  %v9534_v29 = vld [vmem:[#allocation6 + $0x5b8] ss:$36 sps:$4 sm:$0xff]  }
 0x15a   :  { %1674 = vmatprep.subr.bf16.mxu0 %v9433_v30 }
 0x15d   :  { %1675 = vmatpush1.bf16.msra.mxu0 %v9431_v31  ;;  %v9539_v31 = vld [vmem:[#allocation6 + $0x604] ss:$36 sps:$4 sm:$0xff]  }
 0x15e   :  { %1687 = vmatprep.subr.bf16.mxu0 %v9436_v32 }
 0x160   :  { %1677 = vmatmul.mubr.bf16.vlgmr.msra.gmra.mrb[8].mxu0 %v10831_v49 }
 0x161   :  { %1688 = vmatpush1.bf16.msra.mxu0 %v9434_v33  ;;  %1719 = vmatprep.mubr.bf16.mxu0 %v10689_v0 }
 0x162   :  { %1689 = vmatprep.subr.bf16.mxu0 %v9439_v34  ;;  %v9537_v34 = vld [vmem:[#allocation6 + $0x600] ss:$36 sps:$4 sm:$0xff]  }
 0x165   :  { %1690 = vmatpush1.bf16.msra.mxu0 %v9437_v35  ;;  %v9542_v35 = vld [vmem:[#allocation6 + $0x64c] ss:$36 sps:$4 sm:$0xff]  }
 0x166   :  { %1691 = vmatprep.subr.bf16.mxu0 %v9442_v36  ;;  %v9540_v36 = vld [vmem:[#allocation6 + $0x648] ss:$36 sps:$4 sm:$0xff]  }
 0x169   :  { %1692 = vmatpush1.bf16.msra.mxu0 %v9440_v37  ;;  %v9545_v37 = vld [vmem:[#allocation6 + $0x694] ss:$36 sps:$4 sm:$0xff]  }
 0x16a   :  { %1693 = vmatprep.subr.bf16.mxu0 %v9445_v38  ;;  %v9543_v38 = vld [vmem:[#allocation6 + $0x690] ss:$36 sps:$4 sm:$0xff]  }
 0x16d   :  { %1694 = vmatpush1.bf16.msra.mxu0 %v9443_v39 }
 0x16e   :  { %1695 = vmatprep.subr.bf16.mxu0 %v9448_v40 }
 0x171   :  { %1696 = vmatpush1.bf16.msra.mxu0 %v9446_v41  ;;  %v10690_v41 = vmov 0.0  }
 0x172   :  { %1697 = vmatprep.subr.bf16.mxu0 %v9451_v42 }
 0x175   :  { %1698 = vmatpush1.bf16.msra.mxu0 %v9449_v43 }
 0x176   :  { %1699 = vmatprep.subr.bf16.mxu0 %v9454_v44  ;;  %v9547_v44 = vld [vmem:[#allocation6 + $0x4e8] ss:$36 sps:$4 sm:$0xff]  }
 0x179   :  { %1700 = vmatpush1.bf16.msra.mxu0 %v9452_v45 }
 0x17a   :  { %1701 = vmatprep.subr.bf16.mxu0 %v9457_v46  ;;  %v9548_v46 = vld [vmem:[#allocation6 + $0x530] ss:$36 sps:$4 sm:$0xff]  }
 0x17c   :  { %v1635_v28 = vpop.f32.mrb[0].mxu1 }
 0x17d   :  { %1702 = vmatpush1.bf16.msra.mxu0 %v9455_v51  ;;  %v1637_v30 = vpop.f32.mrb[1].mxu1  ;;  %v9552_v51 = vld [vmem:[#allocation6 + $0x650] ss:$36 sps:$4 sm:$0xff]  }
 0x17e   :  { %8853 = vmatprep.subr.bf16.mxu0 %v9458_v54  ;;  %v1639_v32 = vpop.f32.mrb[2].mxu1 }
 0x17f   :  { %v1641_v33 = vpop.f32.mrb[3].mxu1 }
 0x180   :  { %1720 = vmatmul.mubr.bf16.vlgmr.msra.gmra.mrb[8].mxu0 %v10835_v3 }
 0x181   :  { %8854 = vmatpush3.bf16.msra.mxu0 %v9459_v57  ;;  %1848 = vmatprep.mubr.bf16.mxu0 %v10828_v16  ;;  %v9521_v16 = vld [vmem:[#allocation6 + $0x454] ss:$36 sps:$4 sm:$0xff]  }
 0x182   :  { %8855 = vmatprep.subr.bf16.mxu0 %v9460_v58  ;;  %1760 = vmatprep.subr.bf16.mxu1 %v9521_v16 }
 0x183   :  { %1761 = vmatpush1.bf16.msra.mxu1 %v9519_v12 }
 0x184   :  { %1773 = vmatprep.subr.bf16.mxu1 %v9524_v13 }
 0x185   :  { %8856 = vmatpush3.bf16.msra.mxu0 %v9461_v61 }
 0x186   :  { %8857 = vmatprep.subr.bf16.mxu0 %v9462_v62  ;;  %1763 = vmatmul.mubr.bf16.vlgmr.msra.gmra.mrb[4].mxu1 %v10831_v49 }
 0x187   :  { %1774 = vmatpush1.bf16.msra.mxu1 %v9522_v17  ;;  %1805 = vmatprep.mubr.bf16.mxu1 %v10689_v0 }
 0x188   :  { %1775 = vmatprep.subr.bf16.mxu1 %v9527_v18 }
 0x189   :  { %8858 = vmatpush3.bf16.msra.mxu0 %v9463_v1 }
 0x18a   :  { %8859 = vmatprep.subr.bf16.mxu0 %v9464_v2 }
 0x18b   :  { %1776 = vmatpush1.bf16.msra.mxu1 %v9525_v21 }
 0x18c   :  { %1777 = vmatprep.subr.bf16.mxu1 %v9530_v22 }
 0x18d   :  { %8860 = vmatpush3.bf16.msra.mxu0 %v9465_v7 }
 0x18e   :  { %8861 = vmatprep.subr.bf16.mxu0 %v9466_v8 }
 0x18f   :  { %1778 = vmatpush1.bf16.msra.mxu1 %v9528_v24 }
 0x190   :  { %1779 = vmatprep.subr.bf16.mxu1 %v9533_v25 }
 0x191   :  { %8862 = vmatpush3.bf16.msra.mxu0 %v9467_v10 }
 0x192   :  { %8863 = vmatprep.subr.bf16.mxu0 %v9468_v11 }
 0x193   :  { %1780 = vmatpush1.bf16.msra.mxu1 %v9531_v26 }
 0x194   :  { %1781 = vmatprep.subr.bf16.mxu1 %v9536_v27 }
 0x195   :  { %8864 = vmatpush3.bf16.msra.mxu0 %v9469_v14 }
 0x196   :  { %8865 = vmatprep.subr.bf16.mxu0 %v9470_v15 }
 0x197   :  { %1782 = vmatpush1.bf16.msra.mxu1 %v9534_v29 }
 0x198   :  { %1783 = vmatprep.subr.bf16.mxu1 %v9539_v31 }
 0x199   :  { %8866 = vmatpush3.bf16.msra.mxu0 %v9471_v19 }
 0x19a   :  { %8867 = vmatprep.subr.bf16.mxu0 %v9472_v20 }
 0x19b   :  { %1784 = vmatpush1.bf16.msra.mxu1 %v9537_v34 }
 0x19c   :  { %1785 = vmatprep.subr.bf16.mxu1 %v9542_v35 }
 0x19d   :  { %8868 = vmatpush3.bf16.msra.mxu0 %v9473_v23 }
 0x19f   :  { %1786 = vmatpush1.bf16.msra.mxu1 %v9540_v36 }
 0x1a0   :  { %1849 = vmatmul.mubr.bf16.vlgmr.msra.gmra.mrb[12].mxu0 %v10831_v49  ;;  %1787 = vmatprep.subr.bf16.mxu1 %v9545_v37  ;;  %v9546_v49 = vld [vmem:[#allocation6 + $0x4a0] ss:$36 sps:$4 sm:$0xff]  }
 0x1a3   :  { %1788 = vmatpush1.bf16.msra.mxu1 %v9543_v38 }
 0x1a4   :  { %9055 = vmatprep.subr.bf16.mxu1 %v10690_v41 }
 0x1a6   :  { %1806 = vmatmul.mubr.bf16.vlgmr.msra.gmra.mrb[4].mxu1 %v10835_v3 }
 0x1a7   :  { %9056 = vmatpush3.bf16.msra.mxu1 %v9546_v49  ;;  %9071 = vmatprep.mubr.msk.bf16.mxu1 %vm10691_vm0, %v10690_v41 }
 0x1a8   :  { %9057 = vmatprep.subr.bf16.mxu1 %v10690_v41 }
 0x1ab   :  { %9058 = vmatpush3.bf16.msra.mxu1 %v9547_v44 }
 0x1ac   :  { %9059 = vmatprep.subr.bf16.mxu1 %v10690_v41 }
 0x1af   :  { %9060 = vmatpush3.bf16.msra.mxu1 %v9548_v46 }
 0x1b0   :  { %9061 = vmatprep.subr.bf16.mxu1 %v10690_v41 }
 0x1b3   :  { %v1549_v39 = vpop.f32.mrb[0].mxu0  ;;  %9062 = vmatpush3.bf16.msra.mxu1 %v9549_v47 }
 0x1b4   :  { %v1551_v40 = vpop.f32.mrb[1].mxu0  ;;  %9063 = vmatprep.subr.bf16.mxu1 %v10690_v41 }
 0x1b5   :  { %v1899_v42 = vpack.c.bf16 %v1551_v40, %v1551_v40  ;;  %v10851_v43 = vpop.f32.mrb[2].mxu0 }
 0x1b6   :  { %v10853_v45 = vpop.f32.mrb[3].mxu0 }
 0x1b7   :  { %1939 = vmatprep.mubr.bf16.mxu0 %v1899_v42  ;;  %9064 = vmatpush3.bf16.msra.mxu1 %v9550_v48 }
 0x1b8   :  { %9065 = vmatprep.subr.bf16.mxu1 %v10690_v41 }
 0x1bb   :  { %9066 = vmatpush3.bf16.msra.mxu1 %v9551_v50 }
 0x1bc   :  { %9067 = vmatprep.subr.bf16.mxu1 %v10690_v41 }
 0x1bf   :  { %9068 = vmatpush3.bf16.msra.mxu1 %v9552_v51 }
 0x1c0   :  { %9069 = vmatprep.subr.bf16.mxu1 %v10690_v41 }
 0x1c3   :  { %9070 = vmatpush3.bf16.msra.mxu1 %v9553_v52 }
 0x1c6   :  { %9072 = vmatmul.mubr.bf16.vlgmr.msra.gmra.mrb[8].mxu1 %v10835_v3  ;;  %v1898_v3 = vpack.c.bf16 %v1549_v39, %v1549_v39 }
 0x1c7   :  { %2249 = vmatprep.mubr.bf16.mxu1 %v10689_v0 }
 0x1f3   :  { %v1592_v53 = vpop.f32.mrb[4].mxu0 }
 0x1f4   :  { %v1636_v54 = vadd.f32 %v1635_v28, %v1592_v53  ;;  %v1594_v55 = vpop.f32.mrb[5].mxu0 }
 0x1f5   :  { %v1638_v56 = vadd.f32 %v1637_v30, %v1594_v55  ;;  %v1596_v57 = vpop.f32.mrb[6].mxu0  ;;  %v2104_v55 = vpack.c.bf16 %v10853_v45, %v10853_v45 }
 0x1f6   :  { %v10867_v58 = vadd.f32 %v1639_v32, %v1596_v57  ;;  %v1598_v59 = vpop.f32.mrb[7].mxu0  ;;  %v1900_v6 = vpack.c.bf16 %v1636_v54, %v1636_v54  ;;  %v2103_v57 = vpack.c.bf16 %v10851_v43, %v10851_v43 }
 0x1f7   :  { %v10869_v60 = vadd.f32 %v1641_v33, %v1598_v59  ;;  %v1901_v1 = vpack.c.bf16 %v1638_v56, %v1638_v56  ;;  %v1987_v33 = vlaneseq }
 0x1f8   :  { %v2105_v45 = vpack.c.bf16 %v10867_v58, %v10867_v58 }
 0x1f9   :  { %v10889_v34 = vshrl.u32 %v1987_v33, 7  ;;  %v1990_v35 = vand.u32 127, %v1987_v33  ;;  %v2106_v56 = vpack.c.bf16 %v10869_v60, %v10869_v60  ;;  %v9585_v33 = vld [vmem:[#allocation8 + $0xdc] ss:$12 sps:$4 sm:$0xff]  }
 0x1fb   :  { %vm1991_vm2 = vcmp.le.s32.totalorder %v1990_v35, %v10889_v34  ;;  %v9583_v35 = vld [vmem:[#allocation8 + $0xd8] ss:$12 sps:$4 sm:$0xff]  }
 0x253   :  { %v1721_v61 = vpop.f32.mrb[8].mxu0 }
 0x254   :  { %v1902_v62 = vpack.c.bf16 %v1721_v61, %v1721_v61  ;;  %v1723_v63 = vpop.f32.mrb[9].mxu0 }
 0x255   :  { %v10871_v2 = vpop.f32.mrb[10].mxu0  ;;  %v1903_v5 = vpack.c.bf16 %v1723_v63, %v1723_v63 }
 0x256   :  { %v10873_v4 = vpop.f32.mrb[11].mxu0  ;;  %1907 = vmatprep.subr.bf16.mxu0 %v1902_v62  ;;  %v2107_v54 = vpack.c.bf16 %v10871_v2, %v10871_v2 }
 0x257   :  { %1908 = vmatpush1.bf16.xpose.msra.mxu0 %v1901_v1  ;;  %v2108_v59 = vpack.c.bf16 %v10873_v4, %v10873_v4 }
 0x258   :  { %9075 = vmatprep.subr.bf16.mxu0 %v10690_v41 }
 0x25e   :  { %1940 = vmatmul.mubr.bf16.vlgmr.msra.gmra.mrb[16].mxu0 %v1898_v3 }
 0x25f   :  { %9076 = vmatpush3.bf16.xpose.msra.mxu0 %v1903_v5  ;;  %9077 = vmatprep.mubr.msk.bf16.mxu0 %vm10691_vm0, %v10690_v41 }
 0x26a   :  { %9078 = vmatmul.mubr.bf16.vlgmr.msra.gmra.mrb[16].mxu0 %v1900_v6 }
 0x26b   :  { %2051 = vmatprep.mubr.bf16.mxu0 %v10689_v0 }
 0x273   :  { %v8869_v7 = vpop.f32.mrb[12].mxu0 }
 0x274   :  { %v8870_v8 = vpop.f32.mrb[13].mxu0 }
 0x275   :  { %v8871_v9 = vadd.f32 %v8870_v8, %v8869_v7  ;;  %v8872_v16 = vpop.f32.mrb[14].mxu0 }
 0x276   :  { %v8873_v10 = vpop.f32.mrb[15].mxu0 }
 0x277   :  { %v8874_v11 = vadd.f32 %v8873_v10, %v8872_v16 }
 0x279   :  { %v1807_v12 = vpop.f32.mrb[4].mxu1 }
 0x27a   :  { %v1904_v13 = vpack.c.bf16 %v1807_v12, %v1807_v12  ;;  %v1809_v14 = vpop.f32.mrb[5].mxu1 }
 0x27b   :  { %v1905_v15 = vpack.c.bf16 %v1809_v14, %v1809_v14  ;;  %v1811_v17 = vpop.f32.mrb[6].mxu1  ;;  %v9556_v14 = vld [vmem:[#allocation8 + $0x4] ss:$12 sps:$4 sm:$0xff]  }
 0x27c   :  { %v2011_v18 = vsel %vm2009_vm1, %v1904_v13, 0  ;;  %v2109_v19 = vpack.c.bf16 %v1811_v17, %v1811_v17  ;;  %v1813_v20 = vpop.f32.mrb[7].mxu1  ;;  %v9554_v13 = vld [vmem:[#allocation8] ss:$12 sps:$4 sm:$0xff]   ;;  %v9557_v17 = vld [vmem:[#allocation8 + $0x18] ss:$12 sps:$4 sm:$0xff]  }
 0x27d   :  { %v2110_v21 = vpack.c.bf16 %v1813_v20, %v1813_v20  ;;  %8199 = vmatprep.subr.msk.bf16.mxu0 %vm2009_vm1, %v1905_v15  ;;  %v9559_v15 = vld [vmem:[#allocation8 + $0x1c] ss:$12 sps:$4 sm:$0xff]   ;;  %v9565_v20 = vld [vmem:[#allocation8 + $0x4c] ss:$12 sps:$4 sm:$0xff]  }
 0x27e   :  { %v2209_v22 = vsel %vm2009_vm1, %v2109_v19, 0  ;;  %2020 = vmatpush1.bf16.msra.mxu0 %v2011_v18  ;;  %v9562_v18 = vld [vmem:[#allocation8 + $0x34] ss:$12 sps:$4 sm:$0xff]   ;;  %v9560_v19 = vld [vmem:[#allocation8 + $0x30] ss:$12 sps:$4 sm:$0xff]  }
 0x27f   :  { %8202 = vmatprep.subr.msk.bf16.mxu1 %vm2009_vm1, %v2110_v21  ;;  %9081 = vmatprep.subr.bf16.mxu0 %v10690_v41  ;;  %v9563_v21 = vld [vmem:[#allocation8 + $0x48] ss:$12 sps:$4 sm:$0xff]  }
 0x280   :  { %2218 = vmatpush1.bf16.msra.mxu1 %v2209_v22  ;;  %v9568_v22 = vld [vmem:[#allocation8 + $0x64] ss:$12 sps:$4 sm:$0xff]  }
 0x281   :  { %9093 = vmatprep.subr.bf16.mxu1 %v10690_v41 }
 0x299   :  { %v1891_v23 = vpop.f32.mrb[8].mxu1 }
 0x29a   :  { %v1892_v24 = vadd.f32 %v8871_v9, %v1891_v23  ;;  %v9073_v25 = vpop.f32.mrb[9].mxu1  ;;  %v9566_v23 = vld [vmem:[#allocation8 + $0x60] ss:$12 sps:$4 sm:$0xff]  }
 0x29b   :  { %v1894_v26 = vpop.f32.mrb[10].mxu1  ;;  %v9569_v25 = vld [vmem:[#allocation8 + $0x78] ss:$12 sps:$4 sm:$0xff]  }
 0x29c   :  { %v1906_v27 = vpack.c.bf16 %v1892_v24, %v1892_v24  ;;  %v1895_v28 = vadd.f32 %v8874_v11, %v1894_v26  ;;  %v9074_v29 = vpop.f32.mrb[11].mxu1  ;;  %v9571_v24 = vld [vmem:[#allocation8 + $0x7c] ss:$12 sps:$4 sm:$0xff]   ;;  %v9574_v26 = vld [vmem:[#allocation8 + $0x94] ss:$12 sps:$4 sm:$0xff]  }
 0x29d   :  { %v9575_v29 = vld [vmem:[#allocation8 + $0xa8] ss:$12 sps:$4 sm:$0xff]  }
 0x29e   :  { %v2017_v30 = vsel %vm2009_vm1, %v1906_v27, 0  ;;  %v2111_v31 = vpack.c.bf16 %v1895_v28, %v1895_v28  ;;  %v9572_v27 = vld [vmem:[#allocation8 + $0x90] ss:$12 sps:$4 sm:$0xff]   ;;  %v9577_v28 = vld [vmem:[#allocation8 + $0xac] ss:$12 sps:$4 sm:$0xff]  }
 0x2a0   :  { %v10887_v32 = vsel %vm2009_vm1, %v2111_v31, 0  ;;  %v9578_v31 = vld [vmem:[#allocation8 + $0xc0] ss:$12 sps:$4 sm:$0xff]  }
 0x33d   :  { %v1981_v36 = vpop.f32.mrb[16].mxu0 }
 0x33e   :  { %v1992_v37 = vsel %vm1991_vm2, %v1981_v36, -1e+30  ;;  %v9079_v38 = vpop.f32.mrb[17].mxu0  ;;  %v9590_v36 = vld [vmem:[#allocation8 + $0xf4] ss:$12 sps:$4 sm:$0xff]  }
 0x33f   :  { %v1984_v49 = vpop.f32.mrb[18].mxu0  ;;  %v1994_v39 = vsel %vm1993_vm3, %v1992_v37, -inf  ;;  %v9595_v38 = vld [vmem:[#allocation8 + $0x10c] ss:$12 sps:$4 sm:$0xff]  }
 0x340   :  { %1995 = vmax.xlane.f32.xlu0 %v1994_v39  ;;  %v9080_v40 = vpop.f32.mrb[19].mxu0  ;;  %v9593_v49 = vld [vmem:[#allocation8 + $0x108] ss:$12 sps:$4 sm:$0xff]   ;;  %v9600_v39 = vld [vmem:[#allocation8 + $0x124] ss:$12 sps:$4 sm:$0xff]  }
 0x341   :  { %v9598_v40 = vld [vmem:[#allocation8 + $0x120] ss:$12 sps:$4 sm:$0xff]  }
 0x3cd   :  { %v1996_v42 = vpop.xlane.xlu0 %1995 }
 0x3ce   :  { %v1997_v44 = vsub.f32 %v1992_v37, %v1996_v42  ;;  %v9588_v37 = vld [vmem:[#allocation8 + $0xf0] ss:$12 sps:$4 sm:$0xff]  }
 0x3cf   :  { %v9605_v42 = vld [vmem:[#allocation8 + $0x13c] ss:$12 sps:$4 sm:$0xff]  }
 0x3d0   :  { %v1998_v46 = vmul.f32 1.442695, %v1997_v44  ;;  %v9603_v44 = vld [vmem:[#allocation8 + $0x138] ss:$12 sps:$4 sm:$0xff]  }
 0x3d2   :  { %10466 = vpow2.f32 %v1998_v46  ;;  %v9610_v46 = vld [vmem:[#allocation8 + $0x154] ss:$12 sps:$4 sm:$0xff]  }
 0x3dc   :  { %v10467_v47 = vpop.eup %10466 }
 0x3dd   :  { %v2000_v48 = vsel %vm1993_vm3, %v10467_v47, 0.0 }
 0x3de   :  { %2001 = vadd.xlane.f32.xlu0 %v2000_v48 }
 0x46b   :  { %v2002_v50 = vpop.xlane.xlu0 %2001 }
 0x46c   :  { %10468 = vrcp.f32 %v2002_v50 }
 0x476   :  { %v10469_v51 = vpop.eup %10468 }
 0x477   :  { %v2004_v52 = vmul.f32 %v10469_v51, %v10467_v47  ;;  %v9608_v47 = vld [vmem:[#allocation8 + $0x150] ss:$12 sps:$4 sm:$0xff]  }
 0x479   :  { %v2005_v53 = vpack.c.bf16 %v2004_v52, %v2004_v52 }
 0x47b   :  { %8200 = vmatmul.mubr.msk.bf16.vlgmr.msra.gmra.mrb[20].mxu0 %vm1993_vm3, %v2005_v53 }
 0x47c   :  { %9082 = vmatpush3.bf16.msra.mxu0 %v2017_v30  ;;  %9083 = vmatprep.mubr.msk.bf16.mxu0 %vm10691_vm0, %v10690_v41  ;;  %v9580_v30 = vld [vmem:[#allocation8 + $0xc4] ss:$12 sps:$4 sm:$0xff]  }
 0x47d   :  { %2112 = vmatprep.subr.bf16.mxu0 %v2107_v54  ;;  %v9582_v54 = vld [vmem:[#allocation8 + $0x8] ss:$12 sps:$4 sm:$0xff]  }
 0x483   :  { %9084 = vmatmul.mubr.msk.bf16.vlgmr.msra.gmra.mrb[24].mxu0 %vm1993_vm3, %v2005_v53  ;;  %v9581_v53 = vld [vmem:[#allocation8 + $0xc8] ss:$12 sps:$4 sm:$0xff]  }
 0x484   :  { %2144 = vmatprep.mubr.bf16.mxu0 %v2104_v55  ;;  %v9586_v55 = vld [vmem:[#allocation8 + $0xe0] ss:$12 sps:$4 sm:$0xff]  }
 0x485   :  { %2113 = vmatpush1.bf16.xpose.msra.mxu0 %v2106_v56  ;;  %v9587_v56 = vld [vmem:[#allocation8 + $0x20] ss:$12 sps:$4 sm:$0xff]  }
 0x486   :  { %9087 = vmatprep.subr.bf16.mxu0 %v10690_v41 }
 0x48c   :  { %2145 = vmatmul.mubr.bf16.vlgmr.msra.gmra.mrb[28].mxu0 %v2103_v57  ;;  %v9591_v57 = vld [vmem:[#allocation8 + $0xf8] ss:$12 sps:$4 sm:$0xff]  }
 0x48d   :  { %9088 = vmatpush3.bf16.xpose.msra.mxu0 %v2108_v59  ;;  %9089 = vmatprep.mubr.msk.bf16.mxu0 %vm10691_vm0, %v10690_v41  ;;  %v9592_v59 = vld [vmem:[#allocation8 + $0x38] ss:$12 sps:$4 sm:$0xff]  }
 0x48e   :  { %2807 = vmatprep.subr.bf16.mxu0 %v9556_v14  ;;  %v9621_v14 = vld [vmem:[#allocation8 + $0x188] ss:$12 sps:$4 sm:$0xff]  }
 0x498   :  { %9090 = vmatmul.mubr.bf16.vlgmr.msra.gmra.mrb[28].mxu0 %v2105_v45  ;;  %v9596_v45 = vld [vmem:[#allocation8 + $0x110] ss:$12 sps:$4 sm:$0xff]  }
 0x499   :  { %2808 = vmatpush1.bf16.msra.mxu0 %v9554_v13  ;;  %v9618_v13 = vld [vmem:[#allocation8 + $0x180] ss:$12 sps:$4 sm:$0xff]  }
 0x49a   :  { %2809 = vmatprep.subr.bf16.mxu0 %v9559_v15 }
 0x49d   :  { %2810 = vmatpush1.bf16.msra.mxu0 %v9557_v17  ;;  %v9624_v17 = vld [vmem:[#allocation8 + $0x19c] ss:$12 sps:$4 sm:$0xff]  }
 0x49e   :  { %2811 = vmatprep.subr.bf16.mxu0 %v9562_v18  ;;  %v9622_v18 = vld [vmem:[#allocation8 + $0x198] ss:$12 sps:$4 sm:$0xff]  }
 0x4a1   :  { %2812 = vmatpush1.bf16.msra.mxu0 %v9560_v19  ;;  %v9625_v19 = vld [vmem:[#allocation8 + $0x1a0] ss:$12 sps:$4 sm:$0xff]  }
 0x4a2   :  { %2813 = vmatprep.subr.bf16.mxu0 %v9565_v20 }
 0x4a5   :  { %2814 = vmatpush1.bf16.msra.mxu0 %v9563_v21 }
 0x4a6   :  { %2815 = vmatprep.subr.bf16.mxu0 %v9568_v22 }
 0x4a9   :  { %2816 = vmatpush1.bf16.msra.mxu0 %v9566_v23  ;;  %v9626_v23 = vld [vmem:[#allocation8 + $0x1b0] ss:$12 sps:$4 sm:$0xff]  }
 0x4aa   :  { %2817 = vmatprep.subr.bf16.mxu0 %v9571_v24  ;;  %v9629_v24 = vld [vmem:[#allocation8 + $0x1b8] ss:$12 sps:$4 sm:$0xff]  }
 0x4ad   :  { %2818 = vmatpush1.bf16.msra.mxu0 %v9569_v25 }
 0x4ae   :  { %2819 = vmatprep.subr.bf16.mxu0 %v9574_v26  ;;  %v9632_v26 = vld [vmem:[#allocation8 + $0x1cc] ss:$12 sps:$4 sm:$0xff]  }
 0x4b1   :  { %2820 = vmatpush1.bf16.msra.mxu0 %v9572_v27  ;;  %v9630_v27 = vld [vmem:[#allocation8 + $0x1c8] ss:$12 sps:$4 sm:$0xff]  }
 0x4b2   :  { %2821 = vmatprep.subr.bf16.mxu0 %v9577_v28  ;;  %v9633_v28 = vld [vmem:[#allocation8 + $0x1d0] ss:$12 sps:$4 sm:$0xff]  }
 0x4b5   :  { %2822 = vmatpush1.bf16.msra.mxu0 %v9575_v29  ;;  %v9636_v29 = vld [vmem:[#allocation8 + $0x1e4] ss:$12 sps:$4 sm:$0xff]  }
 0x4b6   :  { %2823 = vmatprep.subr.bf16.mxu0 %v9580_v30  ;;  %v9637_v30 = vld [vmem:[#allocation8 + $0x1e8] ss:$12 sps:$4 sm:$0xff]  }
 0x4b9   :  { %2824 = vmatpush1.bf16.msra.mxu0 %v9578_v31  ;;  %v9640_v31 = vld [vmem:[#allocation8 + $0x1fc] ss:$12 sps:$4 sm:$0xff]  }
 0x4ba   :  { %2825 = vmatprep.subr.bf16.mxu0 %v9585_v33  ;;  %v9638_v33 = vld [vmem:[#allocation8 + $0x1f8] ss:$12 sps:$4 sm:$0xff]  }
 0x4bd   :  { %2826 = vmatpush1.bf16.msra.mxu0 %v9583_v35  ;;  %v9641_v35 = vld [vmem:[#allocation8 + $0x200] ss:$12 sps:$4 sm:$0xff]  }
 0x4be   :  { %2827 = vmatprep.subr.bf16.mxu0 %v9590_v36  ;;  %v9644_v36 = vld [vmem:[#allocation8 + $0x214] ss:$12 sps:$4 sm:$0xff]  }
 0x4c1   :  { %2828 = vmatpush1.bf16.msra.mxu0 %v9588_v37  ;;  %v9642_v37 = vld [vmem:[#allocation8 + $0x210] ss:$12 sps:$4 sm:$0xff]  }
 0x4c2   :  { %2829 = vmatprep.subr.bf16.mxu0 %v9595_v38  ;;  %v9645_v38 = vld [vmem:[#allocation8 + $0x218] ss:$12 sps:$4 sm:$0xff]  }
 0x4c5   :  { %2830 = vmatpush1.bf16.msra.mxu0 %v9593_v49  ;;  %v9648_v49 = vld [vmem:[#allocation8 + $0x22c] ss:$12 sps:$4 sm:$0xff]  }
 0x4c6   :  { %2831 = vmatprep.subr.bf16.mxu0 %v9600_v39  ;;  %v9646_v39 = vld [vmem:[#allocation8 + $0x228] ss:$12 sps:$4 sm:$0xff]  }
 0x4c9   :  { %2832 = vmatpush1.bf16.msra.mxu0 %v9598_v40  ;;  %v9649_v40 = vld [vmem:[#allocation8 + $0x230] ss:$12 sps:$4 sm:$0xff]  }
 0x4ca   :  { %2833 = vmatprep.subr.bf16.mxu0 %v9605_v42 }
 0x4cd   :  { %2834 = vmatpush1.bf16.msra.mxu0 %v9603_v44 }
 0x4ce   :  { %2835 = vmatprep.subr.bf16.mxu0 %v9610_v46 }
 0x4d1   :  { %2836 = vmatpush1.bf16.msra.mxu0 %v9608_v47 }
 0x54e   :  { %v10915_v60 = vpop.f32.mrb[20].mxu0 }
 0x54f   :  { %v10917_v61 = vpop.f32.mrb[21].mxu0 }
 0x550   :  { %v2057_v62 = vpop.f32.mrb[22].mxu0 }
 0x551   :  { %v2058_v63 = vpop.f32.mrb[23].mxu0  ;;  %v9597_v62 = vld [vmem:[#allocation8 + $0x50] ss:$12 sps:$4 sm:$0xff]  }
 0x552   :  { %v9602_v63 = vld [vmem:[#allocation8 + $0x68] ss:$12 sps:$4 sm:$0xff]  }
 0x556   :  { %v10919_v1 = vpop.f32.mrb[24].mxu0 }
 0x557   :  { %v9085_v43 = vpop.f32.mrb[25].mxu0 }
 0x558   :  { %v2097_v2 = vpop.f32.mrb[26].mxu0  ;;  %v9606_v43 = vld [vmem:[#allocation8 + $0x140] ss:$12 sps:$4 sm:$0xff]  }
 0x559   :  { %v9086_v4 = vpop.f32.mrb[27].mxu0  ;;  %v9607_v2 = vld [vmem:[#allocation8 + $0x80] ss:$12 sps:$4 sm:$0xff]  }
 0x55a   :  { %v9611_v4 = vld [vmem:[#allocation8 + $0x158] ss:$12 sps:$4 sm:$0xff]  }
 0x56b   :  { %v2186_v3 = vpop.f32.mrb[28].mxu0 }
 0x56c   :  { %v2192_v5 = vsel %vm1991_vm2, %v2186_v3, -1e+30  ;;  %v9091_v6 = vpop.f32.mrb[29].mxu0  ;;  %v9612_v3 = vld [vmem:[#allocation8 + $0x98] ss:$12 sps:$4 sm:$0xff]  }
 0x56d   :  { %v2189_v7 = vpop.f32.mrb[30].mxu0  ;;  %v2193_v58 = vsel %vm1993_vm3, %v2192_v5, -inf  ;;  %v9616_v6 = vld [vmem:[#allocation8 + $0x170] ss:$12 sps:$4 sm:$0xff]  }
 0x56e   :  { %2194 = vmax.xlane.f32.xlu1 %v2193_v58  ;;  %v9092_v8 = vpop.f32.mrb[31].mxu0  ;;  %v9613_v7 = vld [vmem:[#allocation8 + $0x168] ss:$12 sps:$4 sm:$0xff]   ;;  %v9617_v58 = vld [vmem:[#allocation8 + $0xb0] ss:$12 sps:$4 sm:$0xff]  }
 0x56f   :  { %v9620_v8 = vld [vmem:[#allocation8 + $0x184] ss:$12 sps:$4 sm:$0xff]  }
 0x5fb   :  { %v2195_v9 = vpop.xlane.xlu1 %2194 }
 0x5fc   :  { %v2196_v16 = vsub.f32 %v2192_v5, %v2195_v9  ;;  %v9615_v5 = vld [vmem:[#allocation8 + $0x16c] ss:$12 sps:$4 sm:$0xff]  }
 0x5fd   :  { %2837 = vmatprep.subr.bf16.mxu0 %v9615_v5 }
 0x5fe   :  { %v2197_v10 = vmul.f32 1.442695, %v2196_v16  ;;  %2838 = vmatpush1.bf16.msra.mxu0 %v9613_v7 }
 0x5ff   :  { %2850 = vmatprep.subr.bf16.mxu0 %v9620_v8 }
 0x600   :  { %10470 = vpow2.f32 %v2197_v10 }
 0x60a   :  { %v10924_v11 = vpop.eup %10470 }
 0x60b   :  { %v2199_v12 = vsel %vm1993_vm3, %v10924_v11, 0.0 }
 0x60c   :  { %2200 = vadd.xlane.f32.xlu1 %v2199_v12 }
 0x699   :  { %v2201_v48 = vpop.xlane.xlu1 %2200 }
 0x69a   :  { %10472 = vrcp.f32 %v2201_v48 }
 0x6a4   :  { %v10473_v50 = vpop.eup %10472 }
 0x6a5   :  { %v2203_v51 = vmul.f32 %v10473_v50, %v10924_v11 }
 0x6a7   :  { %v2204_v52 = vpack.c.bf16 %v2203_v51, %v2203_v51  ;;  %v10949_v51 = vsub.s32 2, %v10889_v34 }
 0x6a9   :  { %8203 = vmatmul.mubr.msk.bf16.vlgmr.msra.gmra.mrb[12].mxu1 %vm1993_vm3, %v2204_v52 }
 0x6aa   :  { %9094 = vmatpush3.bf16.msra.mxu1 %v10887_v32  ;;  %9095 = vmatprep.mubr.msk.bf16.mxu1 %vm10691_vm0, %v10690_v41  ;;  %v9601_v32 = vld [vmem:[#allocation8 + $0x128] ss:$12 sps:$4 sm:$0xff]  }
 0x6ab   :  { %8892 = vmatprep.subr.bf16.mxu1 %v9581_v53  ;;  %v10952_v53 = vsub.s32 0, %v10889_v34 }
 0x6b1   :  { %9096 = vmatmul.mubr.msk.bf16.vlgmr.msra.gmra.mrb[16].mxu1 %vm1993_vm3, %v2204_v52  ;;  %v2406_v52 = vld [vmem:[#allocation14] ss:$8 sm:$0x7] }
 0x6b2   :  { %8893 = vmatpush3.bf16.msra.mxu1 %v9582_v54  ;;  %v10955_v54 = vsub.s32 1, %v10889_v34 }
 0x6b3   :  { %8894 = vmatprep.subr.bf16.mxu1 %v9586_v55  ;;  %v2411_v55 = vrot.slane %v2406_v52, %v10952_v53 }
 0x6b6   :  { %8895 = vmatpush3.bf16.msra.mxu1 %v9587_v56  ;;  %v2415_v56 = vrot.slane %v2406_v52, %v10955_v54 }
 0x6b7   :  { %8896 = vmatprep.subr.bf16.mxu1 %v9591_v57 }
 0x6ba   :  { %8897 = vmatpush3.bf16.msra.mxu1 %v9592_v59 }
 0x6bb   :  { %8898 = vmatprep.subr.bf16.mxu1 %v9596_v45 }
 0x6be   :  { %8899 = vmatpush3.bf16.msra.mxu1 %v9597_v62 }
 0x6bf   :  { %8900 = vmatprep.subr.bf16.mxu1 %v9601_v32 }
 0x6c2   :  { %8901 = vmatpush3.bf16.msra.mxu1 %v9602_v63 }
 0x6c3   :  { %8902 = vmatprep.subr.bf16.mxu1 %v9606_v43 }
 0x6c6   :  { %8903 = vmatpush3.bf16.msra.mxu1 %v9607_v2 }
 0x6c7   :  { %8904 = vmatprep.subr.bf16.mxu1 %v9611_v4 }
 0x6ca   :  { %8905 = vmatpush3.bf16.msra.mxu1 %v9612_v3 }
 0x6cb   :  { %8906 = vmatprep.subr.bf16.mxu1 %v9616_v6  ;;  %v10482_v6 = vld [vmem:[#allocation3] sm:$0xff] }
 0x6ce   :  { %8907 = vmatpush3.bf16.msra.mxu1 %v9617_v58 }
 0x6cf   :  { %9099 = vmatprep.subr.bf16.mxu1 %v10690_v41 }
 0x77c   :  { %v2251_v9 = vpop.f32.mrb[12].mxu1 }
 0x77d   :  { %v2307_v16 = vpack.c.bf16 %v2251_v9, %v10915_v60  ;;  %v2253_v10 = vpop.f32.mrb[13].mxu1  ;;  %v9628_v60 = vld [vmem:[#allocation8 + $0x1b4] ss:$12 sps:$4 sm:$0xff]  }
 0x77e   :  { %v2308_v11 = vpack.c.bf16 %v2253_v10, %v10917_v61  ;;  %v2255_v12 = vpop.f32.mrb[14].mxu1  ;;  %v10483_v10 = vld [vmem:[#allocation3 + $0x8] sm:$0xff] }
 0x77f   :  { %v2256_v15 = vpop.f32.mrb[15].mxu1 }
 0x780   :  { %2839 = vmatprep.mubr.bf16.mxu0 %v2308_v11  ;;  %2925 = vmatprep.mubr.bf16.mxu1 %v2308_v11  ;;  %v10485_v15 = vld [vmem:[#allocation3 + $0x10] sm:$0xff] }
 0x781   :  { %2840 = vmatmul.mubr.bf16.vlgmr.msra.gmra.mrb[32].mxu0 %v2307_v16  ;;  %2926 = vmatmul.mubr.bf16.vlgmr.msra.gmra.mrb[20].mxu1 %v2307_v16 }
 0x782   :  { %2851 = vmatpush1.bf16.msra.mxu0 %v9618_v13  ;;  %9100 = vmatpush3.bf16.msra.mxu1 %v9621_v14  ;;  %v10484_v13 = vld [vmem:[#allocation3 + $0x18] sm:$0xff] }
 0x783   :  { %2852 = vmatprep.subr.bf16.mxu0 %v9624_v17  ;;  %9101 = vmatprep.subr.bf16.mxu1 %v10690_v41 }
 0x784   :  { %v2292_v20 = vpop.f32.mrb[16].mxu1  ;;  %2882 = vmatprep.mubr.bf16.mxu0 %v10689_v0  ;;  %9115 = vmatprep.mubr.msk.bf16.mxu1 %vm10691_vm0, %v10690_v41 }
 0x785   :  { %v2309_v61 = vpack.c.bf16 %v2292_v20, %v10919_v1  ;;  %v9097_v21 = vpop.f32.mrb[17].mxu1  ;;  %v9634_v1 = vld [vmem:[#allocation8 + $0x1e0] ss:$12 sps:$4 sm:$0xff]   ;;  %v10487_v20 = vld [vmem:[#allocation3 + $0x28] sm:$0xff] }
 0x786   :  { %2853 = vmatpush1.bf16.msra.mxu0 %v9622_v18  ;;  %9102 = vmatpush3.bf16.msra.mxu1 %v9625_v19  ;;  %v2295_v22 = vpop.f32.mrb[18].mxu1  ;;  %v10486_v18 = vld [vmem:[#allocation3 + $0x20] sm:$0xff] }
 0x787   :  { %v9098_v25 = vpop.f32.mrb[19].mxu1  ;;  %2854 = vmatprep.subr.bf16.mxu0 %v9628_v60  ;;  %9103 = vmatprep.subr.bf16.mxu1 %v10690_v41 }
 0x788   :  { %v9652_v25 = vld [vmem:[#allocation9 + $0x4] ss:$48 sps:$4 sm:$0xff]  }
 0x78a   :  { %2855 = vmatpush1.bf16.msra.mxu0 %v9626_v23  ;;  %9104 = vmatpush3.bf16.msra.mxu1 %v9629_v24  ;;  %v9650_v24 = vld [vmem:[#allocation9] ss:$48 sps:$4 sm:$0xff]  }
 0x78b   :  { %2856 = vmatprep.subr.bf16.mxu0 %v9632_v26  ;;  %9105 = vmatprep.subr.bf16.mxu1 %v10690_v41  ;;  %v9653_v26 = vld [vmem:[#allocation9 + $0x8] ss:$48 sps:$4 sm:$0xff]  }
 0x78e   :  { %2857 = vmatpush1.bf16.msra.mxu0 %v9630_v27  ;;  %9106 = vmatpush3.bf16.msra.mxu1 %v9633_v28  ;;  %v9655_v27 = vld [vmem:[#allocation9 + $0xc] ss:$48 sps:$4 sm:$0xff]   ;;  %v9658_v28 = vld [vmem:[#allocation9 + $0x64] ss:$48 sps:$4 sm:$0xff]  }
 0x78f   :  { %2858 = vmatprep.subr.bf16.mxu0 %v9636_v29  ;;  %9107 = vmatprep.subr.bf16.mxu1 %v10690_v41  ;;  %v9661_v29 = vld [vmem:[#allocation9 + $0x6c] ss:$48 sps:$4 sm:$0xff]  }
 0x792   :  { %2859 = vmatpush1.bf16.msra.mxu0 %v9634_v1  ;;  %9108 = vmatpush3.bf16.msra.mxu1 %v9637_v30  ;;  %v9656_v1 = vld [vmem:[#allocation9 + $0x60] ss:$48 sps:$4 sm:$0xff]   ;;  %v9659_v30 = vld [vmem:[#allocation9 + $0x68] ss:$48 sps:$4 sm:$0xff]  }
 0x793   :  { %2860 = vmatprep.subr.bf16.mxu0 %v9640_v31  ;;  %9109 = vmatprep.subr.bf16.mxu1 %v10690_v41  ;;  %v9664_v31 = vld [vmem:[#allocation9 + $0xc4] ss:$48 sps:$4 sm:$0xff]  }
 0x796   :  { %2861 = vmatpush1.bf16.msra.mxu0 %v9638_v33  ;;  %9110 = vmatpush3.bf16.msra.mxu1 %v9641_v35  ;;  %v9667_v33 = vld [vmem:[#allocation9 + $0xcc] ss:$48 sps:$4 sm:$0xff]   ;;  %v9662_v35 = vld [vmem:[#allocation9 + $0xc0] ss:$48 sps:$4 sm:$0xff]  }
 0x797   :  { %2862 = vmatprep.subr.bf16.mxu0 %v9644_v36  ;;  %9111 = vmatprep.subr.bf16.mxu1 %v10690_v41  ;;  %v9665_v36 = vld [vmem:[#allocation9 + $0xc8] ss:$48 sps:$4 sm:$0xff]  }
 0x79a   :  { %2863 = vmatpush1.bf16.msra.mxu0 %v9642_v37  ;;  %9112 = vmatpush3.bf16.msra.mxu1 %v9645_v38  ;;  %v9670_v37 = vld [vmem:[#allocation9 + $0x124] ss:$48 sps:$4 sm:$0xff]   ;;  %v9673_v38 = vld [vmem:[#allocation9 + $0x12c] ss:$48 sps:$4 sm:$0xff]  }
 0x79b   :  { %2864 = vmatprep.subr.bf16.mxu0 %v9648_v49  ;;  %9113 = vmatprep.subr.bf16.mxu1 %v10690_v41  ;;  %v2419_v41 = vrot.slane %v2406_v52, %v10949_v51  ;;  %v9668_v49 = vld [vmem:[#allocation9 + $0x120] ss:$48 sps:$4 sm:$0xff]   ;;  %v9683_v52 = vld [vmem:[#allocation9 + $0x1e8] ss:$48 sps:$4 sm:$0xff]  }
 0x79e   :  { %2865 = vmatpush1.bf16.msra.mxu0 %v9646_v39  ;;  %9114 = vmatpush3.bf16.msra.mxu1 %v9649_v40  ;;  %v9671_v39 = vld [vmem:[#allocation9 + $0x128] ss:$48 sps:$4 sm:$0xff]   ;;  %v9676_v40 = vld [vmem:[#allocation9 + $0x184] ss:$48 sps:$4 sm:$0xff]  }
 0x79f   :  { %4867 = vmatprep.subr.bf16.mxu1 %v9652_v25  ;;  %4953 = vmatprep.subr.bf16.mxu0 %v9655_v27  ;;  %v9712_v25 = vld [vmem:[#allocation9 + $0x3c4] ss:$48 sps:$4 sm:$0xff]   ;;  %v9710_v27 = vld [vmem:[#allocation9 + $0x3c0] ss:$48 sps:$4 sm:$0xff]  }
 0x7a1   :  { %2883 = vmatmul.mubr.bf16.vlgmr.msra.gmra.mrb[32].mxu0 %v2309_v61  ;;  %9116 = vmatmul.mubr.bf16.vlgmr.msra.gmra.mrb[24].mxu1 %v2309_v61 }
 0x7a2   :  { %4868 = vmatpush1.bf16.msra.mxu1 %v9650_v24  ;;  %4954 = vmatpush1.bf16.msra.mxu0 %v9653_v26  ;;  %v9715_v26 = vld [vmem:[#allocation9 + $0x3cc] ss:$48 sps:$4 sm:$0xff]  }
 0x7a3   :  { %4869 = vmatprep.subr.bf16.mxu1 %v9658_v28  ;;  %4955 = vmatprep.subr.bf16.mxu0 %v9661_v29  ;;  %v9713_v28 = vld [vmem:[#allocation9 + $0x3c8] ss:$48 sps:$4 sm:$0xff]   ;;  %v9718_v29 = vld [vmem:[#allocation9 + $0x424] ss:$48 sps:$4 sm:$0xff]  }
 0x7a6   :  { %4870 = vmatpush1.bf16.msra.mxu1 %v9656_v1  ;;  %4956 = vmatpush1.bf16.msra.mxu0 %v9659_v30  ;;  %v9721_v1 = vld [vmem:[#allocation9 + $0x42c] ss:$48 sps:$4 sm:$0xff]   ;;  %v9716_v30 = vld [vmem:[#allocation9 + $0x420] ss:$48 sps:$4 sm:$0xff]  }
 0x7a7   :  { %4871 = vmatprep.subr.bf16.mxu1 %v9664_v31  ;;  %4957 = vmatprep.subr.bf16.mxu0 %v9667_v33  ;;  %v9719_v31 = vld [vmem:[#allocation9 + $0x428] ss:$48 sps:$4 sm:$0xff]   ;;  %v9724_v33 = vld [vmem:[#allocation9 + $0x484] ss:$48 sps:$4 sm:$0xff]  }
 0x7aa   :  { %4872 = vmatpush1.bf16.msra.mxu1 %v9662_v35  ;;  %4958 = vmatpush1.bf16.msra.mxu0 %v9665_v36  ;;  %v9722_v35 = vld [vmem:[#allocation9 + $0x480] ss:$48 sps:$4 sm:$0xff]   ;;  %v9725_v36 = vld [vmem:[#allocation9 + $0x488] ss:$48 sps:$4 sm:$0xff]  }
 0x7ab   :  { %4873 = vmatprep.subr.bf16.mxu1 %v9670_v37  ;;  %4959 = vmatprep.subr.bf16.mxu0 %v9673_v38  ;;  %v9727_v37 = vld [vmem:[#allocation9 + $0x48c] ss:$48 sps:$4 sm:$0xff]   ;;  %v9730_v38 = vld [vmem:[#allocation9 + $0x4e4] ss:$48 sps:$4 sm:$0xff]  }
 0x7ae   :  { %4874 = vmatpush1.bf16.msra.mxu1 %v9668_v49  ;;  %4960 = vmatpush1.bf16.msra.mxu0 %v9671_v39  ;;  %v9733_v49 = vld [vmem:[#allocation9 + $0x4ec] ss:$48 sps:$4 sm:$0xff]   ;;  %v9728_v39 = vld [vmem:[#allocation9 + $0x4e0] ss:$48 sps:$4 sm:$0xff]  }
 0x7af   :  { %4875 = vmatprep.subr.bf16.mxu1 %v9676_v40  ;;  %v9731_v40 = vld [vmem:[#allocation9 + $0x4e8] ss:$48 sps:$4 sm:$0xff]  }
 0x854   :  { %v8908_v42 = vpop.f32.mrb[20].mxu1 }
 0x855   :  { %v8909_v44 = vpop.f32.mrb[21].mxu1 }
 0x856   :  { %v8910_v46 = vadd.f32 %v8909_v44, %v8908_v42  ;;  %v8911_v47 = vpop.f32.mrb[22].mxu1  ;;  %v9679_v42 = vld [vmem:[#allocation9 + $0x18c] ss:$48 sps:$4 sm:$0xff]   ;;  %v9674_v44 = vld [vmem:[#allocation9 + $0x180] ss:$48 sps:$4 sm:$0xff]  }
 0x857   :  { %v8912_v48 = vpop.f32.mrb[23].mxu1  ;;  %4961 = vmatprep.subr.bf16.mxu0 %v9679_v42  ;;  %4876 = vmatpush1.bf16.msra.mxu1 %v9674_v44  ;;  %v9736_v42 = vld [vmem:[#allocation9 + $0x544] ss:$48 sps:$4 sm:$0xff]   ;;  %v9739_v44 = vld [vmem:[#allocation9 + $0x54c] ss:$48 sps:$4 sm:$0xff]  }
 0x858   :  { %v8913_v50 = vadd.f32 %v8912_v48, %v8911_v47  ;;  %v2928_v57 = vadd.f32 %v8910_v46, %v2419_v41  ;;  %v9677_v46 = vld [vmem:[#allocation9 + $0x188] ss:$48 sps:$4 sm:$0xff]   ;;  %v9682_v47 = vld [vmem:[#allocation9 + $0x1e4] ss:$48 sps:$4 sm:$0xff]   ;;  %v9685_v48 = vld [vmem:[#allocation9 + $0x1ec] ss:$48 sps:$4 sm:$0xff]  }
 0x859   :  { %4962 = vmatpush1.bf16.msra.mxu0 %v9677_v46  ;;  %4877 = vmatprep.subr.bf16.mxu1 %v9682_v47  ;;  %v9734_v46 = vld [vmem:[#allocation9 + $0x540] ss:$48 sps:$4 sm:$0xff]   ;;  %v9737_v47 = vld [vmem:[#allocation9 + $0x548] ss:$48 sps:$4 sm:$0xff]  }
 0x85a   :  { %v2931_v2 = vadd.f32 %v8913_v50, %v2419_v41  ;;  %v9680_v50 = vld [vmem:[#allocation9 + $0x1e0] ss:$48 sps:$4 sm:$0xff]   ;;  %v9688_v41 = vld [vmem:[#allocation9 + $0x244] ss:$48 sps:$4 sm:$0xff]   ;;  %4963 = vmatprep.subr.bf16.mxu0 %v9685_v48 }
 0x85b   :  { %4878 = vmatpush1.bf16.msra.mxu1 %v9680_v50  ;;  %v9742_v48 = vld [vmem:[#allocation9 + $0x5a4] ss:$48 sps:$4 sm:$0xff]   ;;  %v9745_v50 = vld [vmem:[#allocation9 + $0x5ac] ss:$48 sps:$4 sm:$0xff]  }
 0x85c   :  { %4879 = vmatprep.subr.bf16.mxu1 %v9688_v41  ;;  %v9743_v41 = vld [vmem:[#allocation9 + $0x5a8] ss:$48 sps:$4 sm:$0xff]  }
 0x85d   :  { %4964 = vmatpush1.bf16.msra.mxu0 %v9683_v52  ;;  %v9740_v52 = vld [vmem:[#allocation9 + $0x5a0] ss:$48 sps:$4 sm:$0xff]  }
 0x874   :  { %v2884_v59 = vpop.f32.mrb[32].mxu0  ;;  %v2968_v45 = vpop.f32.mrb[24].mxu1 }
 0x875   :  { %v9123_v62 = vadd.f32 %v2884_v59, %v2411_v55  ;;  %v2969_v32 = vadd.f32 %v2968_v45, %v2928_v57  ;;  %v2886_v63 = vpop.f32.mrb[33].mxu0  ;;  %v9117_v43 = vpop.f32.mrb[25].mxu1  ;;  %v9689_v57 = vld [vmem:[#allocation9 + $0x248] ss:$48 sps:$4 sm:$0xff]   ;;  %v9694_v59 = vld [vmem:[#allocation9 + $0x2a4] ss:$48 sps:$4 sm:$0xff]  }
 0x876   :  { %v9124_v4 = vadd.f32 %v2886_v63, %v2415_v56  ;;  %v2888_v3 = vpop.f32.mrb[34].mxu0  ;;  %v2971_v5 = vpop.f32.mrb[26].mxu1  ;;  %v9697_v45 = vld [vmem:[#allocation9 + $0x2ac] ss:$48 sps:$4 sm:$0xff]   ;;  %v9700_v63 = vld [vmem:[#allocation9 + $0x304] ss:$48 sps:$4 sm:$0xff]  }
 0x877   :  { %v10960_v7 = vadd.f32 %v10482_v6, %v9123_v62  ;;  %v9125_v58 = vadd.f32 %v2888_v3, %v2411_v55  ;;  %v2972_v8 = vadd.f32 %v2971_v5, %v2931_v2  ;;  %v2890_v9 = vpop.f32.mrb[35].mxu0  ;;  %v9118_v16 = vpop.f32.mrb[27].mxu1  ;;  %v10966_v17 = vadd.f32 %v10485_v15, %v2969_v32  ;;  %v9691_v55 = vld [vmem:[#allocation9 + $0x24c] ss:$48 sps:$4 sm:$0xff]   ;;  %v9692_v62 = vld [vmem:[#allocation9 + $0x2a0] ss:$48 sps:$4 sm:$0xff]  }
 0x878   :  { %v10962_v11 = vadd.f32 %v10483_v10, %v9124_v4  ;;  %v9126_v12 = vadd.f32 %v2890_v9, %v2415_v56  ;;  %v9686_v56 = vld [vmem:[#allocation9 + $0x240] ss:$48 sps:$4 sm:$0xff]   ;;  %4965 = vmatprep.subr.bf16.mxu0 %v9691_v55  ;;  %v9695_v32 = vld [vmem:[#allocation9 + $0x2a8] ss:$48 sps:$4 sm:$0xff]   ;;  %v9703_v43 = vld [vmem:[#allocation9 + $0x30c] ss:$48 sps:$4 sm:$0xff]  }
 0x879   :  { %v10964_v14 = vadd.f32 %v10484_v13, %v9125_v58  ;;  %v10972_v61 = vadd.f32 %v10487_v20, %v2972_v8  ;;  %4880 = vmatpush1.bf16.msra.mxu1 %v9686_v56  ;;  %4966 = vmatpush1.bf16.msra.mxu0 %v9689_v57  ;;  %v9698_v2 = vld [vmem:[#allocation9 + $0x300] ss:$48 sps:$4 sm:$0xff]   ;;  %v9701_v4 = vld [vmem:[#allocation9 + $0x308] ss:$48 sps:$4 sm:$0xff]   ;;  %v9706_v3 = vld [vmem:[#allocation9 + $0x364] ss:$48 sps:$4 sm:$0xff]  }
 0x87a   :  { %v10968_v19 = vadd.f32 %v10486_v18, %v9126_v12  ;;  %v2985_v60 = vadd.f32 %v10962_v11, %v10960_v7  ;;  %4881 = vmatprep.subr.bf16.mxu1 %v9694_v59  ;;  %4967 = vmatprep.subr.bf16.mxu0 %v9697_v45  ;;  %v9709_v5 = vld [vmem:[#allocation9 + $0x36c] ss:$48 sps:$4 sm:$0xff]   ;;  %v9704_v6 = vld [vmem:[#allocation9 + $0x360] ss:$48 sps:$4 sm:$0xff]   ;;  %v9707_v58 = vld [vmem:[#allocation9 + $0x368] ss:$48 sps:$4 sm:$0xff]  }
 0x87b   :  { %v9748_v55 = vld [vmem:[#allocation9 + $0x604] ss:$48 sps:$4 sm:$0xff]   ;;  %v9751_v56 = vld [vmem:[#allocation9 + $0x60c] ss:$48 sps:$4 sm:$0xff]  }
 0x87c   :  { %v2986_v21 = vadd.f32 %v2985_v60, %v10966_v17  ;;  %v2989_v22 = vadd.f32 %v10968_v19, %v10964_v14 }
 0x87d   :  { %4882 = vmatpush1.bf16.msra.mxu1 %v9692_v62  ;;  %4968 = vmatpush1.bf16.msra.mxu0 %v9695_v32 }
 0x87e   :  { %2987 = vadd.xlane.f32.xlu0 %v2986_v21  ;;  %v2990_v23 = vadd.f32 %v2989_v22, %v10972_v61  ;;  %4883 = vmatprep.subr.bf16.mxu1 %v9700_v63 }
 0x87f   :  { %4969 = vmatprep.subr.bf16.mxu0 %v9703_v43  ;;  %v11008_v43 = vld [vmem:[#allocation14 + $0x1] ss:$8 sm:$0x7] }
 0x880   :  { %2991 = vadd.xlane.f32.xlu1 %v2990_v23 }
 0x881   :  { %4884 = vmatpush1.bf16.msra.mxu1 %v9698_v2  ;;  %4970 = vmatpush1.bf16.msra.mxu0 %v9701_v4  ;;  %v11010_v2 = vld [vmem:[#allocation14 + $0x2] ss:$8 sm:$0x7]  ;;  %v3036_v4 = vrot.slane %v11008_v43, %v10955_v54 }
 0x882   :  { %4885 = vmatprep.subr.bf16.mxu1 %v9706_v3  ;;  %4971 = vmatprep.subr.bf16.mxu0 %v9709_v5  ;;  %v3032_v3 = vrot.slane %v11008_v43, %v10952_v53 }
 0x885   :  { %4886 = vmatpush1.bf16.msra.mxu1 %v9704_v6  ;;  %4972 = vmatpush1.bf16.msra.mxu0 %v9707_v58 }
 0x886   :  { %4887 = vmatprep.subr.bf16.mxu1 %v9712_v25  ;;  %4973 = vmatprep.subr.bf16.mxu0 %v9715_v26  ;;  %v9757_v25 = vld [vmem:[#allocation9 + $0x66c] ss:$48 sps:$4 sm:$0xff]   ;;  %v9752_v26 = vld [vmem:[#allocation9 + $0x660] ss:$48 sps:$4 sm:$0xff]  }
 0x889   :  { %4888 = vmatpush1.bf16.msra.mxu1 %v9710_v27  ;;  %4974 = vmatpush1.bf16.msra.mxu0 %v9713_v28  ;;  %v9755_v27 = vld [vmem:[#allocation9 + $0x668] ss:$48 sps:$4 sm:$0xff]   ;;  %v9760_v28 = vld [vmem:[#allocation9 + $0x6c4] ss:$48 sps:$4 sm:$0xff]  }
 0x88a   :  { %4889 = vmatprep.subr.bf16.mxu1 %v9718_v29  ;;  %4975 = vmatprep.subr.bf16.mxu0 %v9721_v1  ;;  %v9763_v29 = vld [vmem:[#allocation9 + $0x6cc] ss:$48 sps:$4 sm:$0xff]   ;;  %v9758_v1 = vld [vmem:[#allocation9 + $0x6c0] ss:$48 sps:$4 sm:$0xff]  }
 0x88d   :  { %4890 = vmatpush1.bf16.msra.mxu1 %v9716_v30  ;;  %4976 = vmatpush1.bf16.msra.mxu0 %v9719_v31  ;;  %v9761_v30 = vld [vmem:[#allocation9 + $0x6c8] ss:$48 sps:$4 sm:$0xff]   ;;  %v9766_v31 = vld [vmem:[#allocation9 + $0x724] ss:$48 sps:$4 sm:$0xff]  }
 0x88e   :  { %4891 = vmatprep.subr.bf16.mxu1 %v9724_v33  ;;  %4977 = vmatprep.subr.bf16.mxu0 %v9727_v37  ;;  %v9769_v33 = vld [vmem:[#allocation9 + $0x72c] ss:$48 sps:$4 sm:$0xff]   ;;  %v9772_v37 = vld [vmem:[#allocation9 + $0x784] ss:$48 sps:$4 sm:$0xff]  }
 0x891   :  { %4892 = vmatpush1.bf16.msra.mxu1 %v9722_v35  ;;  %4978 = vmatpush1.bf16.msra.mxu0 %v9725_v36  ;;  %v9764_v35 = vld [vmem:[#allocation9 + $0x720] ss:$48 sps:$4 sm:$0xff]   ;;  %v9767_v36 = vld [vmem:[#allocation9 + $0x728] ss:$48 sps:$4 sm:$0xff]  }
 0x892   :  { %4893 = vmatprep.subr.bf16.mxu1 %v9730_v38  ;;  %4979 = vmatprep.subr.bf16.mxu0 %v9733_v49  ;;  %v9775_v38 = vld [vmem:[#allocation9 + $0x78c] ss:$48 sps:$4 sm:$0xff]   ;;  %v9770_v49 = vld [vmem:[#allocation9 + $0x780] ss:$48 sps:$4 sm:$0xff]  }
 0x895   :  { %4894 = vmatpush1.bf16.msra.mxu1 %v9728_v39  ;;  %4980 = vmatpush1.bf16.msra.mxu0 %v9731_v40  ;;  %v9773_v39 = vld [vmem:[#allocation9 + $0x788] ss:$48 sps:$4 sm:$0xff]   ;;  %v9778_v40 = vld [vmem:[#allocation9 + $0x7e4] ss:$48 sps:$4 sm:$0xff]  }
 0x896   :  { %4895 = vmatprep.subr.bf16.mxu1 %v9736_v42  ;;  %4981 = vmatprep.subr.bf16.mxu0 %v9739_v44  ;;  %v9781_v42 = vld [vmem:[#allocation9 + $0x7ec] ss:$48 sps:$4 sm:$0xff]   ;;  %v9776_v44 = vld [vmem:[#allocation9 + $0x7e0] ss:$48 sps:$4 sm:$0xff]  }
 0x899   :  { %4896 = vmatpush1.bf16.msra.mxu1 %v9734_v46  ;;  %4982 = vmatpush1.bf16.msra.mxu0 %v9737_v47  ;;  %v9779_v46 = vld [vmem:[#allocation9 + $0x7e8] ss:$48 sps:$4 sm:$0xff]   ;;  %v9784_v47 = vld [vmem:[#allocation9 + $0x844] ss:$48 sps:$4 sm:$0xff]  }
 0x89a   :  { %4897 = vmatprep.subr.bf16.mxu1 %v9742_v48  ;;  %4983 = vmatprep.subr.bf16.mxu0 %v9745_v50  ;;  %v9787_v48 = vld [vmem:[#allocation9 + $0x84c] ss:$48 sps:$4 sm:$0xff]  }
 0x89d   :  { %4898 = vmatpush1.bf16.msra.mxu1 %v9740_v52  ;;  %4984 = vmatpush1.bf16.msra.mxu0 %v9743_v41  ;;  %v3040_v41 = vrot.slane %v11008_v43, %v10949_v51  ;;  %v9796_v43 = vld [vmem:[#allocation9 + $0x14] ss:$48 sps:$4 sm:$0xff]  }
 0x89e   :  { %4910 = vmatprep.subr.bf16.mxu1 %v9748_v55  ;;  %4996 = vmatprep.subr.bf16.mxu0 %v9751_v56  ;;  %v9782_v55 = vld [vmem:[#allocation9 + $0x840] ss:$48 sps:$4 sm:$0xff]   ;;  %v9785_v56 = vld [vmem:[#allocation9 + $0x848] ss:$48 sps:$4 sm:$0xff]  }
 0x90b   :  { %v2988_v8 = vpop.xlane.xlu0 %2987 }
 0x90c   :  { %v2994_v9 = vmul.f32 0.0026041667, %v2988_v8 }
 0x90d   :  { %v2992_v16 = vpop.xlane.xlu1 %2991 }
 0x90e   :  { %v10979_v10 = vsub.f32 %v10960_v7, %v2994_v9  ;;  %v10982_v12 = vsub.f32 %v10962_v11, %v2994_v9  ;;  %v2995_v13 = vmul.f32 0.0026041667, %v2992_v16  ;;  %v10985_v15 = vsub.f32 %v10966_v17, %v2994_v9 }
 0x90f   :  { %v3058_v16 = vrot.slane %v11010_v2, %v10955_v54 }
 0x910   :  { %v10988_v18 = vsub.f32 %v10964_v14, %v2995_v13  ;;  %v10991_v60 = vsub.f32 %v10968_v19, %v2995_v13  ;;  %v10994_v20 = vsub.f32 %v10972_v61, %v2995_v13  ;;  %v3002_v7 = vmul.f32 %v10979_v10, %v10979_v10 }
 0x911   :  { %v3003_v11 = vmul.f32 %v10982_v12, %v10982_v12  ;;  %v3004_v14 = vmul.f32 %v10985_v15, %v10985_v15 }
 0x912   :  { %v3005_v21 = vmul.f32 %v10988_v18, %v10988_v18  ;;  %v3006_v17 = vmul.f32 %v10991_v60, %v10991_v60  ;;  %v3007_v61 = vmul.f32 %v10994_v20, %v10994_v20 }
 0x913   :  { %v3008_v19 = vadd.f32 %v3003_v11, %v3002_v7  ;;  %v3054_v7 = vrot.slane %v11010_v2, %v10952_v53 }
 0x914   :  { %v3012_v22 = vadd.f32 %v3006_v17, %v3005_v21 }
 0x915   :  { %v3009_v23 = vadd.f32 %v3008_v19, %v3004_v14 }
 0x916   :  { %v3013_v24 = vadd.f32 %v3012_v22, %v3007_v61  ;;  %v9749_v22 = vld [vmem:[#allocation9 + $0x608] ss:$48 sps:$4 sm:$0xff]  }
 0x917   :  { %3010 = vadd.xlane.f32.xlu0 %v3009_v23 }
 0x918   :  { %3014 = vadd.xlane.f32.xlu1 %v3013_v24  ;;  %v9754_v24 = vld [vmem:[#allocation9 + $0x664] ss:$48 sps:$4 sm:$0xff]  }
 0x9a4   :  { %v3011_v57 = vpop.xlane.xlu0 %3010 }
 0x9a5   :  { %v3016_v59 = vmul.f32 0.0026041667, %v3011_v57  ;;  %v3015_v45 = vpop.xlane.xlu1 %3014  ;;  %v9790_v57 = vld [vmem:[#allocation9 + $0x8a4] ss:$48 sps:$4 sm:$0xff]  }
 0x9a6   :  { %v3017_v62 = vmul.f32 0.0026041667, %v3015_v45 }
 0x9a7   :  { %v3018_v32 = vadd.f32 1e-05, %v3016_v59  ;;  %v9793_v59 = vld [vmem:[#allocation9 + $0x8ac] ss:$48 sps:$4 sm:$0xff]  }
 0x9a8   :  { %v3019_v63 = vadd.f32 1e-05, %v3017_v62 }
 0x9a9   :  { %10474 = vrsqrt.f32 %v3018_v32  ;;  %v3062_v32 = vrot.slane %v11010_v2, %v10949_v51  ;;  %v9797_v2 = vld [vmem:[#allocation9 + $0x18] ss:$48 sps:$4 sm:$0xff]  }
 0x9aa   :  { %10476 = vrsqrt.f32 %v3019_v63 }
 0x9b3   :  { %v11016_v5 = vpop.eup %10474 }
 0x9b4   :  { %v11018_v6 = vpop.eup %10476  ;;  %v3023_v58 = vmul.f32 %v11016_v5, %v10982_v12  ;;  %v3022_v8 = vmul.f32 %v11016_v5, %v10979_v10  ;;  %v3024_v52 = vmul.f32 %v11016_v5, %v10985_v15  ;;  %v9791_v15 = vld [vmem:[#allocation9 + $0x8a8] ss:$48 sps:$4 sm:$0xff]   ;;  %v9794_v5 = vld [vmem:[#allocation9 + $0x10] ss:$48 sps:$4 sm:$0xff]  }
 0x9b5   :  { %v3026_v9 = vmul.f32 %v11018_v6, %v10991_v60  ;;  %v3025_v13 = vmul.f32 %v11018_v6, %v10988_v18  ;;  %v9746_v18 = vld [vmem:[#allocation9 + $0x600] ss:$48 sps:$4 sm:$0xff]   ;;  %v3027_v50 = vmul.f32 %v11018_v6, %v10994_v20 }
 0x9b6   :  { %v3045_v11 = vmul.f32 %v3036_v4, %v3023_v58  ;;  %v3044_v21 = vmul.f32 %v3032_v3, %v3022_v8  ;;  %v3046_v62 = vmul.f32 %v3040_v41, %v3024_v52  ;;  %v9788_v20 = vld [vmem:[#allocation9 + $0x8a0] ss:$48 sps:$4 sm:$0xff]   ;;  %v9802_v58 = vld [vmem:[#allocation9 + $0x74] ss:$48 sps:$4 sm:$0xff]   ;;  %v9805_v8 = vld [vmem:[#allocation9 + $0x7c] ss:$48 sps:$4 sm:$0xff]  }
 0x9b7   :  { %v3048_v17 = vmul.f32 %v3036_v4, %v3026_v9  ;;  %v3047_v14 = vmul.f32 %v3032_v3, %v3025_v13  ;;  %v3049_v45 = vmul.f32 %v3040_v41, %v3027_v50  ;;  %v9799_v4 = vld [vmem:[#allocation9 + $0x1c] ss:$48 sps:$4 sm:$0xff]   ;;  %v9800_v9 = vld [vmem:[#allocation9 + $0x70] ss:$48 sps:$4 sm:$0xff]   ;;  %v9808_v13 = vld [vmem:[#allocation9 + $0xd4] ss:$48 sps:$4 sm:$0xff]  }
 0x9b8   :  { %v11032_v12 = vadd.f32 %v3058_v16, %v3045_v11  ;;  %v11036_v10 = vadd.f32 %v3054_v7, %v3044_v21  ;;  %v11064_v3 = vadd.f32 %v3062_v32, %v3046_v62  ;;  %v9806_v11 = vld [vmem:[#allocation9 + $0xd0] ss:$48 sps:$4 sm:$0xff]   ;;  %v9809_v21 = vld [vmem:[#allocation9 + $0xd8] ss:$48 sps:$4 sm:$0xff]   ;;  %v9856_v41 = vld [vmem:[#allocation9 + $0x3d4] ss:$48 sps:$4 sm:$0xff]  }
 0x9b9   :  { %v11034_v19 = vadd.f32 %v3058_v16, %v3048_v17  ;;  %v11038_v60 = vadd.f32 %v3054_v7, %v3047_v14  ;;  %v11062_v63 = vadd.f32 %v3062_v32, %v3049_v45  ;;  %v9803_v16 = vld [vmem:[#allocation9 + $0x78] ss:$48 sps:$4 sm:$0xff]   ;;  %v9811_v7 = vld [vmem:[#allocation9 + $0xdc] ss:$48 sps:$4 sm:$0xff]   ;;  %v9814_v17 = vld [vmem:[#allocation9 + $0x134] ss:$48 sps:$4 sm:$0xff]  }
 0x9ba   :  { %v9817_v14 = vld [vmem:[#allocation9 + $0x13c] ss:$48 sps:$4 sm:$0xff]   ;;  %v9848_v50 = vld [vmem:[#allocation9 + $0x370] ss:$48 sps:$4 sm:$0xff]   ;;  %v9851_v52 = vld [vmem:[#allocation9 + $0x378] ss:$48 sps:$4 sm:$0xff]  }
 0x9bb   :  { %v11042_v61 = vpack.c.bf16 %v11034_v19, %v11032_v12  ;;  %v11046_v23 = vpack.c.bf16 %v11038_v60, %v11036_v10  ;;  %v11068_v6 = vpack.c.bf16 %v11062_v63, %v11064_v3  ;;  %v9865_v45 = vld [vmem:[#allocation9 + $0x43c] ss:$48 sps:$4 sm:$0xff]   ;;  %v9860_v62 = vld [vmem:[#allocation9 + $0x430] ss:$48 sps:$4 sm:$0xff]   ;;  %v9863_v32 = vld [vmem:[#allocation9 + $0x438] ss:$48 sps:$4 sm:$0xff]  }
 0x9bd   :  { %4899 = vmatprep.mubr.bf16.mxu1 %v11042_v61  ;;  %4985 = vmatprep.mubr.bf16.mxu0 %v11042_v61 }
 0x9be   :  { %4900 = vmatmul.mubr.bf16.vlgmr.msra.gmra.mrb[28].mxu1 %v11046_v23  ;;  %4986 = vmatmul.mubr.bf16.vlgmr.msra.gmra.mrb[36].mxu0 %v11046_v23 }
 0x9bf   :  { %4911 = vmatpush1.bf16.msra.mxu1 %v9746_v18  ;;  %4997 = vmatpush1.bf16.msra.mxu0 %v9749_v22  ;;  %v9812_v18 = vld [vmem:[#allocation9 + $0x130] ss:$48 sps:$4 sm:$0xff]   ;;  %v9815_v22 = vld [vmem:[#allocation9 + $0x138] ss:$48 sps:$4 sm:$0xff]  }
 0x9c0   :  { %4912 = vmatprep.subr.bf16.mxu1 %v9754_v24  ;;  %4998 = vmatprep.subr.bf16.mxu0 %v9757_v25  ;;  %v9820_v24 = vld [vmem:[#allocation9 + $0x194] ss:$48 sps:$4 sm:$0xff]   ;;  %v9823_v25 = vld [vmem:[#allocation9 + $0x19c] ss:$48 sps:$4 sm:$0xff]  }
 0x9c1   :  { %4942 = vmatprep.mubr.bf16.mxu1 %v10689_v0  ;;  %5028 = vmatprep.mubr.bf16.mxu0 %v10689_v0 }
 0x9c3   :  { %4913 = vmatpush1.bf16.msra.mxu1 %v9752_v26  ;;  %4999 = vmatpush1.bf16.msra.mxu0 %v9755_v27  ;;  %v9818_v26 = vld [vmem:[#allocation9 + $0x190] ss:$48 sps:$4 sm:$0xff]   ;;  %v9821_v27 = vld [vmem:[#allocation9 + $0x198] ss:$48 sps:$4 sm:$0xff]  }
 0x9c4   :  { %4914 = vmatprep.subr.bf16.mxu1 %v9760_v28  ;;  %5000 = vmatprep.subr.bf16.mxu0 %v9763_v29  ;;  %v9826_v28 = vld [vmem:[#allocation9 + $0x1f4] ss:$48 sps:$4 sm:$0xff]   ;;  %v9829_v29 = vld [vmem:[#allocation9 + $0x1fc] ss:$48 sps:$4 sm:$0xff]  }
 0x9c7   :  { %4915 = vmatpush1.bf16.msra.mxu1 %v9758_v1  ;;  %5001 = vmatpush1.bf16.msra.mxu0 %v9761_v30  ;;  %v9824_v1 = vld [vmem:[#allocation9 + $0x1f0] ss:$48 sps:$4 sm:$0xff]   ;;  %v9827_v30 = vld [vmem:[#allocation9 + $0x1f8] ss:$48 sps:$4 sm:$0xff]  }
 0x9c8   :  { %4916 = vmatprep.subr.bf16.mxu1 %v9766_v31  ;;  %5002 = vmatprep.subr.bf16.mxu0 %v9769_v33  ;;  %v9832_v31 = vld [vmem:[#allocation9 + $0x254] ss:$48 sps:$4 sm:$0xff]   ;;  %v9835_v33 = vld [vmem:[#allocation9 + $0x25c] ss:$48 sps:$4 sm:$0xff]  }
 0x9cb   :  { %4917 = vmatpush1.bf16.msra.mxu1 %v9764_v35  ;;  %5003 = vmatpush1.bf16.msra.mxu0 %v9767_v36  ;;  %v9830_v35 = vld [vmem:[#allocation9 + $0x250] ss:$48 sps:$4 sm:$0xff]   ;;  %v9833_v36 = vld [vmem:[#allocation9 + $0x258] ss:$48 sps:$4 sm:$0xff]  }
 0x9cc   :  { %4918 = vmatprep.subr.bf16.mxu1 %v9772_v37  ;;  %5004 = vmatprep.subr.bf16.mxu0 %v9775_v38  ;;  %v9838_v37 = vld [vmem:[#allocation9 + $0x2b4] ss:$48 sps:$4 sm:$0xff]   ;;  %v9841_v38 = vld [vmem:[#allocation9 + $0x2bc] ss:$48 sps:$4 sm:$0xff]  }
 0x9cf   :  { %4919 = vmatpush1.bf16.msra.mxu1 %v9770_v49  ;;  %5005 = vmatpush1.bf16.msra.mxu0 %v9773_v39  ;;  %v9836_v49 = vld [vmem:[#allocation9 + $0x2b0] ss:$48 sps:$4 sm:$0xff]   ;;  %v9839_v39 = vld [vmem:[#allocation9 + $0x2b8] ss:$48 sps:$4 sm:$0xff]  }
 0x9d0   :  { %4920 = vmatprep.subr.bf16.mxu1 %v9778_v40  ;;  %5006 = vmatprep.subr.bf16.mxu0 %v9781_v42  ;;  %v9844_v40 = vld [vmem:[#allocation9 + $0x314] ss:$48 sps:$4 sm:$0xff]   ;;  %v9847_v42 = vld [vmem:[#allocation9 + $0x31c] ss:$48 sps:$4 sm:$0xff]  }
 0x9d3   :  { %4921 = vmatpush1.bf16.msra.mxu1 %v9776_v44  ;;  %5007 = vmatpush1.bf16.msra.mxu0 %v9779_v46  ;;  %v9842_v44 = vld [vmem:[#allocation9 + $0x310] ss:$48 sps:$4 sm:$0xff]   ;;  %v9845_v46 = vld [vmem:[#allocation9 + $0x318] ss:$48 sps:$4 sm:$0xff]  }
 0x9d4   :  { %4922 = vmatprep.subr.bf16.mxu1 %v9784_v47  ;;  %5008 = vmatprep.subr.bf16.mxu0 %v9787_v48  ;;  %v9850_v47 = vld [vmem:[#allocation9 + $0x374] ss:$48 sps:$4 sm:$0xff]   ;;  %v9853_v48 = vld [vmem:[#allocation9 + $0x37c] ss:$48 sps:$4 sm:$0xff]  }
 0x9d7   :  { %4923 = vmatpush1.bf16.msra.mxu1 %v9782_v55  ;;  %5009 = vmatpush1.bf16.msra.mxu0 %v9785_v56  ;;  %v9859_v55 = vld [vmem:[#allocation9 + $0x3dc] ss:$48 sps:$4 sm:$0xff]   ;;  %v9854_v56 = vld [vmem:[#allocation9 + $0x3d0] ss:$48 sps:$4 sm:$0xff]  }
 0x9d8   :  { %4924 = vmatprep.subr.bf16.mxu1 %v9790_v57  ;;  %5010 = vmatprep.subr.bf16.mxu0 %v9793_v59  ;;  %v9857_v57 = vld [vmem:[#allocation9 + $0x3d8] ss:$48 sps:$4 sm:$0xff]   ;;  %v9862_v59 = vld [vmem:[#allocation9 + $0x434] ss:$48 sps:$4 sm:$0xff]  }
 0x9db   :  { %4925 = vmatpush1.bf16.msra.mxu1 %v9788_v20  ;;  %5011 = vmatpush1.bf16.msra.mxu0 %v9791_v15  ;;  %v9868_v20 = vld [vmem:[#allocation9 + $0x494] ss:$48 sps:$4 sm:$0xff]   ;;  %v9871_v15 = vld [vmem:[#allocation9 + $0x49c] ss:$48 sps:$4 sm:$0xff]  }
 0x9dc   :  { %5039 = vmatprep.subr.bf16.mxu1 %v9796_v43  ;;  %5125 = vmatprep.subr.bf16.mxu0 %v9799_v4  ;;  %v9866_v43 = vld [vmem:[#allocation9 + $0x490] ss:$48 sps:$4 sm:$0xff]   ;;  %v9869_v4 = vld [vmem:[#allocation9 + $0x498] ss:$48 sps:$4 sm:$0xff]  }
 0x9de   :  { %4943 = vmatmul.mubr.bf16.vlgmr.msra.gmra.mrb[28].mxu1 %v11068_v6  ;;  %5029 = vmatmul.mubr.bf16.vlgmr.msra.gmra.mrb[36].mxu0 %v11068_v6 }
 0x9df   :  { %5040 = vmatpush1.bf16.msra.mxu1 %v9794_v5  ;;  %5071 = vmatprep.mubr.bf16.mxu1 %v11042_v61  ;;  %v9874_v5 = vld [vmem:[#allocation9 + $0x4f4] ss:$48 sps:$4 sm:$0xff]  }
 0x9e0   :  { %5126 = vmatpush1.bf16.msra.mxu0 %v9797_v2  ;;  %5157 = vmatprep.mubr.bf16.mxu0 %v11042_v61  ;;  %v9877_v2 = vld [vmem:[#allocation9 + $0x4fc] ss:$48 sps:$4 sm:$0xff]  }
 0x9e1   :  { %5041 = vmatprep.subr.bf16.mxu1 %v9802_v58  ;;  %5127 = vmatprep.subr.bf16.mxu0 %v9805_v8  ;;  %v9872_v58 = vld [vmem:[#allocation9 + $0x4f0] ss:$48 sps:$4 sm:$0xff]   ;;  %v9875_v8 = vld [vmem:[#allocation9 + $0x4f8] ss:$48 sps:$4 sm:$0xff]  }
 0x9e3   :  { %5042 = vmatpush1.bf16.msra.mxu1 %v9800_v9  ;;  %v9880_v9 = vld [vmem:[#allocation9 + $0x554] ss:$48 sps:$4 sm:$0xff]  }
 0x9e4   :  { %5128 = vmatpush1.bf16.msra.mxu0 %v9803_v16  ;;  %5043 = vmatprep.subr.bf16.mxu1 %v9808_v13  ;;  %v9883_v16 = vld [vmem:[#allocation9 + $0x55c] ss:$48 sps:$4 sm:$0xff]   ;;  %v9878_v13 = vld [vmem:[#allocation9 + $0x550] ss:$48 sps:$4 sm:$0xff]  }
 0x9e5   :  { %5129 = vmatprep.subr.bf16.mxu0 %v9811_v7  ;;  %v9881_v7 = vld [vmem:[#allocation9 + $0x558] ss:$48 sps:$4 sm:$0xff]  }
 0x9e7   :  { %5044 = vmatpush1.bf16.msra.mxu1 %v9806_v11  ;;  %v9886_v11 = vld [vmem:[#allocation9 + $0x5b4] ss:$48 sps:$4 sm:$0xff]  }
 0x9e8   :  { %5130 = vmatpush1.bf16.msra.mxu0 %v9809_v21  ;;  %5045 = vmatprep.subr.bf16.mxu1 %v9814_v17  ;;  %v9889_v21 = vld [vmem:[#allocation9 + $0x5bc] ss:$48 sps:$4 sm:$0xff]   ;;  %v9884_v17 = vld [vmem:[#allocation9 + $0x5b0] ss:$48 sps:$4 sm:$0xff]  }
 0x9e9   :  { %5131 = vmatprep.subr.bf16.mxu0 %v9817_v14  ;;  %v9887_v14 = vld [vmem:[#allocation9 + $0x5b8] ss:$48 sps:$4 sm:$0xff]  }
 0x9eb   :  { %5046 = vmatpush1.bf16.msra.mxu1 %v9812_v18  ;;  %v9892_v18 = vld [vmem:[#allocation9 + $0x614] ss:$48 sps:$4 sm:$0xff]  }
 0x9ec   :  { %5132 = vmatpush1.bf16.msra.mxu0 %v9815_v22  ;;  %5047 = vmatprep.subr.bf16.mxu1 %v9820_v24  ;;  %v9895_v22 = vld [vmem:[#allocation9 + $0x61c] ss:$48 sps:$4 sm:$0xff]   ;;  %v9890_v24 = vld [vmem:[#allocation9 + $0x610] ss:$48 sps:$4 sm:$0xff]  }
 0x9ed   :  { %5133 = vmatprep.subr.bf16.mxu0 %v9823_v25  ;;  %v9893_v25 = vld [vmem:[#allocation9 + $0x618] ss:$48 sps:$4 sm:$0xff]  }
 0x9ef   :  { %5048 = vmatpush1.bf16.msra.mxu1 %v9818_v26  ;;  %v9898_v26 = vld [vmem:[#allocation9 + $0x674] ss:$48 sps:$4 sm:$0xff]  }
 0x9f0   :  { %5134 = vmatpush1.bf16.msra.mxu0 %v9821_v27  ;;  %5049 = vmatprep.subr.bf16.mxu1 %v9826_v28  ;;  %v9901_v27 = vld [vmem:[#allocation9 + $0x67c] ss:$48 sps:$4 sm:$0xff]   ;;  %v9896_v28 = vld [vmem:[#allocation9 + $0x670] ss:$48 sps:$4 sm:$0xff]  }
 0x9f1   :  { %5135 = vmatprep.subr.bf16.mxu0 %v9829_v29  ;;  %v9899_v29 = vld [vmem:[#allocation9 + $0x678] ss:$48 sps:$4 sm:$0xff]  }
 0x9f3   :  { %5050 = vmatpush1.bf16.msra.mxu1 %v9824_v1  ;;  %v9904_v1 = vld [vmem:[#allocation9 + $0x6d4] ss:$48 sps:$4 sm:$0xff]  }
 0x9f4   :  { %5136 = vmatpush1.bf16.msra.mxu0 %v9827_v30  ;;  %5051 = vmatprep.subr.bf16.mxu1 %v9832_v31  ;;  %v9907_v30 = vld [vmem:[#allocation9 + $0x6dc] ss:$48 sps:$4 sm:$0xff]   ;;  %v9902_v31 = vld [vmem:[#allocation9 + $0x6d0] ss:$48 sps:$4 sm:$0xff]  }
 0x9f5   :  { %5137 = vmatprep.subr.bf16.mxu0 %v9835_v33  ;;  %v9905_v33 = vld [vmem:[#allocation9 + $0x6d8] ss:$48 sps:$4 sm:$0xff]  }
 0x9f7   :  { %5052 = vmatpush1.bf16.msra.mxu1 %v9830_v35  ;;  %v9910_v35 = vld [vmem:[#allocation9 + $0x734] ss:$48 sps:$4 sm:$0xff]  }
 0x9f8   :  { %5138 = vmatpush1.bf16.msra.mxu0 %v9833_v36  ;;  %5053 = vmatprep.subr.bf16.mxu1 %v9838_v37  ;;  %v9913_v36 = vld [vmem:[#allocation9 + $0x73c] ss:$48 sps:$4 sm:$0xff]   ;;  %v9908_v37 = vld [vmem:[#allocation9 + $0x730] ss:$48 sps:$4 sm:$0xff]  }
 0x9f9   :  { %5139 = vmatprep.subr.bf16.mxu0 %v9841_v38  ;;  %v9911_v38 = vld [vmem:[#allocation9 + $0x738] ss:$48 sps:$4 sm:$0xff]  }
 0x9fb   :  { %5054 = vmatpush1.bf16.msra.mxu1 %v9836_v49  ;;  %v9916_v49 = vld [vmem:[#allocation9 + $0x794] ss:$48 sps:$4 sm:$0xff]  }
 0x9fc   :  { %5140 = vmatpush1.bf16.msra.mxu0 %v9839_v39  ;;  %5055 = vmatprep.subr.bf16.mxu1 %v9844_v40  ;;  %v9919_v39 = vld [vmem:[#allocation9 + $0x79c] ss:$48 sps:$4 sm:$0xff]   ;;  %v9914_v40 = vld [vmem:[#allocation9 + $0x790] ss:$48 sps:$4 sm:$0xff]  }
 0x9fd   :  { %5141 = vmatprep.subr.bf16.mxu0 %v9847_v42  ;;  %v9917_v42 = vld [vmem:[#allocation9 + $0x798] ss:$48 sps:$4 sm:$0xff]  }
 0x9ff   :  { %5056 = vmatpush1.bf16.msra.mxu1 %v9842_v44  ;;  %v9922_v44 = vld [vmem:[#allocation9 + $0x7f4] ss:$48 sps:$4 sm:$0xff]  }
 0xa00   :  { %5142 = vmatpush1.bf16.msra.mxu0 %v9845_v46  ;;  %5057 = vmatprep.subr.bf16.mxu1 %v9850_v47  ;;  %v9925_v46 = vld [vmem:[#allocation9 + $0x7fc] ss:$48 sps:$4 sm:$0xff]   ;;  %v9920_v47 = vld [vmem:[#allocation9 + $0x7f0] ss:$48 sps:$4 sm:$0xff]  }
 0xa01   :  { %5143 = vmatprep.subr.bf16.mxu0 %v9853_v48  ;;  %v9923_v48 = vld [vmem:[#allocation9 + $0x7f8] ss:$48 sps:$4 sm:$0xff]  }
 0xa03   :  { %5058 = vmatpush1.bf16.msra.mxu1 %v9848_v50  ;;  %v9928_v50 = vld [vmem:[#allocation9 + $0x854] ss:$48 sps:$4 sm:$0xff]  }
 0xa04   :  { %5144 = vmatpush1.bf16.msra.mxu0 %v9851_v52  ;;  %5059 = vmatprep.subr.bf16.mxu1 %v9856_v41  ;;  %v9931_v52 = vld [vmem:[#allocation9 + $0x85c] ss:$48 sps:$4 sm:$0xff]   ;;  %v9926_v41 = vld [vmem:[#allocation9 + $0x850] ss:$48 sps:$4 sm:$0xff]  }
 0xa05   :  { %5145 = vmatprep.subr.bf16.mxu0 %v9859_v55  ;;  %v9929_v55 = vld [vmem:[#allocation9 + $0x858] ss:$48 sps:$4 sm:$0xff]  }
 0xa07   :  { %5060 = vmatpush1.bf16.msra.mxu1 %v9854_v56  ;;  %v9934_v56 = vld [vmem:[#allocation9 + $0x8b4] ss:$48 sps:$4 sm:$0xff]  }
 0xa08   :  { %5146 = vmatpush1.bf16.msra.mxu0 %v9857_v57  ;;  %5061 = vmatprep.subr.bf16.mxu1 %v9862_v59  ;;  %v9937_v57 = vld [vmem:[#allocation9 + $0x8bc] ss:$48 sps:$4 sm:$0xff]   ;;  %v9932_v59 = vld [vmem:[#allocation9 + $0x8b0] ss:$48 sps:$4 sm:$0xff]  }
 0xa09   :  { %5147 = vmatprep.subr.bf16.mxu0 %v9865_v45  ;;  %v9935_v45 = vld [vmem:[#allocation9 + $0x8b8] ss:$48 sps:$4 sm:$0xff]  }
 0xa0b   :  { %5062 = vmatpush1.bf16.msra.mxu1 %v9860_v62  ;;  %v9940_v62 = vld [vmem:[#allocation9 + $0x24] ss:$48 sps:$4 sm:$0xff]  }
 0xa0c   :  { %5148 = vmatpush1.bf16.msra.mxu0 %v9863_v32  ;;  %5063 = vmatprep.subr.bf16.mxu1 %v9868_v20  ;;  %v9943_v32 = vld [vmem:[#allocation9 + $0x2c] ss:$48 sps:$4 sm:$0xff]   ;;  %v9938_v20 = vld [vmem:[#allocation9 + $0x20] ss:$48 sps:$4 sm:$0xff]  }
 0xa0d   :  { %5149 = vmatprep.subr.bf16.mxu0 %v9871_v15  ;;  %v9941_v15 = vld [vmem:[#allocation9 + $0x28] ss:$48 sps:$4 sm:$0xff]  }
 0xa0f   :  { %5064 = vmatpush1.bf16.msra.mxu1 %v9866_v43  ;;  %v9946_v43 = vld [vmem:[#allocation9 + $0x84] ss:$48 sps:$4 sm:$0xff]  }
 0xa10   :  { %5150 = vmatpush1.bf16.msra.mxu0 %v9869_v4  ;;  %5065 = vmatprep.subr.bf16.mxu1 %v9874_v5  ;;  %v9949_v4 = vld [vmem:[#allocation9 + $0x8c] ss:$48 sps:$4 sm:$0xff]   ;;  %v9944_v5 = vld [vmem:[#allocation9 + $0x80] ss:$48 sps:$4 sm:$0xff]  }
 0xa11   :  { %5151 = vmatprep.subr.bf16.mxu0 %v9877_v2  ;;  %v9947_v2 = vld [vmem:[#allocation9 + $0x88] ss:$48 sps:$4 sm:$0xff]  }
 0xa13   :  { %5066 = vmatpush1.bf16.msra.mxu1 %v9872_v58  ;;  %v9952_v58 = vld [vmem:[#allocation9 + $0xe4] ss:$48 sps:$4 sm:$0xff]  }
 0xa14   :  { %5152 = vmatpush1.bf16.msra.mxu0 %v9875_v8  ;;  %5067 = vmatprep.subr.bf16.mxu1 %v9880_v9  ;;  %v9955_v8 = vld [vmem:[#allocation9 + $0xec] ss:$48 sps:$4 sm:$0xff]   ;;  %v9950_v9 = vld [vmem:[#allocation9 + $0xe0] ss:$48 sps:$4 sm:$0xff]  }
 0xa15   :  { %5153 = vmatprep.subr.bf16.mxu0 %v9883_v16  ;;  %v9953_v16 = vld [vmem:[#allocation9 + $0xe8] ss:$48 sps:$4 sm:$0xff]  }
 0xa17   :  { %5068 = vmatpush1.bf16.msra.mxu1 %v9878_v13  ;;  %v9958_v13 = vld [vmem:[#allocation9 + $0x144] ss:$48 sps:$4 sm:$0xff]  }
 0xa18   :  { %5154 = vmatpush1.bf16.msra.mxu0 %v9881_v7  ;;  %5069 = vmatprep.subr.bf16.mxu1 %v9886_v11  ;;  %v9961_v7 = vld [vmem:[#allocation9 + $0x14c] ss:$48 sps:$4 sm:$0xff]   ;;  %v9956_v11 = vld [vmem:[#allocation9 + $0x140] ss:$48 sps:$4 sm:$0xff]  }
 0xa19   :  { %5155 = vmatprep.subr.bf16.mxu0 %v9889_v21  ;;  %v9959_v21 = vld [vmem:[#allocation9 + $0x148] ss:$48 sps:$4 sm:$0xff]  }
 0xa1b   :  { %5070 = vmatpush1.bf16.msra.mxu1 %v9884_v17  ;;  %v9964_v17 = vld [vmem:[#allocation9 + $0x1a4] ss:$48 sps:$4 sm:$0xff]  }
 0xa1c   :  { %5156 = vmatpush1.bf16.msra.mxu0 %v9887_v14  ;;  %5082 = vmatprep.subr.bf16.mxu1 %v9892_v18  ;;  %v9967_v14 = vld [vmem:[#allocation9 + $0x1ac] ss:$48 sps:$4 sm:$0xff]   ;;  %v9965_v18 = vld [vmem:[#allocation9 + $0x1a8] ss:$48 sps:$4 sm:$0xff]  }
 0xa1d   :  { %5168 = vmatprep.subr.bf16.mxu0 %v9895_v22  ;;  %v9970_v22 = vld [vmem:[#allocation9 + $0x204] ss:$48 sps:$4 sm:$0xff]  }
 0xa1e   :  { %5072 = vmatmul.mubr.bf16.vlgmr.msra.gmra.mrb[32].mxu1 %v11046_v23 }
 0xa1f   :  { %5158 = vmatmul.mubr.bf16.vlgmr.msra.gmra.mrb[40].mxu0 %v11046_v23  ;;  %5083 = vmatpush1.bf16.msra.mxu1 %v9890_v24  ;;  %v9973_v24 = vld [vmem:[#allocation9 + $0x20c] ss:$48 sps:$4 sm:$0xff]  }
 0xa20   :  { %5169 = vmatpush1.bf16.msra.mxu0 %v9893_v25  ;;  %5084 = vmatprep.subr.bf16.mxu1 %v9898_v26  ;;  %v9968_v25 = vld [vmem:[#allocation9 + $0x200] ss:$48 sps:$4 sm:$0xff]   ;;  %v9971_v26 = vld [vmem:[#allocation9 + $0x208] ss:$48 sps:$4 sm:$0xff]  }
 0xa21   :  { %5170 = vmatprep.subr.bf16.mxu0 %v9901_v27  ;;  %5114 = vmatprep.mubr.bf16.mxu1 %v10689_v0  ;;  %v9976_v27 = vld [vmem:[#allocation9 + $0x264] ss:$48 sps:$4 sm:$0xff]  }
 0xa22   :  { %5200 = vmatprep.mubr.bf16.mxu0 %v10689_v0 }
 0xa23   :  { %5085 = vmatpush1.bf16.msra.mxu1 %v9896_v28  ;;  %v9979_v28 = vld [vmem:[#allocation9 + $0x26c] ss:$48 sps:$4 sm:$0xff]  }
 0xa24   :  { %5171 = vmatpush1.bf16.msra.mxu0 %v9899_v29  ;;  %5086 = vmatprep.subr.bf16.mxu1 %v9904_v1  ;;  %v9974_v29 = vld [vmem:[#allocation9 + $0x260] ss:$48 sps:$4 sm:$0xff]   ;;  %v9977_v1 = vld [vmem:[#allocation9 + $0x268] ss:$48 sps:$4 sm:$0xff]  }
 0xa25   :  { %5172 = vmatprep.subr.bf16.mxu0 %v9907_v30  ;;  %v9982_v30 = vld [vmem:[#allocation9 + $0x2c4] ss:$48 sps:$4 sm:$0xff]  }
 0xa27   :  { %5087 = vmatpush1.bf16.msra.mxu1 %v9902_v31  ;;  %v9985_v31 = vld [vmem:[#allocation9 + $0x2cc] ss:$48 sps:$4 sm:$0xff]  }
 0xa28   :  { %5173 = vmatpush1.bf16.msra.mxu0 %v9905_v33  ;;  %5088 = vmatprep.subr.bf16.mxu1 %v9910_v35  ;;  %v9980_v33 = vld [vmem:[#allocation9 + $0x2c0] ss:$48 sps:$4 sm:$0xff]   ;;  %v9983_v35 = vld [vmem:[#allocation9 + $0x2c8] ss:$48 sps:$4 sm:$0xff]  }
 0xa29   :  { %5174 = vmatprep.subr.bf16.mxu0 %v9913_v36  ;;  %v9988_v36 = vld [vmem:[#allocation9 + $0x324] ss:$48 sps:$4 sm:$0xff]  }
 0xa2b   :  { %5089 = vmatpush1.bf16.msra.mxu1 %v9908_v37  ;;  %v9991_v37 = vld [vmem:[#allocation9 + $0x32c] ss:$48 sps:$4 sm:$0xff]  }
 0xa2c   :  { %5175 = vmatpush1.bf16.msra.mxu0 %v9911_v38  ;;  %5090 = vmatprep.subr.bf16.mxu1 %v9916_v49  ;;  %v9986_v38 = vld [vmem:[#allocation9 + $0x320] ss:$48 sps:$4 sm:$0xff]   ;;  %v9989_v49 = vld [vmem:[#allocation9 + $0x328] ss:$48 sps:$4 sm:$0xff]  }
 0xa2d   :  { %5176 = vmatprep.subr.bf16.mxu0 %v9919_v39  ;;  %v9994_v39 = vld [vmem:[#allocation9 + $0x384] ss:$48 sps:$4 sm:$0xff]  }
 0xa2f   :  { %5091 = vmatpush1.bf16.msra.mxu1 %v9914_v40  ;;  %v9997_v40 = vld [vmem:[#allocation9 + $0x38c] ss:$48 sps:$4 sm:$0xff]  }
 0xa30   :  { %5177 = vmatpush1.bf16.msra.mxu0 %v9917_v42  ;;  %5092 = vmatprep.subr.bf16.mxu1 %v9922_v44  ;;  %v9992_v42 = vld [vmem:[#allocation9 + $0x380] ss:$48 sps:$4 sm:$0xff]   ;;  %v9995_v44 = vld [vmem:[#allocation9 + $0x388] ss:$48 sps:$4 sm:$0xff]  }
 0xa31   :  { %5178 = vmatprep.subr.bf16.mxu0 %v9925_v46  ;;  %v10000_v46 = vld [vmem:[#allocation9 + $0x3e4] ss:$48 sps:$4 sm:$0xff]  }
 0xa33   :  { %5093 = vmatpush1.bf16.msra.mxu1 %v9920_v47  ;;  %v10003_v47 = vld [vmem:[#allocation9 + $0x3ec] ss:$48 sps:$4 sm:$0xff]  }
 0xa34   :  { %5179 = vmatpush1.bf16.msra.mxu0 %v9923_v48  ;;  %5094 = vmatprep.subr.bf16.mxu1 %v9928_v50  ;;  %v9998_v48 = vld [vmem:[#allocation9 + $0x3e0] ss:$48 sps:$4 sm:$0xff]   ;;  %v10001_v50 = vld [vmem:[#allocation9 + $0x3e8] ss:$48 sps:$4 sm:$0xff]  }
 0xa35   :  { %5180 = vmatprep.subr.bf16.mxu0 %v9931_v52  ;;  %v10006_v52 = vld [vmem:[#allocation9 + $0x444] ss:$48 sps:$4 sm:$0xff]  }
 0xa37   :  { %5095 = vmatpush1.bf16.msra.mxu1 %v9926_v41  ;;  %v10009_v41 = vld [vmem:[#allocation9 + $0x44c] ss:$48 sps:$4 sm:$0xff]  }
 0xa38   :  { %5181 = vmatpush1.bf16.msra.mxu0 %v9929_v55  ;;  %5096 = vmatprep.subr.bf16.mxu1 %v9934_v56  ;;  %v10004_v55 = vld [vmem:[#allocation9 + $0x440] ss:$48 sps:$4 sm:$0xff]   ;;  %v10007_v56 = vld [vmem:[#allocation9 + $0x448] ss:$48 sps:$4 sm:$0xff]  }
 0xa39   :  { %5182 = vmatprep.subr.bf16.mxu0 %v9937_v57  ;;  %v10012_v57 = vld [vmem:[#allocation9 + $0x4a4] ss:$48 sps:$4 sm:$0xff]  }
 0xa3b   :  { %5097 = vmatpush1.bf16.msra.mxu1 %v9932_v59  ;;  %v10015_v59 = vld [vmem:[#allocation9 + $0x4ac] ss:$48 sps:$4 sm:$0xff]  }
 0xa3c   :  { %5183 = vmatpush1.bf16.msra.mxu0 %v9935_v45  ;;  %5211 = vmatprep.subr.bf16.mxu1 %v9940_v62  ;;  %v10010_v45 = vld [vmem:[#allocation9 + $0x4a0] ss:$48 sps:$4 sm:$0xff]   ;;  %v10013_v62 = vld [vmem:[#allocation9 + $0x4a8] ss:$48 sps:$4 sm:$0xff]  }
 0xa3d   :  { %5297 = vmatprep.subr.bf16.mxu0 %v9943_v32  ;;  %v10018_v32 = vld [vmem:[#allocation9 + $0x504] ss:$48 sps:$4 sm:$0xff]  }
 0xa3e   :  { %5115 = vmatmul.mubr.bf16.vlgmr.msra.gmra.mrb[32].mxu1 %v11068_v6 }
 0xa3f   :  { %5201 = vmatmul.mubr.bf16.vlgmr.msra.gmra.mrb[40].mxu0 %v11068_v6  ;;  %5212 = vmatpush1.bf16.msra.mxu1 %v9938_v20  ;;  %v10021_v20 = vld [vmem:[#allocation9 + $0x50c] ss:$48 sps:$4 sm:$0xff]  }
 0xa40   :  { %5243 = vmatprep.mubr.bf16.mxu1 %v11042_v61  ;;  %5298 = vmatpush1.bf16.msra.mxu0 %v9941_v15  ;;  %v10016_v15 = vld [vmem:[#allocation9 + $0x500] ss:$48 sps:$4 sm:$0xff]  }
 0xa41   :  { %5329 = vmatprep.mubr.bf16.mxu0 %v11042_v61  ;;  %5213 = vmatprep.subr.bf16.mxu1 %v9946_v43  ;;  %v9962_v61 = vld [vmem:[#allocation9 + $0x1a0] ss:$48 sps:$4 sm:$0xff]   ;;  %v10019_v43 = vld [vmem:[#allocation9 + $0x508] ss:$48 sps:$4 sm:$0xff]  }
 0xa42   :  { %5299 = vmatprep.subr.bf16.mxu0 %v9949_v4  ;;  %v10024_v4 = vld [vmem:[#allocation9 + $0x564] ss:$48 sps:$4 sm:$0xff]  }
 0xa43   :  { %5214 = vmatpush1.bf16.msra.mxu1 %v9944_v5  ;;  %v10027_v5 = vld [vmem:[#allocation9 + $0x56c] ss:$48 sps:$4 sm:$0xff]  }
 0xa44   :  { %5300 = vmatpush1.bf16.msra.mxu0 %v9947_v2  ;;  %5215 = vmatprep.subr.bf16.mxu1 %v9952_v58  ;;  %v10022_v2 = vld [vmem:[#allocation9 + $0x560] ss:$48 sps:$4 sm:$0xff]   ;;  %v10025_v58 = vld [vmem:[#allocation9 + $0x568] ss:$48 sps:$4 sm:$0xff]  }
 0xa45   :  { %5301 = vmatprep.subr.bf16.mxu0 %v9955_v8  ;;  %v10030_v8 = vld [vmem:[#allocation9 + $0x5c4] ss:$48 sps:$4 sm:$0xff]  }
 0xa47   :  { %5216 = vmatpush1.bf16.msra.mxu1 %v9950_v9  ;;  %v10033_v9 = vld [vmem:[#allocation9 + $0x5cc] ss:$48 sps:$4 sm:$0xff]  }
 0xa48   :  { %5302 = vmatpush1.bf16.msra.mxu0 %v9953_v16  ;;  %5217 = vmatprep.subr.bf16.mxu1 %v9958_v13  ;;  %v10028_v16 = vld [vmem:[#allocation9 + $0x5c0] ss:$48 sps:$4 sm:$0xff]   ;;  %v10031_v13 = vld [vmem:[#allocation9 + $0x5c8] ss:$48 sps:$4 sm:$0xff]  }
 0xa49   :  { %5303 = vmatprep.subr.bf16.mxu0 %v9961_v7  ;;  %v10036_v7 = vld [vmem:[#allocation9 + $0x624] ss:$48 sps:$4 sm:$0xff]  }
 0xa4b   :  { %5218 = vmatpush1.bf16.msra.mxu1 %v9956_v11  ;;  %v10039_v11 = vld [vmem:[#allocation9 + $0x62c] ss:$48 sps:$4 sm:$0xff]  }
 0xa4c   :  { %5304 = vmatpush1.bf16.msra.mxu0 %v9959_v21  ;;  %5219 = vmatprep.subr.bf16.mxu1 %v9964_v17  ;;  %v10034_v21 = vld [vmem:[#allocation9 + $0x620] ss:$48 sps:$4 sm:$0xff]   ;;  %v10037_v17 = vld [vmem:[#allocation9 + $0x628] ss:$48 sps:$4 sm:$0xff]  }
 0xa4d   :  { %5305 = vmatprep.subr.bf16.mxu0 %v9967_v14  ;;  %v10042_v14 = vld [vmem:[#allocation9 + $0x684] ss:$48 sps:$4 sm:$0xff]  }
 0xa4f   :  { %5220 = vmatpush1.bf16.msra.mxu1 %v9962_v61  ;;  %v10045_v61 = vld [vmem:[#allocation9 + $0x68c] ss:$48 sps:$4 sm:$0xff]  }
 0xa50   :  { %5306 = vmatpush1.bf16.msra.mxu0 %v9965_v18  ;;  %5221 = vmatprep.subr.bf16.mxu1 %v9970_v22  ;;  %v10040_v18 = vld [vmem:[#allocation9 + $0x680] ss:$48 sps:$4 sm:$0xff]   ;;  %v10043_v22 = vld [vmem:[#allocation9 + $0x688] ss:$48 sps:$4 sm:$0xff]  }
 0xa51   :  { %5307 = vmatprep.subr.bf16.mxu0 %v9973_v24  ;;  %v10048_v24 = vld [vmem:[#allocation9 + $0x6e4] ss:$48 sps:$4 sm:$0xff]  }
 0xa53   :  { %5222 = vmatpush1.bf16.msra.mxu1 %v9968_v25  ;;  %v10051_v25 = vld [vmem:[#allocation9 + $0x6ec] ss:$48 sps:$4 sm:$0xff]  }
 0xa54   :  { %5308 = vmatpush1.bf16.msra.mxu0 %v9971_v26  ;;  %5223 = vmatprep.subr.bf16.mxu1 %v9976_v27  ;;  %v10046_v26 = vld [vmem:[#allocation9 + $0x6e0] ss:$48 sps:$4 sm:$0xff]   ;;  %v10049_v27 = vld [vmem:[#allocation9 + $0x6e8] ss:$48 sps:$4 sm:$0xff]  }
 0xa55   :  { %5309 = vmatprep.subr.bf16.mxu0 %v9979_v28  ;;  %v10054_v28 = vld [vmem:[#allocation9 + $0x744] ss:$48 sps:$4 sm:$0xff]  }
 0xa57   :  { %5224 = vmatpush1.bf16.msra.mxu1 %v9974_v29  ;;  %v10052_v29 = vld [vmem:[#allocation9 + $0x740] ss:$48 sps:$4 sm:$0xff]  }
 0xa58   :  { %5310 = vmatpush1.bf16.msra.mxu0 %v9977_v1  ;;  %5225 = vmatprep.subr.bf16.mxu1 %v9982_v30  ;;  %v10055_v1 = vld [vmem:[#allocation9 + $0x748] ss:$48 sps:$4 sm:$0xff]   ;;  %v10060_v30 = vld [vmem:[#allocation9 + $0x7a4] ss:$48 sps:$4 sm:$0xff]  }
 0xa59   :  { %5311 = vmatprep.subr.bf16.mxu0 %v9985_v31  ;;  %v10063_v31 = vld [vmem:[#allocation9 + $0x7ac] ss:$48 sps:$4 sm:$0xff]  }
 0xa5b   :  { %5226 = vmatpush1.bf16.msra.mxu1 %v9980_v33  ;;  %v10058_v33 = vld [vmem:[#allocation9 + $0x7a0] ss:$48 sps:$4 sm:$0xff]  }
 0xa5c   :  { %5312 = vmatpush1.bf16.msra.mxu0 %v9983_v35  ;;  %5227 = vmatprep.subr.bf16.mxu1 %v9988_v36  ;;  %v10066_v35 = vld [vmem:[#allocation9 + $0x804] ss:$48 sps:$4 sm:$0xff]   ;;  %v10069_v36 = vld [vmem:[#allocation9 + $0x80c] ss:$48 sps:$4 sm:$0xff]  }
 0xa5d   :  { %5313 = vmatprep.subr.bf16.mxu0 %v9991_v37  ;;  %v10064_v37 = vld [vmem:[#allocation9 + $0x800] ss:$48 sps:$4 sm:$0xff]  }
 0xa5f   :  { %5228 = vmatpush1.bf16.msra.mxu1 %v9986_v38  ;;  %v10067_v38 = vld [vmem:[#allocation9 + $0x808] ss:$48 sps:$4 sm:$0xff]  }
 0xa60   :  { %5314 = vmatpush1.bf16.msra.mxu0 %v9989_v49  ;;  %5229 = vmatprep.subr.bf16.mxu1 %v9994_v39  ;;  %v10072_v49 = vld [vmem:[#allocation9 + $0x864] ss:$48 sps:$4 sm:$0xff]   ;;  %v10075_v39 = vld [vmem:[#allocation9 + $0x86c] ss:$48 sps:$4 sm:$0xff]  }
 0xa61   :  { %5315 = vmatprep.subr.bf16.mxu0 %v9997_v40  ;;  %v10070_v40 = vld [vmem:[#allocation9 + $0x860] ss:$48 sps:$4 sm:$0xff]  }
 0xa63   :  { %5230 = vmatpush1.bf16.msra.mxu1 %v9992_v42  ;;  %v10073_v42 = vld [vmem:[#allocation9 + $0x868] ss:$48 sps:$4 sm:$0xff]  }
 0xa64   :  { %5316 = vmatpush1.bf16.msra.mxu0 %v9995_v44  ;;  %5231 = vmatprep.subr.bf16.mxu1 %v10000_v46  ;;  %v10078_v44 = vld [vmem:[#allocation9 + $0x8c4] ss:$48 sps:$4 sm:$0xff]   ;;  %v10081_v46 = vld [vmem:[#allocation9 + $0x8cc] ss:$48 sps:$4 sm:$0xff]  }
 0xa65   :  { %5317 = vmatprep.subr.bf16.mxu0 %v10003_v47  ;;  %v10076_v47 = vld [vmem:[#allocation9 + $0x8c0] ss:$48 sps:$4 sm:$0xff]  }
 0xa67   :  { %5232 = vmatpush1.bf16.msra.mxu1 %v9998_v48  ;;  %v10079_v48 = vld [vmem:[#allocation9 + $0x8c8] ss:$48 sps:$4 sm:$0xff]  }
 0xa68   :  { %5318 = vmatpush1.bf16.msra.mxu0 %v10001_v50  ;;  %5233 = vmatprep.subr.bf16.mxu1 %v10006_v52  ;;  %v10084_v50 = vld [vmem:[#allocation11 + $0x4] ss:$12 sps:$4 sm:$0xff]   ;;  %v10085_v52 = vld [vmem:[#allocation11 + $0xc8] ss:$12 sps:$4 sm:$0xff]  }
 0xa69   :  { %5319 = vmatprep.subr.bf16.mxu0 %v10009_v41  ;;  %v10082_v41 = vld [vmem:[#allocation11] ss:$12 sps:$4 sm:$0xff]  }
 0xa6b   :  { %5234 = vmatpush1.bf16.msra.mxu1 %v10004_v55  ;;  %v10086_v55 = vld [vmem:[#allocation11 + $0x8] ss:$12 sps:$4 sm:$0xff]  }
 0xa6c   :  { %5320 = vmatpush1.bf16.msra.mxu0 %v10007_v56  ;;  %5235 = vmatprep.subr.bf16.mxu1 %v10012_v57  ;;  %v10089_v56 = vld [vmem:[#allocation11 + $0x1c] ss:$12 sps:$4 sm:$0xff]   ;;  %v10090_v57 = vld [vmem:[#allocation11 + $0xe0] ss:$12 sps:$4 sm:$0xff]  }
 0xa6d   :  { %5321 = vmatprep.subr.bf16.mxu0 %v10015_v59  ;;  %v10087_v59 = vld [vmem:[#allocation11 + $0x18] ss:$12 sps:$4 sm:$0xff]  }
 0xa6f   :  { %5236 = vmatpush1.bf16.msra.mxu1 %v10010_v45  ;;  %v10091_v45 = vld [vmem:[#allocation11 + $0x20] ss:$12 sps:$4 sm:$0xff]  }
 0xa70   :  { %5322 = vmatpush1.bf16.msra.mxu0 %v10013_v62  ;;  %5237 = vmatprep.subr.bf16.mxu1 %v10018_v32  ;;  %v10094_v62 = vld [vmem:[#allocation11 + $0x34] ss:$12 sps:$4 sm:$0xff]   ;;  %v10095_v32 = vld [vmem:[#allocation11 + $0xf8] ss:$12 sps:$4 sm:$0xff]  }
 0xa71   :  { %5323 = vmatprep.subr.bf16.mxu0 %v10021_v20  ;;  %v10092_v20 = vld [vmem:[#allocation11 + $0x30] ss:$12 sps:$4 sm:$0xff]  }
 0xa73   :  { %5238 = vmatpush1.bf16.msra.mxu1 %v10016_v15  ;;  %v10096_v15 = vld [vmem:[#allocation11 + $0x38] ss:$12 sps:$4 sm:$0xff]  }
 0xa74   :  { %5324 = vmatpush1.bf16.msra.mxu0 %v10019_v43  ;;  %5239 = vmatprep.subr.bf16.mxu1 %v10024_v4  ;;  %v10099_v43 = vld [vmem:[#allocation11 + $0x4c] ss:$12 sps:$4 sm:$0xff]   ;;  %v10100_v4 = vld [vmem:[#allocation11 + $0x110] ss:$12 sps:$4 sm:$0xff]  }
 0xa75   :  { %5325 = vmatprep.subr.bf16.mxu0 %v10027_v5  ;;  %v10097_v5 = vld [vmem:[#allocation11 + $0x48] ss:$12 sps:$4 sm:$0xff]  }
 0xa77   :  { %5240 = vmatpush1.bf16.msra.mxu1 %v10022_v2  ;;  %v10104_v2 = vld [vmem:[#allocation11 + $0x64] ss:$12 sps:$4 sm:$0xff]  }
 0xa78   :  { %5326 = vmatpush1.bf16.msra.mxu0 %v10025_v58  ;;  %5241 = vmatprep.subr.bf16.mxu1 %v10030_v8  ;;  %v10105_v58 = vld [vmem:[#allocation11 + $0x128] ss:$12 sps:$4 sm:$0xff]   ;;  %v10102_v8 = vld [vmem:[#allocation11 + $0x60] ss:$12 sps:$4 sm:$0xff]  }
 0xa79   :  { %5327 = vmatprep.subr.bf16.mxu0 %v10033_v9  ;;  %v11088_v9 = vld [vmem:[#allocation12] sm:$0xff] }
 0xa7b   :  { %5242 = vmatpush1.bf16.msra.mxu1 %v10028_v16  ;;  %v3381_v16 = vsub.s32 3, %v10889_v34 }
 0xa7c   :  { %5328 = vmatpush1.bf16.msra.mxu0 %v10031_v13  ;;  %5254 = vmatprep.subr.bf16.mxu1 %v10036_v7  ;;  %v10106_v13 = vld [vmem:[#allocation11 + $0x68] ss:$12 sps:$4 sm:$0xff]  }
 0xa7d   :  { %5340 = vmatprep.subr.bf16.mxu0 %v10039_v11  ;;  %v10109_v7 = vld [vmem:[#allocation11 + $0x7c] ss:$12 sps:$4 sm:$0xff]   ;;  %v10110_v11 = vld [vmem:[#allocation11 + $0x140] ss:$12 sps:$4 sm:$0xff]  }
 0xa7e   :  { %5244 = vmatmul.mubr.bf16.vlgmr.msra.gmra.mrb[36].mxu1 %v11046_v23 }
 0xa7f   :  { %5330 = vmatmul.mubr.bf16.vlgmr.msra.gmra.mrb[44].mxu0 %v11046_v23  ;;  %5255 = vmatpush1.bf16.msra.mxu1 %v10034_v21  ;;  %v10057_v23 = vld [vmem:[#allocation9 + $0x74c] ss:$48 sps:$4 sm:$0xff]   ;;  %v3370_v21 = vrot.slane %v11088_v9, %v10952_v53 }
 0xa80   :  { %5341 = vmatpush1.bf16.msra.mxu0 %v10037_v17  ;;  %5256 = vmatprep.subr.bf16.mxu1 %v10042_v14  ;;  %v3378_v17 = vrot.slane %v11088_v9, %v10949_v51  ;;  %v3374_v14 = vrot.slane %v11088_v9, %v10955_v54 }
 0xa81   :  { %5342 = vmatprep.subr.bf16.mxu0 %v10045_v61  ;;  %5286 = vmatprep.mubr.bf16.mxu1 %v10689_v0  ;;  %v3382_v61 = vrot.slane %v11088_v9, %v3381_v16 }
 0xa82   :  { %5372 = vmatprep.mubr.bf16.mxu0 %v10689_v0  ;;  %v10061_v0 = vld [vmem:[#allocation9 + $0x7a8] ss:$48 sps:$4 sm:$0xff]  }
 0xa83   :  { %5257 = vmatpush1.bf16.msra.mxu1 %v10040_v18  ;;  %v10107_v18 = vld [vmem:[#allocation11 + $0x78] ss:$12 sps:$4 sm:$0xff]  }
 0xa84   :  { %5343 = vmatpush1.bf16.msra.mxu0 %v10043_v22  ;;  %5258 = vmatprep.subr.bf16.mxu1 %v10048_v24  ;;  %v10111_v22 = vld [vmem:[#allocation11 + $0x80] ss:$12 sps:$4 sm:$0xff]  }
 0xa85   :  { %5344 = vmatprep.subr.bf16.mxu0 %v10051_v25  ;;  %v10114_v24 = vld [vmem:[#allocation11 + $0x94] ss:$12 sps:$4 sm:$0xff]  }
 0xa87   :  { %5259 = vmatpush1.bf16.msra.mxu1 %v10046_v26 }
 0xa88   :  { %5345 = vmatpush1.bf16.msra.mxu0 %v10049_v27  ;;  %5260 = vmatprep.subr.bf16.mxu1 %v10054_v28  ;;  %v10115_v27 = vld [vmem:[#allocation11 + $0x158] ss:$12 sps:$4 sm:$0xff]  }
 0xa89   :  { %5346 = vmatprep.subr.bf16.mxu0 %v10057_v23 }
 0xa8b   :  { %5261 = vmatpush1.bf16.msra.mxu1 %v10052_v29 }
 0xa8c   :  { %5347 = vmatpush1.bf16.msra.mxu0 %v10055_v1  ;;  %5262 = vmatprep.subr.bf16.mxu1 %v10060_v30 }
 0xa8d   :  { %5348 = vmatprep.subr.bf16.mxu0 %v10063_v31 }
 0xa8f   :  { %5263 = vmatpush1.bf16.msra.mxu1 %v10058_v33 }
 0xa90   :  { %5349 = vmatpush1.bf16.msra.mxu0 %v10061_v0  ;;  %5264 = vmatprep.subr.bf16.mxu1 %v10066_v35  ;;  %v10112_v35 = vld [vmem:[#allocation11 + $0x90] ss:$12 sps:$4 sm:$0xff]  }
 0xa91   :  { %5350 = vmatprep.subr.bf16.mxu0 %v10069_v36 }
 0xa93   :  { %5265 = vmatpush1.bf16.msra.mxu1 %v10064_v37 }
 0xa94   :  { %5351 = vmatpush1.bf16.msra.mxu0 %v10067_v38  ;;  %5266 = vmatprep.subr.bf16.mxu1 %v10072_v49 }
 0xa95   :  { %5352 = vmatprep.subr.bf16.mxu0 %v10075_v39  ;;  %v10116_v39 = vld [vmem:[#allocation11 + $0x98] ss:$12 sps:$4 sm:$0xff]  }
 0xa97   :  { %5267 = vmatpush1.bf16.msra.mxu1 %v10070_v40  ;;  %v10119_v40 = vld [vmem:[#allocation11 + $0xac] ss:$12 sps:$4 sm:$0xff]  }
 0xa98   :  { %5353 = vmatpush1.bf16.msra.mxu0 %v10073_v42  ;;  %5268 = vmatprep.subr.bf16.mxu1 %v10078_v44 }
 0xa99   :  { %5354 = vmatprep.subr.bf16.mxu0 %v10081_v46  ;;  %v10120_v46 = vld [vmem:[#allocation11 + $0x170] ss:$12 sps:$4 sm:$0xff]  }
 0xa9b   :  { %5269 = vmatpush1.bf16.msra.mxu1 %v10076_v47 }
 0xa9c   :  { %5355 = vmatpush1.bf16.msra.mxu0 %v10079_v48  ;;  %7357 = vmatprep.subr.bf16.mxu1 %v10084_v50 }
 0xa9d   :  { %8923 = vmatprep.subr.bf16.mxu0 %v10085_v52 }
 0xa9e   :  { %5287 = vmatmul.mubr.bf16.vlgmr.msra.gmra.mrb[36].mxu1 %v11068_v6 }
 0xa9f   :  { %5373 = vmatmul.mubr.bf16.vlgmr.msra.gmra.mrb[44].mxu0 %v11068_v6  ;;  %7358 = vmatpush1.bf16.msra.mxu1 %v10082_v41  ;;  %v10101_v6 = vld [vmem:[#allocation11 + $0x50] ss:$12 sps:$4 sm:$0xff]  }
 0xaa0   :  { %8924 = vmatpush3.bf16.msra.mxu0 %v10086_v55  ;;  %7359 = vmatprep.subr.bf16.mxu1 %v10089_v56 }
 0xaa1   :  { %8925 = vmatprep.subr.bf16.mxu0 %v10090_v57 }
 0xaa3   :  { %7360 = vmatpush1.bf16.msra.mxu1 %v10087_v59  ;;  %v10117_v59 = vld [vmem:[#allocation11 + $0xa8] ss:$12 sps:$4 sm:$0xff]  }
 0xaa4   :  { %8926 = vmatpush3.bf16.msra.mxu0 %v10091_v45  ;;  %7361 = vmatprep.subr.bf16.mxu1 %v10094_v62 }
 0xaa5   :  { %8927 = vmatprep.subr.bf16.mxu0 %v10095_v32  ;;  %v10121_v32 = vld [vmem:[#allocation11 + $0xb0] ss:$12 sps:$4 sm:$0xff]  }
 0xaa7   :  { %7362 = vmatpush1.bf16.msra.mxu1 %v10092_v20 }
 0xaa8   :  { %8928 = vmatpush3.bf16.msra.mxu0 %v10096_v15  ;;  %7363 = vmatprep.subr.bf16.mxu1 %v10099_v43  ;;  %v10124_v43 = vld [vmem:[#allocation11 + $0xc4] ss:$12 sps:$4 sm:$0xff]  }
 0xaa9   :  { %8929 = vmatprep.subr.bf16.mxu0 %v10100_v4  ;;  %v10125_v4 = vld [vmem:[#allocation11 + $0x248] ss:$12 sps:$4 sm:$0xff]  }
 0xaab   :  { %7364 = vmatpush1.bf16.msra.mxu1 %v10097_v5  ;;  %v10122_v5 = vld [vmem:[#allocation11 + $0xc0] ss:$12 sps:$4 sm:$0xff]  }
 0xaac   :  { %8930 = vmatpush3.bf16.msra.mxu0 %v10101_v6  ;;  %7365 = vmatprep.subr.bf16.mxu1 %v10104_v2  ;;  %v10126_v6 = vld [vmem:[#allocation11 + $0x188] ss:$12 sps:$4 sm:$0xff]  }
 0xaad   :  { %8931 = vmatprep.subr.bf16.mxu0 %v10105_v58  ;;  %v10129_v2 = vld [vmem:[#allocation11 + $0xdc] ss:$12 sps:$4 sm:$0xff]   ;;  %v10130_v58 = vld [vmem:[#allocation11 + $0x260] ss:$12 sps:$4 sm:$0xff]  }
 0xaaf   :  { %7366 = vmatpush1.bf16.msra.mxu1 %v10102_v8  ;;  %v10127_v8 = vld [vmem:[#allocation11 + $0xd8] ss:$12 sps:$4 sm:$0xff]  }
 0xab0   :  { %8932 = vmatpush3.bf16.msra.mxu0 %v10106_v13  ;;  %7367 = vmatprep.subr.bf16.mxu1 %v10109_v7  ;;  %v10131_v13 = vld [vmem:[#allocation11 + $0x1a0] ss:$12 sps:$4 sm:$0xff]  }
 0xab1   :  { %v4944_v25 = vpop.f32.mrb[28].mxu1  ;;  %v5030_v26 = vpop.f32.mrb[36].mxu0  ;;  %8933 = vmatprep.subr.bf16.mxu0 %v10110_v11  ;;  %v10134_v7 = vld [vmem:[#allocation11 + $0xf4] ss:$12 sps:$4 sm:$0xff]   ;;  %v10135_v11 = vld [vmem:[#allocation11 + $0x278] ss:$12 sps:$4 sm:$0xff]  }
 0xab2   :  { %v9127_v28 = vadd.f32 %v4944_v25, %v3370_v21  ;;  %v9131_v23 = vadd.f32 %v5030_v26, %v3378_v17  ;;  %v4946_v29 = vpop.f32.mrb[29].mxu1  ;;  %v5032_v1 = vpop.f32.mrb[37].mxu0  ;;  %v10145_v25 = vld [vmem:[#allocation11 + $0x2a8] ss:$12 sps:$4 sm:$0xff]   ;;  %v10142_v26 = vld [vmem:[#allocation11 + $0x120] ss:$12 sps:$4 sm:$0xff]  }
 0xab3   :  { %v9128_v30 = vadd.f32 %v4946_v29, %v3374_v14  ;;  %v9132_v31 = vadd.f32 %v5032_v1, %v3382_v61  ;;  %v4948_v33 = vpop.f32.mrb[30].mxu1  ;;  %v5034_v0 = vpop.f32.mrb[38].mxu0  ;;  %7368 = vmatpush1.bf16.msra.mxu1 %v10107_v18  ;;  %v10137_v18 = vld [vmem:[#allocation11 + $0x108] ss:$12 sps:$4 sm:$0xff]   ;;  %v10147_v29 = vld [vmem:[#allocation11 + $0x138] ss:$12 sps:$4 sm:$0xff]  }
 0xab4   :  { %v9129_v36 = vadd.f32 %v4948_v33, %v3370_v21  ;;  %v9133_v37 = vadd.f32 %v5034_v0, %v3378_v17  ;;  %8934 = vmatpush3.bf16.msra.mxu0 %v10111_v22  ;;  %v4950_v38 = vpop.f32.mrb[31].mxu1  ;;  %v5036_v49 = vpop.f32.mrb[39].mxu0  ;;  %7369 = vmatprep.subr.bf16.mxu1 %v10114_v24  ;;  %v5383_v47 = vmax.f32 %v9127_v28, 0.0  ;;  %v5385_v48 = vmax.f32 %v9131_v23, 0.0  ;;  %v10132_v21 = vld [vmem:[#allocation11 + $0xf0] ss:$12 sps:$4 sm:$0xff]  }
 0xab5   :  { %v9130_v42 = vadd.f32 %v4950_v38, %v3374_v14  ;;  %v9134_v44 = vadd.f32 %v5036_v49, %v3382_v61  ;;  %8935 = vmatprep.subr.bf16.mxu0 %v10115_v27  ;;  %v5384_v41 = vmax.f32 %v9128_v30, 0.0  ;;  %v5386_v55 = vmax.f32 %v9132_v31, 0.0  ;;  %v10136_v17 = vld [vmem:[#allocation11 + $0x1b8] ss:$12 sps:$4 sm:$0xff]   ;;  %v10140_v61 = vld [vmem:[#allocation11 + $0x290] ss:$12 sps:$4 sm:$0xff]  }
 0xab6   :  { %v5395_v50 = vmax.f32 %v9129_v36, 0.0  ;;  %v5397_v52 = vmax.f32 %v9133_v37, 0.0  ;;  %v10139_v14 = vld [vmem:[#allocation11 + $0x10c] ss:$12 sps:$4 sm:$0xff]   ;;  %v10141_v22 = vld [vmem:[#allocation11 + $0x1d0] ss:$12 sps:$4 sm:$0xff]  }
 0xab7   :  { %v5396_v56 = vmax.f32 %v9130_v42, 0.0  ;;  %v5398_v57 = vmax.f32 %v9134_v44, 0.0  ;;  %7370 = vmatpush1.bf16.msra.mxu1 %v10112_v35  ;;  %v10144_v24 = vld [vmem:[#allocation11 + $0x124] ss:$12 sps:$4 sm:$0xff]   ;;  %v10146_v27 = vld [vmem:[#allocation11 + $0x1e8] ss:$12 sps:$4 sm:$0xff]  }
 0xab8   :  { %v11100_v45 = vpack.c.bf16 %v5395_v50, %v5383_v47  ;;  %v11102_v62 = vpack.c.bf16 %v5397_v52, %v5385_v48  ;;  %8936 = vmatpush3.bf16.msra.mxu0 %v10116_v39  ;;  %7371 = vmatprep.subr.bf16.mxu1 %v10119_v40  ;;  %v10149_v28 = vld [vmem:[#allocation11 + $0x13c] ss:$12 sps:$4 sm:$0xff]   ;;  %v10150_v23 = vld [vmem:[#allocation11 + $0x2c0] ss:$12 sps:$4 sm:$0xff]   ;;  %v10155_v31 = vld [vmem:[#allocation11 + $0x2d8] ss:$12 sps:$4 sm:$0xff]  }
 0xab9   :  { %v5408_v20 = vpack.c.bf16 %v5396_v56, %v5384_v41  ;;  %v11104_v15 = vpack.c.bf16 %v5398_v57, %v5386_v55  ;;  %8937 = vmatprep.subr.bf16.mxu0 %v10120_v46  ;;  %v10151_v1 = vld [vmem:[#allocation11 + $0x200] ss:$12 sps:$4 sm:$0xff]   ;;  %v10152_v33 = vld [vmem:[#allocation11 + $0x150] ss:$12 sps:$4 sm:$0xff]   ;;  %v10156_v0 = vld [vmem:[#allocation11 + $0x218] ss:$12 sps:$4 sm:$0xff]  }
 0xaba   :  { %v10154_v30 = vld [vmem:[#allocation11 + $0x154] ss:$12 sps:$4 sm:$0xff]   ;;  %v10159_v35 = vld [vmem:[#allocation11 + $0x16c] ss:$12 sps:$4 sm:$0xff]   ;;  %v10160_v36 = vld [vmem:[#allocation11 + $0x2f0] ss:$12 sps:$4 sm:$0xff]  }
 0xabb   :  { %7372 = vmatpush1.bf16.msra.mxu1 %v10117_v59  ;;  %7389 = vmatprep.mubr.bf16.mxu1 %v5408_v20  ;;  %v10157_v37 = vld [vmem:[#allocation11 + $0x168] ss:$12 sps:$4 sm:$0xff]   ;;  %v10161_v38 = vld [vmem:[#allocation11 + $0x230] ss:$12 sps:$4 sm:$0xff]   ;;  %v10162_v40 = vld [vmem:[#allocation11 + $0x180] ss:$12 sps:$4 sm:$0xff]  }
 0xabc   :  { %8938 = vmatpush3.bf16.msra.mxu0 %v10121_v32  ;;  %7647 = vmatprep.mubr.bf16.mxu0 %v5408_v20  ;;  %v10164_v49 = vld [vmem:[#allocation11 + $0x184] ss:$12 sps:$4 sm:$0xff]   ;;  %v10186_v39 = vld [vmem:[#allocation11 + $0x3c8] ss:$12 sps:$4 sm:$0xff]   ;;  %v10191_v46 = vld [vmem:[#allocation11 + $0x3e0] ss:$12 sps:$4 sm:$0xff]  }
 0xabd   :  { %7373 = vmatprep.subr.bf16.mxu1 %v10124_v43  ;;  %8945 = vmatprep.subr.bf16.mxu0 %v10125_v4  ;;  %v10167_v42 = vld [vmem:[#allocation11 + $0x19c] ss:$12 sps:$4 sm:$0xff]   ;;  %v10165_v47 = vld [vmem:[#allocation11 + $0x198] ss:$12 sps:$4 sm:$0xff]   ;;  %v10170_v48 = vld [vmem:[#allocation11 + $0x1b4] ss:$12 sps:$4 sm:$0xff]  }
 0xabe   :  { %v10187_v44 = vld [vmem:[#allocation11 + $0x308] ss:$12 sps:$4 sm:$0xff]   ;;  %v10192_v50 = vld [vmem:[#allocation11 + $0x320] ss:$12 sps:$4 sm:$0xff]   ;;  %v10196_v52 = vld [vmem:[#allocation11 + $0x3f8] ss:$12 sps:$4 sm:$0xff]  }
 0xabf   :  { %7648 = vmatmul.mubr.bf16.vlgmr.msra.gmra.mrb[48].mxu0 %v11100_v45  ;;  %7374 = vmatpush1.bf16.msra.mxu1 %v10122_v5  ;;  %v10168_v41 = vld [vmem:[#allocation11 + $0x1b0] ss:$12 sps:$4 sm:$0xff]   ;;  %v10173_v55 = vld [vmem:[#allocation11 + $0x1cc] ss:$12 sps:$4 sm:$0xff]   ;;  %v10171_v59 = vld [vmem:[#allocation11 + $0x1c8] ss:$12 sps:$4 sm:$0xff]  }
 0xac0   :  { %8946 = vmatpush3.bf16.msra.mxu0 %v10126_v6  ;;  %7688 = vmatprep.mubr.bf16.mxu0 %v11104_v15  ;;  %v10197_v56 = vld [vmem:[#allocation11 + $0x338] ss:$12 sps:$4 sm:$0xff]   ;;  %v10201_v57 = vld [vmem:[#allocation11 + $0x410] ss:$12 sps:$4 sm:$0xff]   ;;  %v10206_v20 = vld [vmem:[#allocation11 + $0x428] ss:$12 sps:$4 sm:$0xff]  }
 0xac1   :  { %7375 = vmatprep.subr.bf16.mxu1 %v10129_v2  ;;  %8947 = vmatprep.subr.bf16.mxu0 %v10130_v58  ;;  %v10202_v32 = vld [vmem:[#allocation11 + $0x350] ss:$12 sps:$4 sm:$0xff]   ;;  %v10207_v4 = vld [vmem:[#allocation11 + $0x368] ss:$12 sps:$4 sm:$0xff]   ;;  %v10211_v5 = vld [vmem:[#allocation11 + $0x440] ss:$12 sps:$4 sm:$0xff]  }
 0xac2   :  { %v10179_v43 = vld [vmem:[#allocation11 + $0x1fc] ss:$12 sps:$4 sm:$0xff]   ;;  %v10177_v6 = vld [vmem:[#allocation11 + $0x1f8] ss:$12 sps:$4 sm:$0xff]   ;;  %v10182_v2 = vld [vmem:[#allocation11 + $0x214] ss:$12 sps:$4 sm:$0xff]  }
 0xac3   :  { %7376 = vmatpush1.bf16.msra.mxu1 %v10127_v8  ;;  %v10212_v58 = vld [vmem:[#allocation11 + $0x380] ss:$12 sps:$4 sm:$0xff]   ;;  %v10216_v8 = vld [vmem:[#allocation11 + $0x458] ss:$12 sps:$4 sm:$0xff]  }
 0xac4   :  { %8948 = vmatpush3.bf16.msra.mxu0 %v10131_v13  ;;  %7377 = vmatprep.subr.bf16.mxu1 %v10134_v7  ;;  %v10180_v13 = vld [vmem:[#allocation11 + $0x210] ss:$12 sps:$4 sm:$0xff]   ;;  %v10185_v7 = vld [vmem:[#allocation11 + $0x22c] ss:$12 sps:$4 sm:$0xff]  }
 0xac5   :  { %8949 = vmatprep.subr.bf16.mxu0 %v10135_v11  ;;  %v10217_v11 = vld [vmem:[#allocation11 + $0x398] ss:$12 sps:$4 sm:$0xff]  }
 0xac7   :  { %7378 = vmatpush1.bf16.msra.mxu1 %v10132_v21  ;;  %v10221_v21 = vld [vmem:[#allocation11 + $0x470] ss:$12 sps:$4 sm:$0xff]  }
 0xac8   :  { %8950 = vmatpush3.bf16.msra.mxu0 %v10136_v17  ;;  %7379 = vmatprep.subr.bf16.mxu1 %v10139_v14  ;;  %v10183_v17 = vld [vmem:[#allocation11 + $0x228] ss:$12 sps:$4 sm:$0xff]   ;;  %v10190_v14 = vld [vmem:[#allocation11 + $0x244] ss:$12 sps:$4 sm:$0xff]  }
 0xac9   :  { %8951 = vmatprep.subr.bf16.mxu0 %v10140_v61  ;;  %v10222_v61 = vld [vmem:[#allocation11 + $0x3b0] ss:$12 sps:$4 sm:$0xff]  }
 0xacb   :  { %7380 = vmatpush1.bf16.msra.mxu1 %v10137_v18  ;;  %v10226_v18 = vld [vmem:[#allocation11 + $0x548] ss:$12 sps:$4 sm:$0xff]  }
 0xacc   :  { %8952 = vmatpush3.bf16.msra.mxu0 %v10141_v22  ;;  %7381 = vmatprep.subr.bf16.mxu1 %v10144_v24  ;;  %v10188_v22 = vld [vmem:[#allocation11 + $0x240] ss:$12 sps:$4 sm:$0xff]   ;;  %v10195_v24 = vld [vmem:[#allocation11 + $0x25c] ss:$12 sps:$4 sm:$0xff]  }
 0xacd   :  { %8953 = vmatprep.subr.bf16.mxu0 %v10145_v25  ;;  %v10193_v25 = vld [vmem:[#allocation11 + $0x258] ss:$12 sps:$4 sm:$0xff]  }
 0xacf   :  { %7382 = vmatpush1.bf16.msra.mxu1 %v10142_v26  ;;  %v10200_v26 = vld [vmem:[#allocation11 + $0x274] ss:$12 sps:$4 sm:$0xff]  }
 0xad0   :  { %8954 = vmatpush3.bf16.msra.mxu0 %v10146_v27  ;;  %7383 = vmatprep.subr.bf16.mxu1 %v10149_v28  ;;  %v10198_v27 = vld [vmem:[#allocation11 + $0x270] ss:$12 sps:$4 sm:$0xff]   ;;  %v10205_v28 = vld [vmem:[#allocation11 + $0x28c] ss:$12 sps:$4 sm:$0xff]  }
 0xad1   :  { %8955 = vmatprep.subr.bf16.mxu0 %v10150_v23  ;;  %v10203_v23 = vld [vmem:[#allocation11 + $0x288] ss:$12 sps:$4 sm:$0xff]  }
 0xad3   :  { %7384 = vmatpush1.bf16.msra.mxu1 %v10147_v29  ;;  %v10210_v29 = vld [vmem:[#allocation11 + $0x2a4] ss:$12 sps:$4 sm:$0xff]  }
 0xad4   :  { %8956 = vmatpush3.bf16.msra.mxu0 %v10151_v1  ;;  %7385 = vmatprep.subr.bf16.mxu1 %v10154_v30  ;;  %v3385_v1 = vsub.s32 4, %v10889_v34  ;;  %v10208_v30 = vld [vmem:[#allocation11 + $0x2a0] ss:$12 sps:$4 sm:$0xff]  }
 0xad5   :  { %8957 = vmatprep.subr.bf16.mxu0 %v10155_v31  ;;  %v3393_v31 = vsub.s32 6, %v10889_v34 }
 0xad7   :  { %7386 = vmatpush1.bf16.msra.mxu1 %v10152_v33  ;;  %v3389_v33 = vsub.s32 5, %v10889_v34 }
 0xad8   :  { %8958 = vmatpush3.bf16.msra.mxu0 %v10156_v0  ;;  %7387 = vmatprep.subr.bf16.mxu1 %v10159_v35  ;;  %v3397_v0 = vsub.s32 7, %v10889_v34  ;;  %v10215_v35 = vld [vmem:[#allocation11 + $0x2bc] ss:$12 sps:$4 sm:$0xff]  }
 0xad9   :  { %8959 = vmatprep.subr.bf16.mxu0 %v10160_v36  ;;  %v3386_v36 = vrot.slane %v11088_v9, %v3385_v1  ;;  %v10237_v1 = vld [vmem:[#allocation11 + $0x4b8] ss:$12 sps:$4 sm:$0xff]  }
 0xadb   :  { %7388 = vmatpush1.bf16.msra.mxu1 %v10157_v37  ;;  %v3394_v37 = vrot.slane %v11088_v9, %v3393_v31  ;;  %v10238_v31 = vld [vmem:[#allocation11 + $0x330] ss:$12 sps:$4 sm:$0xff]  }
 0xadc   :  { %8960 = vmatpush3.bf16.msra.mxu0 %v10161_v38  ;;  %7400 = vmatprep.subr.bf16.mxu1 %v10164_v49  ;;  %v3390_v38 = vrot.slane %v11088_v9, %v3389_v33  ;;  %v10213_v49 = vld [vmem:[#allocation11 + $0x2b8] ss:$12 sps:$4 sm:$0xff]  }
 0xadd   :  { %8967 = vmatprep.subr.bf16.mxu0 %v10186_v39  ;;  %v3398_v39 = vrot.slane %v11088_v9, %v3397_v0  ;;  %v10245_v33 = vld [vmem:[#allocation11 + $0x34c] ss:$12 sps:$4 sm:$0xff]   ;;  %v10242_v0 = vld [vmem:[#allocation11 + $0x4d0] ss:$12 sps:$4 sm:$0xff]  }
 0xade   :  { %7390 = vmatmul.mubr.bf16.vlgmr.msra.gmra.mrb[40].mxu1 %v11100_v45  ;;  %v10176_v45 = vld [vmem:[#allocation11 + $0x1e4] ss:$12 sps:$4 sm:$0xff]  }
 0xadf   :  { %7689 = vmatmul.mubr.bf16.vlgmr.msra.gmra.mrb[52].mxu0 %v11102_v62  ;;  %7401 = vmatpush1.bf16.msra.mxu1 %v10162_v40  ;;  %v10220_v40 = vld [vmem:[#allocation11 + $0x2d4] ss:$12 sps:$4 sm:$0xff]  }
 0xae0   :  { %7432 = vmatprep.mubr.bf16.mxu1 %v11104_v15  ;;  %7402 = vmatprep.subr.bf16.mxu1 %v10167_v42  ;;  %v10174_v15 = vld [vmem:[#allocation11 + $0x1e0] ss:$12 sps:$4 sm:$0xff]  }
 0xae1   :  { %8968 = vmatpush3.bf16.msra.mxu0 %v10187_v44 }
 0xae2   :  { %8969 = vmatprep.subr.bf16.mxu0 %v10191_v46 }
 0xae3   :  { %7403 = vmatpush1.bf16.msra.mxu1 %v10165_v47 }
 0xae4   :  { %7404 = vmatprep.subr.bf16.mxu1 %v10170_v48 }
 0xae5   :  { %8970 = vmatpush3.bf16.msra.mxu0 %v10192_v50 }
 0xae6   :  { %8971 = vmatprep.subr.bf16.mxu0 %v10196_v52 }
 0xae7   :  { %7405 = vmatpush1.bf16.msra.mxu1 %v10168_v41 }
 0xae8   :  { %7406 = vmatprep.subr.bf16.mxu1 %v10173_v55  ;;  %v10218_v55 = vld [vmem:[#allocation11 + $0x2d0] ss:$12 sps:$4 sm:$0xff]  }
 0xae9   :  { %8972 = vmatpush3.bf16.msra.mxu0 %v10197_v56 }
 0xaea   :  { %8973 = vmatprep.subr.bf16.mxu0 %v10201_v57 }
 0xaeb   :  { %7407 = vmatpush1.bf16.msra.mxu1 %v10171_v59 }
 0xaec   :  { %7408 = vmatprep.subr.bf16.mxu1 %v10176_v45 }
 0xaed   :  { %8974 = vmatpush3.bf16.msra.mxu0 %v10202_v32  ;;  %v10225_v32 = vld [vmem:[#allocation11 + $0x2ec] ss:$12 sps:$4 sm:$0xff]  }
 0xaee   :  { %8975 = vmatprep.subr.bf16.mxu0 %v10206_v20 }
 0xaef   :  { %7409 = vmatpush1.bf16.msra.mxu1 %v10174_v15 }
 0xaf0   :  { %7410 = vmatprep.subr.bf16.mxu1 %v10179_v43 }
 0xaf1   :  { %8976 = vmatpush3.bf16.msra.mxu0 %v10207_v4 }
 0xaf2   :  { %8977 = vmatprep.subr.bf16.mxu0 %v10211_v5 }
 0xaf3   :  { %7411 = vmatpush1.bf16.msra.mxu1 %v10177_v6 }
 0xaf4   :  { %7412 = vmatprep.subr.bf16.mxu1 %v10182_v2 }
 0xaf5   :  { %8978 = vmatpush3.bf16.msra.mxu0 %v10212_v58 }
 0xaf6   :  { %8979 = vmatprep.subr.bf16.mxu0 %v10216_v8 }
 0xaf7   :  { %7413 = vmatpush1.bf16.msra.mxu1 %v10180_v13  ;;  %v10223_v13 = vld [vmem:[#allocation11 + $0x2e8] ss:$12 sps:$4 sm:$0xff]  }
 0xaf8   :  { %7414 = vmatprep.subr.bf16.mxu1 %v10185_v7 }
 0xaf9   :  { %8980 = vmatpush3.bf16.msra.mxu0 %v10217_v11 }
 0xafa   :  { %8981 = vmatprep.subr.bf16.mxu0 %v10221_v21 }
 0xafb   :  { %7415 = vmatpush1.bf16.msra.mxu1 %v10183_v17  ;;  %v10230_v17 = vld [vmem:[#allocation11 + $0x304] ss:$12 sps:$4 sm:$0xff]  }
 0xafc   :  { %7416 = vmatprep.subr.bf16.mxu1 %v10190_v14 }
 0xafd   :  { %8982 = vmatpush3.bf16.msra.mxu0 %v10222_v61 }
 0xafe   :  { %8989 = vmatprep.subr.bf16.mxu0 %v10226_v18  ;;  %v10227_v18 = vld [vmem:[#allocation11 + $0x488] ss:$12 sps:$4 sm:$0xff]  }
 0xaff   :  { %7417 = vmatpush1.bf16.msra.mxu1 %v10188_v22 }
 0xb00   :  { %7418 = vmatprep.subr.bf16.mxu1 %v10195_v24  ;;  %v10231_v24 = vld [vmem:[#allocation11 + $0x560] ss:$12 sps:$4 sm:$0xff]  }
 0xb03   :  { %7419 = vmatpush1.bf16.msra.mxu1 %v10193_v25  ;;  %v10228_v25 = vld [vmem:[#allocation11 + $0x300] ss:$12 sps:$4 sm:$0xff]  }
 0xb04   :  { %7420 = vmatprep.subr.bf16.mxu1 %v10200_v26  ;;  %v10235_v26 = vld [vmem:[#allocation11 + $0x31c] ss:$12 sps:$4 sm:$0xff]  }
 0xb07   :  { %7421 = vmatpush1.bf16.msra.mxu1 %v10198_v27  ;;  %v10232_v27 = vld [vmem:[#allocation11 + $0x4a0] ss:$12 sps:$4 sm:$0xff]  }
 0xb08   :  { %7422 = vmatprep.subr.bf16.mxu1 %v10205_v28  ;;  %v10236_v28 = vld [vmem:[#allocation11 + $0x578] ss:$12 sps:$4 sm:$0xff]  }
 0xb0b   :  { %7423 = vmatpush1.bf16.msra.mxu1 %v10203_v23  ;;  %v10233_v23 = vld [vmem:[#allocation11 + $0x318] ss:$12 sps:$4 sm:$0xff]  }
 0xb0c   :  { %7424 = vmatprep.subr.bf16.mxu1 %v10210_v29  ;;  %v10240_v29 = vld [vmem:[#allocation11 + $0x334] ss:$12 sps:$4 sm:$0xff]  }
 0xb0f   :  { %7425 = vmatpush1.bf16.msra.mxu1 %v10208_v30  ;;  %v10241_v30 = vld [vmem:[#allocation11 + $0x590] ss:$12 sps:$4 sm:$0xff]  }
 0xb10   :  { %7426 = vmatprep.subr.bf16.mxu1 %v10215_v35  ;;  %v10246_v35 = vld [vmem:[#allocation11 + $0x5a8] ss:$12 sps:$4 sm:$0xff]  }
 0xb11   :  { %v5116_v42 = vpop.f32.mrb[32].mxu1 }
 0xb12   :  { %v9135_v44 = vadd.f32 %v5116_v42, %v3386_v36  ;;  %v5202_v46 = vpop.f32.mrb[40].mxu0  ;;  %v5118_v47 = vpop.f32.mrb[33].mxu1  ;;  %v10256_v42 = vld [vmem:[#allocation11 + $0x5d8] ss:$12 sps:$4 sm:$0xff]  }
 0xb13   :  { %v9139_v48 = vadd.f32 %v5202_v46, %v3394_v37  ;;  %v9136_v50 = vadd.f32 %v5118_v47, %v3390_v38  ;;  %v5204_v52 = vpop.f32.mrb[41].mxu0  ;;  %v5120_v41 = vpop.f32.mrb[34].mxu1  ;;  %7427 = vmatpush1.bf16.msra.mxu1 %v10213_v49  ;;  %v10248_v49 = vld [vmem:[#allocation11 + $0x360] ss:$12 sps:$4 sm:$0xff]   ;;  %v10257_v47 = vld [vmem:[#allocation11 + $0x518] ss:$12 sps:$4 sm:$0xff]  }
 0xb14   :  { %v9140_v56 = vadd.f32 %v5204_v52, %v3398_v39  ;;  %v9137_v57 = vadd.f32 %v5120_v41, %v3386_v36  ;;  %v5206_v59 = vpop.f32.mrb[42].mxu0  ;;  %v5122_v45 = vpop.f32.mrb[35].mxu1  ;;  %7428 = vmatprep.subr.bf16.mxu1 %v10220_v40  ;;  %v5387_v43 = vmax.f32 %v9135_v44, 0.0  ;;  %v10250_v36 = vld [vmem:[#allocation11 + $0x364] ss:$12 sps:$4 sm:$0xff]  }
 0xb15   :  { %v9141_v20 = vadd.f32 %v5206_v59, %v3394_v37  ;;  %v9138_v9 = vadd.f32 %v5122_v45, %v3390_v38  ;;  %v5208_v15 = vpop.f32.mrb[43].mxu0  ;;  %v5389_v6 = vmax.f32 %v9139_v48, 0.0  ;;  %v5388_v2 = vmax.f32 %v9136_v50, 0.0  ;;  %v10247_v37 = vld [vmem:[#allocation11 + $0x4e8] ss:$12 sps:$4 sm:$0xff]  }
 0xb16   :  { %v5399_v4 = vmax.f32 %v9137_v57, 0.0  ;;  %v9142_v5 = vadd.f32 %v5208_v15, %v3398_v39  ;;  %v5390_v7 = vmax.f32 %v9140_v56, 0.0  ;;  %v10251_v38 = vld [vmem:[#allocation11 + $0x5c0] ss:$12 sps:$4 sm:$0xff]   ;;  %v10255_v39 = vld [vmem:[#allocation11 + $0x37c] ss:$12 sps:$4 sm:$0xff]  }
 0xb17   :  { %v5401_v58 = vmax.f32 %v9141_v20, 0.0  ;;  %v5400_v8 = vmax.f32 %v9138_v9, 0.0  ;;  %7429 = vmatpush1.bf16.msra.mxu1 %v10218_v55  ;;  %v10252_v40 = vld [vmem:[#allocation11 + $0x500] ss:$12 sps:$4 sm:$0xff]   ;;  %v10253_v44 = vld [vmem:[#allocation11 + $0x378] ss:$12 sps:$4 sm:$0xff]  }
 0xb18   :  { %v11119_v11 = vpack.c.bf16 %v5399_v4, %v5387_v43  ;;  %v5402_v21 = vmax.f32 %v9142_v5, 0.0  ;;  %7430 = vmatprep.subr.bf16.mxu1 %v10225_v32  ;;  %v10260_v46 = vld [vmem:[#allocation11 + $0x394] ss:$12 sps:$4 sm:$0xff]   ;;  %v10261_v48 = vld [vmem:[#allocation11 + $0x5f0] ss:$12 sps:$4 sm:$0xff]  }
 0xb19   :  { %v11121_v14 = vpack.c.bf16 %v5401_v58, %v5389_v6  ;;  %v5412_v61 = vpack.c.bf16 %v5400_v8, %v5388_v2  ;;  %v10258_v50 = vld [vmem:[#allocation11 + $0x390] ss:$12 sps:$4 sm:$0xff]   ;;  %v10265_v52 = vld [vmem:[#allocation11 + $0x3ac] ss:$12 sps:$4 sm:$0xff]   ;;  %v10290_v55 = vld [vmem:[#allocation11 + $0x6c8] ss:$12 sps:$4 sm:$0xff]  }
 0xb1a   :  { %v11123_v22 = vpack.c.bf16 %v5402_v21, %v5390_v7  ;;  %v10262_v41 = vld [vmem:[#allocation11 + $0x530] ss:$12 sps:$4 sm:$0xff]   ;;  %v10263_v56 = vld [vmem:[#allocation11 + $0x3a8] ss:$12 sps:$4 sm:$0xff]   ;;  %v10295_v45 = vld [vmem:[#allocation11 + $0x6e0] ss:$12 sps:$4 sm:$0xff]  }
 0xb1b   :  { %7431 = vmatpush1.bf16.msra.mxu1 %v10223_v13  ;;  %7729 = vmatprep.mubr.bf16.mxu0 %v5412_v61  ;;  %v10268_v57 = vld [vmem:[#allocation11 + $0x3c4] ss:$12 sps:$4 sm:$0xff]   ;;  %v10291_v59 = vld [vmem:[#allocation11 + $0x608] ss:$12 sps:$4 sm:$0xff]   ;;  %v10266_v32 = vld [vmem:[#allocation11 + $0x3c0] ss:$12 sps:$4 sm:$0xff]  }
 0xb1c   :  { %7730 = vmatmul.mubr.bf16.vlgmr.msra.gmra.mrb[56].mxu0 %v11119_v11  ;;  %7443 = vmatprep.subr.bf16.mxu1 %v10230_v17  ;;  %v10271_v20 = vld [vmem:[#allocation11 + $0x3dc] ss:$12 sps:$4 sm:$0xff]   ;;  %v10296_v9 = vld [vmem:[#allocation11 + $0x620] ss:$12 sps:$4 sm:$0xff]   ;;  %v10300_v15 = vld [vmem:[#allocation11 + $0x6f8] ss:$12 sps:$4 sm:$0xff]  }
 0xb1d   :  { %8990 = vmatpush3.bf16.msra.mxu0 %v10227_v18  ;;  %7770 = vmatprep.mubr.bf16.mxu0 %v11123_v22  ;;  %v10269_v43 = vld [vmem:[#allocation11 + $0x3d8] ss:$12 sps:$4 sm:$0xff]   ;;  %v10274_v4 = vld [vmem:[#allocation11 + $0x3f4] ss:$12 sps:$4 sm:$0xff]   ;;  %v10305_v6 = vld [vmem:[#allocation11 + $0x710] ss:$12 sps:$4 sm:$0xff]  }
 0xb1e   :  { %7433 = vmatmul.mubr.bf16.vlgmr.msra.gmra.mrb[40].mxu1 %v11102_v62  ;;  %8991 = vmatprep.subr.bf16.mxu0 %v10231_v24  ;;  %v10243_v62 = vld [vmem:[#allocation11 + $0x348] ss:$12 sps:$4 sm:$0xff]   ;;  %v10301_v5 = vld [vmem:[#allocation11 + $0x638] ss:$12 sps:$4 sm:$0xff]   ;;  %v10272_v2 = vld [vmem:[#allocation11 + $0x3f0] ss:$12 sps:$4 sm:$0xff]  }
 0xb1f   :  { %7444 = vmatpush1.bf16.msra.mxu1 %v10228_v25  ;;  %7475 = vmatprep.mubr.bf16.mxu1 %v5412_v61  ;;  %v10277_v58 = vld [vmem:[#allocation11 + $0x40c] ss:$12 sps:$4 sm:$0xff]   ;;  %v10306_v8 = vld [vmem:[#allocation11 + $0x650] ss:$12 sps:$4 sm:$0xff]   ;;  %v10310_v13 = vld [vmem:[#allocation11 + $0x728] ss:$12 sps:$4 sm:$0xff]  }
 0xb20   :  { %7445 = vmatprep.subr.bf16.mxu1 %v10235_v26  ;;  %v10275_v7 = vld [vmem:[#allocation11 + $0x408] ss:$12 sps:$4 sm:$0xff]   ;;  %v10280_v21 = vld [vmem:[#allocation11 + $0x424] ss:$12 sps:$4 sm:$0xff]   ;;  %v10315_v61 = vld [vmem:[#allocation11 + $0x740] ss:$12 sps:$4 sm:$0xff]  }
 0xb21   :  { %8992 = vmatpush3.bf16.msra.mxu0 %v10232_v27  ;;  %v10311_v17 = vld [vmem:[#allocation11 + $0x668] ss:$12 sps:$4 sm:$0xff]   ;;  %v10278_v18 = vld [vmem:[#allocation11 + $0x420] ss:$12 sps:$4 sm:$0xff]   ;;  %v10320_v26 = vld [vmem:[#allocation11 + $0x758] ss:$12 sps:$4 sm:$0xff]  }
 0xb22   :  { %8993 = vmatprep.subr.bf16.mxu0 %v10236_v28  ;;  %v10283_v24 = vld [vmem:[#allocation11 + $0x43c] ss:$12 sps:$4 sm:$0xff]   ;;  %v10316_v25 = vld [vmem:[#allocation11 + $0x680] ss:$12 sps:$4 sm:$0xff]   ;;  %v10281_v27 = vld [vmem:[#allocation11 + $0x438] ss:$12 sps:$4 sm:$0xff]  }
 0xb23   :  { %7446 = vmatpush1.bf16.msra.mxu1 %v10233_v23  ;;  %v10286_v28 = vld [vmem:[#allocation11 + $0x454] ss:$12 sps:$4 sm:$0xff]   ;;  %v10321_v23 = vld [vmem:[#allocation11 + $0x698] ss:$12 sps:$4 sm:$0xff]  }
 0xb24   :  { %7447 = vmatprep.subr.bf16.mxu1 %v10240_v29  ;;  %v10325_v29 = vld [vmem:[#allocation11 + $0x770] ss:$12 sps:$4 sm:$0xff]  }
 0xb25   :  { %8994 = vmatpush3.bf16.msra.mxu0 %v10237_v1  ;;  %v10284_v1 = vld [vmem:[#allocation11 + $0x450] ss:$12 sps:$4 sm:$0xff]  }
 0xb26   :  { %8995 = vmatprep.subr.bf16.mxu0 %v10241_v30  ;;  %v10289_v30 = vld [vmem:[#allocation11 + $0x46c] ss:$12 sps:$4 sm:$0xff]  }
 0xb27   :  { %7448 = vmatpush1.bf16.msra.mxu1 %v10238_v31  ;;  %v10326_v31 = vld [vmem:[#allocation11 + $0x6b0] ss:$12 sps:$4 sm:$0xff]  }
 0xb28   :  { %7449 = vmatprep.subr.bf16.mxu1 %v10245_v33  ;;  %v10330_v33 = vld [vmem:[#allocation11 + $0x848] ss:$12 sps:$4 sm:$0xff]  }
 0xb29   :  { %8996 = vmatpush3.bf16.msra.mxu0 %v10242_v0  ;;  %v10287_v0 = vld [vmem:[#allocation11 + $0x468] ss:$12 sps:$4 sm:$0xff]  }
 0xb2a   :  { %8997 = vmatprep.subr.bf16.mxu0 %v10246_v35  ;;  %v10294_v35 = vld [vmem:[#allocation11 + $0x484] ss:$12 sps:$4 sm:$0xff]  }
 0xb2b   :  { %7450 = vmatpush1.bf16.msra.mxu1 %v10243_v62  ;;  %v10292_v62 = vld [vmem:[#allocation11 + $0x480] ss:$12 sps:$4 sm:$0xff]  }
 0xb2c   :  { %7451 = vmatprep.subr.bf16.mxu1 %v10250_v36  ;;  %v10299_v36 = vld [vmem:[#allocation11 + $0x49c] ss:$12 sps:$4 sm:$0xff]  }
 0xb2d   :  { %8998 = vmatpush3.bf16.msra.mxu0 %v10247_v37  ;;  %v10297_v37 = vld [vmem:[#allocation11 + $0x498] ss:$12 sps:$4 sm:$0xff]  }
 0xb2e   :  { %8999 = vmatprep.subr.bf16.mxu0 %v10251_v38  ;;  %v10304_v38 = vld [vmem:[#allocation11 + $0x4b4] ss:$12 sps:$4 sm:$0xff]  }
 0xb2f   :  { %7452 = vmatpush1.bf16.msra.mxu1 %v10248_v49  ;;  %v10302_v49 = vld [vmem:[#allocation11 + $0x4b0] ss:$12 sps:$4 sm:$0xff]  }
 0xb30   :  { %7453 = vmatprep.subr.bf16.mxu1 %v10255_v39  ;;  %v10309_v39 = vld [vmem:[#allocation11 + $0x4cc] ss:$12 sps:$4 sm:$0xff]  }
 0xb31   :  { %9000 = vmatpush3.bf16.msra.mxu0 %v10252_v40  ;;  %v10307_v40 = vld [vmem:[#allocation11 + $0x4c8] ss:$12 sps:$4 sm:$0xff]  }
 0xb32   :  { %9001 = vmatprep.subr.bf16.mxu0 %v10256_v42  ;;  %v10314_v42 = vld [vmem:[#allocation11 + $0x4e4] ss:$12 sps:$4 sm:$0xff]  }
 0xb33   :  { %7454 = vmatpush1.bf16.msra.mxu1 %v10253_v44  ;;  %v10312_v44 = vld [vmem:[#allocation11 + $0x4e0] ss:$12 sps:$4 sm:$0xff]  }
 0xb34   :  { %7455 = vmatprep.subr.bf16.mxu1 %v10260_v46  ;;  %v3364_v46 = vld [vmem:[#allocation12 + $0x8] sm:$0xf] }
 0xb35   :  { %9002 = vmatpush3.bf16.msra.mxu0 %v10257_v47  ;;  %v10319_v47 = vld [vmem:[#allocation11 + $0x4fc] ss:$12 sps:$4 sm:$0xff]  }
 0xb36   :  { %9003 = vmatprep.subr.bf16.mxu0 %v10261_v48  ;;  %v3406_v48 = vrot.slane %v3364_v46, %v10955_v54 }
 0xb37   :  { %7456 = vmatpush1.bf16.msra.mxu1 %v10258_v50  ;;  %v10317_v50 = vld [vmem:[#allocation11 + $0x4f8] ss:$12 sps:$4 sm:$0xff]  }
 0xb38   :  { %7457 = vmatprep.subr.bf16.mxu1 %v10265_v52  ;;  %v3414_v52 = vrot.slane %v3364_v46, %v3381_v16 }
 0xb39   :  { %9004 = vmatpush3.bf16.msra.mxu0 %v10262_v41  ;;  %v10324_v41 = vld [vmem:[#allocation11 + $0x514] ss:$12 sps:$4 sm:$0xff]  }
 0xb3a   :  { %9011 = vmatprep.subr.bf16.mxu0 %v10290_v55 }
 0xb3b   :  { %7458 = vmatpush1.bf16.msra.mxu1 %v10263_v56 }
 0xb3c   :  { %7771 = vmatmul.mubr.bf16.vlgmr.msra.gmra.mrb[60].mxu0 %v11121_v14  ;;  %7459 = vmatprep.subr.bf16.mxu1 %v10268_v57 }
 0xb3d   :  { %9012 = vmatpush3.bf16.msra.mxu0 %v10291_v59 }
 0xb3e   :  { %9013 = vmatprep.subr.bf16.mxu0 %v10295_v45 }
 0xb3f   :  { %7460 = vmatpush1.bf16.msra.mxu1 %v10266_v32 }
 0xb40   :  { %7461 = vmatprep.subr.bf16.mxu1 %v10271_v20 }
 0xb41   :  { %9014 = vmatpush3.bf16.msra.mxu0 %v10296_v9 }
 0xb42   :  { %9015 = vmatprep.subr.bf16.mxu0 %v10300_v15  ;;  %v10322_v15 = vld [vmem:[#allocation11 + $0x510] ss:$12 sps:$4 sm:$0xff]  }
 0xb43   :  { %7462 = vmatpush1.bf16.msra.mxu1 %v10269_v43 }
 0xb44   :  { %7463 = vmatprep.subr.bf16.mxu1 %v10274_v4 }
 0xb45   :  { %9016 = vmatpush3.bf16.msra.mxu0 %v10301_v5 }
 0xb46   :  { %9017 = vmatprep.subr.bf16.mxu0 %v10305_v6 }
 0xb47   :  { %7464 = vmatpush1.bf16.msra.mxu1 %v10272_v2  ;;  %v10329_v2 = vld [vmem:[#allocation11 + $0x52c] ss:$12 sps:$4 sm:$0xff]  }
 0xb48   :  { %7465 = vmatprep.subr.bf16.mxu1 %v10277_v58 }
 0xb49   :  { %9018 = vmatpush3.bf16.msra.mxu0 %v10306_v8 }
 0xb4a   :  { %9019 = vmatprep.subr.bf16.mxu0 %v10310_v13 }
 0xb4b   :  { %7466 = vmatpush1.bf16.msra.mxu1 %v10275_v7 }
 0xb4c   :  { %7467 = vmatprep.subr.bf16.mxu1 %v10280_v21 }
 0xb4d   :  { %9020 = vmatpush3.bf16.msra.mxu0 %v10311_v17 }
 0xb4e   :  { %9021 = vmatprep.subr.bf16.mxu0 %v10315_v61 }
 0xb4f   :  { %7468 = vmatpush1.bf16.msra.mxu1 %v10278_v18 }
 0xb50   :  { %7469 = vmatprep.subr.bf16.mxu1 %v10283_v24  ;;  %v10327_v24 = vld [vmem:[#allocation11 + $0x528] ss:$12 sps:$4 sm:$0xff]  }
 0xb51   :  { %9022 = vmatpush3.bf16.msra.mxu0 %v10316_v25 }
 0xb52   :  { %9023 = vmatprep.subr.bf16.mxu0 %v10320_v26 }
 0xb53   :  { %7470 = vmatpush1.bf16.msra.mxu1 %v10281_v27 }
 0xb54   :  { %7471 = vmatprep.subr.bf16.mxu1 %v10286_v28  ;;  %v10334_v28 = vld [vmem:[#allocation11 + $0x544] ss:$12 sps:$4 sm:$0xff]  }
 0xb55   :  { %9024 = vmatpush3.bf16.msra.mxu0 %v10321_v23 }
 0xb56   :  { %9025 = vmatprep.subr.bf16.mxu0 %v10325_v29 }
 0xb57   :  { %7472 = vmatpush1.bf16.msra.mxu1 %v10284_v1  ;;  %v10331_v1 = vld [vmem:[#allocation11 + $0x788] ss:$12 sps:$4 sm:$0xff]  }
 0xb58   :  { %7473 = vmatprep.subr.bf16.mxu1 %v10289_v30 }
 0xb59   :  { %9026 = vmatpush3.bf16.msra.mxu0 %v10326_v31  ;;  %v10335_v31 = vld [vmem:[#allocation11 + $0x860] ss:$12 sps:$4 sm:$0xff]  }
 0xb5a   :  { %9033 = vmatprep.subr.bf16.mxu0 %v10330_v33  ;;  %v10332_v33 = vld [vmem:[#allocation11 + $0x540] ss:$12 sps:$4 sm:$0xff]  }
 0xb5b   :  { %7474 = vmatpush1.bf16.msra.mxu1 %v10287_v0  ;;  %v10339_v0 = vld [vmem:[#allocation11 + $0x55c] ss:$12 sps:$4 sm:$0xff]  }
 0xb5c   :  { %7486 = vmatprep.subr.bf16.mxu1 %v10294_v35  ;;  %v10336_v35 = vld [vmem:[#allocation11 + $0x7a0] ss:$12 sps:$4 sm:$0xff]  }
 0xb5e   :  { %7476 = vmatmul.mubr.bf16.vlgmr.msra.gmra.mrb[40].mxu1 %v11119_v11  ;;  %v3402_v11 = vrot.slane %v3364_v46, %v10952_v53 }
 0xb5f   :  { %7487 = vmatpush1.bf16.msra.mxu1 %v10292_v62  ;;  %7518 = vmatprep.mubr.bf16.mxu1 %v11123_v22  ;;  %v3410_v22 = vrot.slane %v3364_v46, %v10949_v51  ;;  %v10340_v62 = vld [vmem:[#allocation11 + $0x878] ss:$12 sps:$4 sm:$0xff]   ;;  %v10347_v46 = vld [vmem:[#allocation11 + $0x588] ss:$12 sps:$4 sm:$0xff]  }
 0xb60   :  { %7488 = vmatprep.subr.bf16.mxu1 %v10299_v36  ;;  %v10337_v36 = vld [vmem:[#allocation11 + $0x558] ss:$12 sps:$4 sm:$0xff]  }
 0xb63   :  { %7489 = vmatpush1.bf16.msra.mxu1 %v10297_v37  ;;  %v10344_v37 = vld [vmem:[#allocation11 + $0x574] ss:$12 sps:$4 sm:$0xff]  }
 0xb64   :  { %7490 = vmatprep.subr.bf16.mxu1 %v10304_v38  ;;  %v10341_v38 = vld [vmem:[#allocation11 + $0x7b8] ss:$12 sps:$4 sm:$0xff]  }
 0xb67   :  { %7491 = vmatpush1.bf16.msra.mxu1 %v10302_v49  ;;  %v10345_v49 = vld [vmem:[#allocation11 + $0x890] ss:$12 sps:$4 sm:$0xff]  }
 0xb68   :  { %7492 = vmatprep.subr.bf16.mxu1 %v10309_v39  ;;  %v10342_v39 = vld [vmem:[#allocation11 + $0x570] ss:$12 sps:$4 sm:$0xff]  }
 0xb6b   :  { %7493 = vmatpush1.bf16.msra.mxu1 %v10307_v40  ;;  %v10349_v40 = vld [vmem:[#allocation11 + $0x58c] ss:$12 sps:$4 sm:$0xff]  }
 0xb6c   :  { %7494 = vmatprep.subr.bf16.mxu1 %v10314_v42  ;;  %v10346_v42 = vld [vmem:[#allocation11 + $0x7d0] ss:$12 sps:$4 sm:$0xff]  }
 0xb6f   :  { %7495 = vmatpush1.bf16.msra.mxu1 %v10312_v44  ;;  %v10350_v44 = vld [vmem:[#allocation11 + $0x8a8] ss:$12 sps:$4 sm:$0xff]  }
 0xb70   :  { %7496 = vmatprep.subr.bf16.mxu1 %v10319_v47  ;;  %v10354_v47 = vld [vmem:[#allocation11 + $0x5a4] ss:$12 sps:$4 sm:$0xff]  }
 0xb71   :  { %v5288_v55 = vpop.f32.mrb[36].mxu1 }
 0xb72   :  { %v9143_v56 = vadd.f32 %v5288_v55, %v3402_v11  ;;  %v5374_v57 = vpop.f32.mrb[44].mxu0  ;;  %v5290_v59 = vpop.f32.mrb[37].mxu1  ;;  %v10357_v55 = vld [vmem:[#allocation11 + $0x5b8] ss:$12 sps:$4 sm:$0xff]  }
 0xb73   :  { %v9147_v45 = vadd.f32 %v5374_v57, %v3410_v22  ;;  %v9144_v32 = vadd.f32 %v5290_v59, %v3406_v48  ;;  %v5376_v20 = vpop.f32.mrb[45].mxu0  ;;  %v5292_v9 = vpop.f32.mrb[38].mxu1  ;;  %7497 = vmatpush1.bf16.msra.mxu1 %v10317_v50  ;;  %v10359_v50 = vld [vmem:[#allocation11 + $0x5bc] ss:$12 sps:$4 sm:$0xff]   ;;  %v10361_v57 = vld [vmem:[#allocation11 + $0x818] ss:$12 sps:$4 sm:$0xff]  }
 0xb74   :  { %v9148_v43 = vadd.f32 %v5376_v20, %v3414_v52  ;;  %v9145_v4 = vadd.f32 %v5292_v9, %v3402_v11  ;;  %v5378_v5 = vpop.f32.mrb[46].mxu0  ;;  %v5294_v6 = vpop.f32.mrb[39].mxu1  ;;  %7498 = vmatprep.subr.bf16.mxu1 %v10324_v41  ;;  %v5391_v8 = vmax.f32 %v9143_v56, 0.0  ;;  %v10351_v11 = vld [vmem:[#allocation11 + $0x7e8] ss:$12 sps:$4 sm:$0xff]  }
 0xb75   :  { %v9149_v34 = vadd.f32 %v5378_v5, %v3410_v22  ;;  %v9146_v16 = vadd.f32 %v5294_v6, %v3406_v48  ;;  %v5380_v58 = vpop.f32.mrb[47].mxu0  ;;  %v5393_v21 = vmax.f32 %v9147_v45, 0.0  ;;  %v5392_v17 = vmax.f32 %v9144_v32, 0.0  ;;  %v10355_v22 = vld [vmem:[#allocation11 + $0x8c0] ss:$12 sps:$4 sm:$0xff]  }
 0xb76   :  { %v5403_v13 = vmax.f32 %v9145_v4, 0.0  ;;  %v9150_v7 = vadd.f32 %v5380_v58, %v3414_v52  ;;  %v5394_v25 = vmax.f32 %v9148_v43, 0.0  ;;  %v10352_v48 = vld [vmem:[#allocation11 + $0x5a0] ss:$12 sps:$4 sm:$0xff]   ;;  %v10360_v41 = vld [vmem:[#allocation11 + $0x8d8] ss:$12 sps:$4 sm:$0xff]  }
 0xb77   :  { %v5405_v61 = vmax.f32 %v9149_v34, 0.0  ;;  %v5404_v18 = vmax.f32 %v9146_v16, 0.0  ;;  %7499 = vmatpush1.bf16.msra.mxu1 %v10322_v15  ;;  %v10356_v52 = vld [vmem:[#allocation11 + $0x800] ss:$12 sps:$4 sm:$0xff]   ;;  %v10365_v45 = vld [vmem:[#allocation11 + $0x8f0] ss:$12 sps:$4 sm:$0xff]  }
 0xb78   :  { %v11136_v26 = vpack.c.bf16 %v5403_v13, %v5391_v8  ;;  %v5406_v27 = vmax.f32 %v9150_v7, 0.0  ;;  %7500 = vmatprep.subr.bf16.mxu1 %v10329_v2  ;;  %v10364_v56 = vld [vmem:[#allocation11 + $0x5d4] ss:$12 sps:$4 sm:$0xff]   ;;  %v10362_v20 = vld [vmem:[#allocation11 + $0x5d0] ss:$12 sps:$4 sm:$0xff]  }
 0xb79   :  { %v11138_v23 = vpack.c.bf16 %v5405_v61, %v5393_v21  ;;  %v11140_v29 = vpack.c.bf16 %v5404_v18, %v5392_v17  ;;  %v10369_v43 = vld [vmem:[#allocation11 + $0x5ec] ss:$12 sps:$4 sm:$0xff]   ;;  %v10366_v5 = vld [vmem:[#allocation11 + $0x830] ss:$12 sps:$4 sm:$0xff]   ;;  %v10367_v2 = vld [vmem:[#allocation11 + $0x5e8] ss:$12 sps:$4 sm:$0xff]  }
 0xb7a   :  { %v11142_v30 = vpack.c.bf16 %v5406_v27, %v5394_v25  ;;  %v10372_v34 = vld [vmem:[#allocation11 + $0x604] ss:$12 sps:$4 sm:$0xff]   ;;  %v10370_v16 = vld [vmem:[#allocation11 + $0x600] ss:$12 sps:$4 sm:$0xff]   ;;  %v10375_v58 = vld [vmem:[#allocation11 + $0x61c] ss:$12 sps:$4 sm:$0xff]  }
 0xb7b   :  { %7501 = vmatpush1.bf16.msra.mxu1 %v10327_v24  ;;  %7811 = vmatprep.mubr.bf16.mxu0 %v11140_v29  ;;  %v10373_v8 = vld [vmem:[#allocation11 + $0x618] ss:$12 sps:$4 sm:$0xff]   ;;  %v10378_v13 = vld [vmem:[#allocation11 + $0x634] ss:$12 sps:$4 sm:$0xff]   ;;  %v10376_v7 = vld [vmem:[#allocation11 + $0x630] ss:$12 sps:$4 sm:$0xff]  }
 0xb7c   :  { %7812 = vmatmul.mubr.bf16.vlgmr.msra.gmra.mrb[64].mxu0 %v11136_v26  ;;  %7502 = vmatprep.subr.bf16.mxu1 %v10334_v28  ;;  %v10381_v21 = vld [vmem:[#allocation11 + $0x64c] ss:$12 sps:$4 sm:$0xff]   ;;  %v10379_v17 = vld [vmem:[#allocation11 + $0x648] ss:$12 sps:$4 sm:$0xff]   ;;  %v10384_v61 = vld [vmem:[#allocation11 + $0x664] ss:$12 sps:$4 sm:$0xff]  }
 0xb7d   :  { %9034 = vmatpush3.bf16.msra.mxu0 %v10331_v1  ;;  %7852 = vmatprep.mubr.bf16.mxu0 %v11142_v30  ;;  %v10382_v18 = vld [vmem:[#allocation11 + $0x660] ss:$12 sps:$4 sm:$0xff]   ;;  %v10387_v24 = vld [vmem:[#allocation11 + $0x67c] ss:$12 sps:$4 sm:$0xff]  }
 0xb7e   :  { %9035 = vmatprep.subr.bf16.mxu0 %v10335_v31  ;;  %v11150_v25 = vld [vmem:[#allocation14 + $0x3] ss:$8 sm:$0x7] }
 0xb7f   :  { %7503 = vmatpush1.bf16.msra.mxu1 %v10332_v33  ;;  %v5817_v27 = vrot.slane %v11150_v25, %v10949_v51  ;;  %v10390_v28 = vld [vmem:[#allocation11 + $0x694] ss:$12 sps:$4 sm:$0xff]   ;;  %v10388_v31 = vld [vmem:[#allocation11 + $0x690] ss:$12 sps:$4 sm:$0xff]  }
 0xb80   :  { %7504 = vmatprep.subr.bf16.mxu1 %v10339_v0 }
 0xb81   :  { %9036 = vmatpush3.bf16.msra.mxu0 %v10336_v35 }
 0xb82   :  { %9037 = vmatprep.subr.bf16.mxu0 %v10340_v62  ;;  %v10393_v62 = vld [vmem:[#allocation11 + $0x6ac] ss:$12 sps:$4 sm:$0xff]  }
 0xb83   :  { %7505 = vmatpush1.bf16.msra.mxu1 %v10337_v36 }
 0xb84   :  { %7506 = vmatprep.subr.bf16.mxu1 %v10344_v37 }
 0xb85   :  { %9038 = vmatpush3.bf16.msra.mxu0 %v10341_v38 }
 0xb86   :  { %9039 = vmatprep.subr.bf16.mxu0 %v10345_v49 }
 0xb87   :  { %7507 = vmatpush1.bf16.msra.mxu1 %v10342_v39  ;;  %v10391_v39 = vld [vmem:[#allocation11 + $0x6a8] ss:$12 sps:$4 sm:$0xff]  }
 0xb88   :  { %7508 = vmatprep.subr.bf16.mxu1 %v10349_v40 }
 0xb89   :  { %9040 = vmatpush3.bf16.msra.mxu0 %v10346_v42  ;;  %v10396_v42 = vld [vmem:[#allocation11 + $0x6c4] ss:$12 sps:$4 sm:$0xff]  }
 0xb8a   :  { %9041 = vmatprep.subr.bf16.mxu0 %v10350_v44  ;;  %v10394_v44 = vld [vmem:[#allocation11 + $0x6c0] ss:$12 sps:$4 sm:$0xff]  }
 0xb8b   :  { %7509 = vmatpush1.bf16.msra.mxu1 %v10347_v46  ;;  %v10399_v46 = vld [vmem:[#allocation11 + $0x6dc] ss:$12 sps:$4 sm:$0xff]  }
 0xb8c   :  { %7510 = vmatprep.subr.bf16.mxu1 %v10354_v47  ;;  %v10397_v47 = vld [vmem:[#allocation11 + $0x6d8] ss:$12 sps:$4 sm:$0xff]  }
 0xb8d   :  { %9042 = vmatpush3.bf16.msra.mxu0 %v10351_v11  ;;  %v10402_v11 = vld [vmem:[#allocation11 + $0x6f4] ss:$12 sps:$4 sm:$0xff]  }
 0xb8e   :  { %9043 = vmatprep.subr.bf16.mxu0 %v10355_v22  ;;  %v10400_v22 = vld [vmem:[#allocation11 + $0x6f0] ss:$12 sps:$4 sm:$0xff]  }
 0xb8f   :  { %7511 = vmatpush1.bf16.msra.mxu1 %v10352_v48  ;;  %v10405_v48 = vld [vmem:[#allocation11 + $0x70c] ss:$12 sps:$4 sm:$0xff]  }
 0xb90   :  { %7512 = vmatprep.subr.bf16.mxu1 %v10359_v50  ;;  %v10403_v50 = vld [vmem:[#allocation11 + $0x708] ss:$12 sps:$4 sm:$0xff]  }
 0xb91   :  { %9044 = vmatpush3.bf16.msra.mxu0 %v10356_v52  ;;  %v10408_v52 = vld [vmem:[#allocation11 + $0x724] ss:$12 sps:$4 sm:$0xff]  }
 0xb92   :  { %v8939_v59 = vpop.f32.mrb[48].mxu0  ;;  %9045 = vmatprep.subr.bf16.mxu0 %v10360_v41  ;;  %v10406_v41 = vld [vmem:[#allocation11 + $0x720] ss:$12 sps:$4 sm:$0xff]  }
 0xb93   :  { %v8940_v32 = vpop.f32.mrb[49].mxu0  ;;  %7513 = vmatpush1.bf16.msra.mxu1 %v10357_v55  ;;  %v10411_v55 = vld [vmem:[#allocation11 + $0x73c] ss:$12 sps:$4 sm:$0xff]  }
 0xb94   :  { %v8941_v9 = vadd.f32 %v8940_v32, %v8939_v59  ;;  %v8942_v15 = vpop.f32.mrb[50].mxu0  ;;  %7514 = vmatprep.subr.bf16.mxu1 %v10364_v56  ;;  %v10409_v56 = vld [vmem:[#allocation11 + $0x738] ss:$12 sps:$4 sm:$0xff]   ;;  %v10412_v59 = vld [vmem:[#allocation11 + $0x750] ss:$12 sps:$4 sm:$0xff]  }
 0xb95   :  { %v8943_v4 = vpop.f32.mrb[51].mxu0  ;;  %9046 = vmatpush3.bf16.msra.mxu0 %v10361_v57  ;;  %v10414_v57 = vld [vmem:[#allocation11 + $0x754] ss:$12 sps:$4 sm:$0xff]  }
 0xb96   :  { %v8944_v6 = vadd.f32 %v8943_v4, %v8942_v15  ;;  %9047 = vmatprep.subr.bf16.mxu0 %v10365_v45  ;;  %v7650_v33 = vadd.f32 %v8941_v9, %v5817_v27  ;;  %v10417_v45 = vld [vmem:[#allocation11 + $0x76c] ss:$12 sps:$4 sm:$0xff]   ;;  %v10415_v32 = vld [vmem:[#allocation11 + $0x768] ss:$12 sps:$4 sm:$0xff]  }
 0xb97   :  { %7515 = vmatpush1.bf16.msra.mxu1 %v10362_v20  ;;  %v10420_v20 = vld [vmem:[#allocation11 + $0x784] ss:$12 sps:$4 sm:$0xff]   ;;  %v10418_v9 = vld [vmem:[#allocation11 + $0x780] ss:$12 sps:$4 sm:$0xff]   ;;  %v10423_v15 = vld [vmem:[#allocation11 + $0x79c] ss:$12 sps:$4 sm:$0xff]  }
 0xb98   :  { %7516 = vmatprep.subr.bf16.mxu1 %v10369_v43  ;;  %v7653_v37 = vadd.f32 %v8944_v6, %v5817_v27  ;;  %v10421_v43 = vld [vmem:[#allocation11 + $0x798] ss:$12 sps:$4 sm:$0xff]   ;;  %v10426_v4 = vld [vmem:[#allocation11 + $0x7b4] ss:$12 sps:$4 sm:$0xff]  }
 0xb99   :  { %9048 = vmatpush3.bf16.msra.mxu0 %v10366_v5  ;;  %v10424_v5 = vld [vmem:[#allocation11 + $0x7b0] ss:$12 sps:$4 sm:$0xff]   ;;  %v10429_v6 = vld [vmem:[#allocation11 + $0x7cc] ss:$12 sps:$4 sm:$0xff]  }
 0xb9b   :  { %7517 = vmatpush1.bf16.msra.mxu1 %v10367_v2  ;;  %v10427_v2 = vld [vmem:[#allocation11 + $0x7c8] ss:$12 sps:$4 sm:$0xff]  }
 0xb9c   :  { %7853 = vmatmul.mubr.bf16.vlgmr.msra.gmra.mrb[68].mxu0 %v11138_v23  ;;  %7529 = vmatprep.subr.bf16.mxu1 %v10372_v34  ;;  %v10432_v34 = vld [vmem:[#allocation11 + $0x7e4] ss:$12 sps:$4 sm:$0xff]  }
 0xb9e   :  { %7519 = vmatmul.mubr.bf16.vlgmr.msra.gmra.mrb[40].mxu1 %v11121_v14  ;;  %v10385_v14 = vld [vmem:[#allocation11 + $0x678] ss:$12 sps:$4 sm:$0xff]  }
 0xb9f   :  { %7530 = vmatpush1.bf16.msra.mxu1 %v10370_v16  ;;  %7561 = vmatprep.mubr.bf16.mxu1 %v11140_v29  ;;  %v10430_v16 = vld [vmem:[#allocation11 + $0x7e0] ss:$12 sps:$4 sm:$0xff]  }
 0xba0   :  { %7531 = vmatprep.subr.bf16.mxu1 %v10375_v58  ;;  %v10435_v58 = vld [vmem:[#allocation11 + $0x7fc] ss:$12 sps:$4 sm:$0xff]  }
 0xba3   :  { %7532 = vmatpush1.bf16.msra.mxu1 %v10373_v8  ;;  %v10433_v8 = vld [vmem:[#allocation11 + $0x7f8] ss:$12 sps:$4 sm:$0xff]  }
 0xba4   :  { %7533 = vmatprep.subr.bf16.mxu1 %v10378_v13 }
 0xba7   :  { %7534 = vmatpush1.bf16.msra.mxu1 %v10376_v7 }
 0xba8   :  { %7535 = vmatprep.subr.bf16.mxu1 %v10381_v21 }
 0xbab   :  { %7536 = vmatpush1.bf16.msra.mxu1 %v10379_v17 }
 0xbac   :  { %7537 = vmatprep.subr.bf16.mxu1 %v10384_v61 }
 0xbaf   :  { %7538 = vmatpush1.bf16.msra.mxu1 %v10382_v18 }
 0xbb0   :  { %7539 = vmatprep.subr.bf16.mxu1 %v10387_v24  ;;  %v10436_v24 = vld [vmem:[#allocation11 + $0x810] ss:$12 sps:$4 sm:$0xff]  }
 0xbb2   :  { %v8961_v29 = vpop.f32.mrb[52].mxu0 }
 0xbb3   :  { %v8962_v1 = vpop.f32.mrb[53].mxu0  ;;  %7540 = vmatpush1.bf16.msra.mxu1 %v10385_v14  ;;  %v10441_v14 = vld [vmem:[#allocation11 + $0x82c] ss:$12 sps:$4 sm:$0xff]  }
 0xbb4   :  { %v8963_v0 = vadd.f32 %v8962_v1, %v8961_v29  ;;  %v8964_v35 = vpop.f32.mrb[54].mxu0  ;;  %7541 = vmatprep.subr.bf16.mxu1 %v10390_v28  ;;  %v10439_v28 = vld [vmem:[#allocation11 + $0x828] ss:$12 sps:$4 sm:$0xff]   ;;  %v10444_v29 = vld [vmem:[#allocation11 + $0x844] ss:$12 sps:$4 sm:$0xff]  }
 0xbb5   :  { %v8965_v36 = vpop.f32.mrb[55].mxu0  ;;  %v10442_v1 = vld [vmem:[#allocation11 + $0x840] ss:$12 sps:$4 sm:$0xff]  }
 0xbb6   :  { %v11154_v38 = vadd.f32 %v8963_v0, %v7650_v33  ;;  %v8966_v49 = vadd.f32 %v8965_v36, %v8964_v35  ;;  %v10445_v33 = vld [vmem:[#allocation11 + $0x858] ss:$12 sps:$4 sm:$0xff]   ;;  %v10450_v0 = vld [vmem:[#allocation11 + $0x874] ss:$12 sps:$4 sm:$0xff]   ;;  %v10448_v35 = vld [vmem:[#allocation11 + $0x870] ss:$12 sps:$4 sm:$0xff]  }
 0xbb7   :  { %7542 = vmatpush1.bf16.msra.mxu1 %v10388_v31  ;;  %v10447_v31 = vld [vmem:[#allocation11 + $0x85c] ss:$12 sps:$4 sm:$0xff]  }
 0xbb8   :  { %v11156_v40 = vadd.f32 %v8966_v49, %v7653_v37  ;;  %7543 = vmatprep.subr.bf16.mxu1 %v10393_v62  ;;  %v10453_v62 = vld [vmem:[#allocation11 + $0x88c] ss:$12 sps:$4 sm:$0xff]   ;;  %v10451_v36 = vld [vmem:[#allocation11 + $0x888] ss:$12 sps:$4 sm:$0xff]   ;;  %v10456_v37 = vld [vmem:[#allocation11 + $0x8a4] ss:$12 sps:$4 sm:$0xff]  }
 0xbb9   :  { %v10459_v49 = vld [vmem:[#allocation11 + $0x8bc] ss:$12 sps:$4 sm:$0xff]  }
 0xbbb   :  { %7544 = vmatpush1.bf16.msra.mxu1 %v10391_v39 }
 0xbbc   :  { %7545 = vmatprep.subr.bf16.mxu1 %v10396_v42 }
 0xbbf   :  { %7546 = vmatpush1.bf16.msra.mxu1 %v10394_v44  ;;  %v10462_v44 = vld [vmem:[#allocation11 + $0x8d4] ss:$12 sps:$4 sm:$0xff]  }
 0xbc0   :  { %7547 = vmatprep.subr.bf16.mxu1 %v10399_v46 }
 0xbc3   :  { %7548 = vmatpush1.bf16.msra.mxu1 %v10397_v47 }
 0xbc4   :  { %7549 = vmatprep.subr.bf16.mxu1 %v10402_v11 }
 0xbc7   :  { %7550 = vmatpush1.bf16.msra.mxu1 %v10400_v22 }
 0xbc8   :  { %7551 = vmatprep.subr.bf16.mxu1 %v10405_v48 }
 0xbcb   :  { %7552 = vmatpush1.bf16.msra.mxu1 %v10403_v50  ;;  %v10460_v50 = vld [vmem:[#allocation11 + $0x8d0] ss:$12 sps:$4 sm:$0xff]  }
 0xbcc   :  { %7553 = vmatprep.subr.bf16.mxu1 %v10408_v52  ;;  %v10465_v52 = vld [vmem:[#allocation11 + $0x8ec] ss:$12 sps:$4 sm:$0xff]  }
 0xbcf   :  { %7554 = vmatpush1.bf16.msra.mxu1 %v10406_v41 }
 0xbd0   :  { %7555 = vmatprep.subr.bf16.mxu1 %v10411_v55  ;;  %v10463_v55 = vld [vmem:[#allocation11 + $0x8e8] ss:$12 sps:$4 sm:$0xff]  }
 0xbd3   :  { %7556 = vmatpush1.bf16.msra.mxu1 %v10409_v56 }
 0xbd4   :  { %7557 = vmatprep.subr.bf16.mxu1 %v10414_v57 }
 0xbd7   :  { %7558 = vmatpush1.bf16.msra.mxu1 %v10412_v59 }
 0xbd8   :  { %7559 = vmatprep.subr.bf16.mxu1 %v10417_v45 }
 0xbdb   :  { %7560 = vmatpush1.bf16.msra.mxu1 %v10415_v32 }
 0xbdc   :  { %7572 = vmatprep.subr.bf16.mxu1 %v10420_v20 }
 0xbde   :  { %7562 = vmatmul.mubr.bf16.vlgmr.msra.gmra.mrb[40].mxu1 %v11136_v26 }
 0xbdf   :  { %7573 = vmatpush1.bf16.msra.mxu1 %v10418_v9  ;;  %7604 = vmatprep.mubr.bf16.mxu1 %v11142_v30  ;;  %v10438_v30 = vld [vmem:[#allocation11 + $0x814] ss:$12 sps:$4 sm:$0xff]  }
 0xbe0   :  { %7574 = vmatprep.subr.bf16.mxu1 %v10423_v15 }
 0xbe3   :  { %7575 = vmatpush1.bf16.msra.mxu1 %v10421_v43 }
 0xbe4   :  { %7576 = vmatprep.subr.bf16.mxu1 %v10426_v4 }
 0xbe7   :  { %7577 = vmatpush1.bf16.msra.mxu1 %v10424_v5 }
 0xbe8   :  { %7578 = vmatprep.subr.bf16.mxu1 %v10429_v6 }
 0xbeb   :  { %7579 = vmatpush1.bf16.msra.mxu1 %v10427_v2 }
 0xbec   :  { %7580 = vmatprep.subr.bf16.mxu1 %v10432_v34 }
 0xbef   :  { %7581 = vmatpush1.bf16.msra.mxu1 %v10430_v16  ;;  %v8983_v26 = vpop.f32.mrb[56].mxu0 }
 0xbf0   :  { %v8984_v13 = vpop.f32.mrb[57].mxu0  ;;  %7582 = vmatprep.subr.bf16.mxu1 %v10435_v58 }
 0xbf1   :  { %v8985_v7 = vadd.f32 %v8984_v13, %v8983_v26  ;;  %v8986_v21 = vpop.f32.mrb[58].mxu0  ;;  %v5809_v26 = vrot.slane %v11150_v25, %v10952_v53 }
 0xbf2   :  { %v8987_v17 = vpop.f32.mrb[59].mxu0 }
 0xbf3   :  { %v7732_v61 = vadd.f32 %v8985_v7, %v11154_v38  ;;  %v8988_v18 = vadd.f32 %v8987_v17, %v8986_v21  ;;  %7583 = vmatpush1.bf16.msra.mxu1 %v10433_v8  ;;  %v10454_v38 = vld [vmem:[#allocation11 + $0x8a0] ss:$12 sps:$4 sm:$0xff]  }
 0xbf4   :  { %7584 = vmatprep.subr.bf16.mxu1 %v10438_v30 }
 0xbf5   :  { %v7735_v27 = vadd.f32 %v8988_v18, %v11156_v40  ;;  %v10457_v40 = vld [vmem:[#allocation11 + $0x8b8] ss:$12 sps:$4 sm:$0xff]  }
 0xbf7   :  { %7585 = vmatpush1.bf16.msra.mxu1 %v10436_v24 }
 0xbf8   :  { %7586 = vmatprep.subr.bf16.mxu1 %v10441_v14 }
 0xbfb   :  { %7587 = vmatpush1.bf16.msra.mxu1 %v10439_v28 }
 0xbfc   :  { %7588 = vmatprep.subr.bf16.mxu1 %v10444_v29 }
 0xbff   :  { %7589 = vmatpush1.bf16.msra.mxu1 %v10442_v1 }
 0xc00   :  { %7590 = vmatprep.subr.bf16.mxu1 %v10447_v31 }
 0xc03   :  { %7591 = vmatpush1.bf16.msra.mxu1 %v10445_v33 }
 0xc04   :  { %7592 = vmatprep.subr.bf16.mxu1 %v10450_v0 }
 0xc07   :  { %7593 = vmatpush1.bf16.msra.mxu1 %v10448_v35 }
 0xc08   :  { %7594 = vmatprep.subr.bf16.mxu1 %v10453_v62 }
 0xc0b   :  { %7595 = vmatpush1.bf16.msra.mxu1 %v10451_v36 }
 0xc0c   :  { %7596 = vmatprep.subr.bf16.mxu1 %v10456_v37 }
 0xc0f   :  { %v9005_v39 = vpop.f32.mrb[60].mxu0  ;;  %7597 = vmatpush1.bf16.msra.mxu1 %v10454_v38 }
 0xc10   :  { %v9006_v42 = vpop.f32.mrb[61].mxu0  ;;  %7598 = vmatprep.subr.bf16.mxu1 %v10459_v49 }
 0xc11   :  { %v9007_v46 = vadd.f32 %v9006_v42, %v9005_v39  ;;  %v9008_v47 = vpop.f32.mrb[62].mxu0 }
 0xc12   :  { %v9009_v11 = vpop.f32.mrb[63].mxu0 }
 0xc13   :  { %v7773_v22 = vadd.f32 %v9007_v46, %v7732_v61  ;;  %v9010_v48 = vadd.f32 %v9009_v11, %v9008_v47  ;;  %7599 = vmatpush1.bf16.msra.mxu1 %v10457_v40 }
 0xc14   :  { %7600 = vmatprep.subr.bf16.mxu1 %v10462_v44 }
 0xc15   :  { %v7776_v41 = vadd.f32 %v9010_v48, %v7735_v27 }
 0xc17   :  { %7601 = vmatpush1.bf16.msra.mxu1 %v10460_v50 }
 0xc18   :  { %7602 = vmatprep.subr.bf16.mxu1 %v10465_v52 }
 0xc1b   :  { %7603 = vmatpush1.bf16.msra.mxu1 %v10463_v55 }
 0xc1e   :  { %7605 = vmatmul.mubr.bf16.vlgmr.msra.gmra.mrb[40].mxu1 %v11138_v23  ;;  %v5813_v23 = vrot.slane %v11150_v25, %v10955_v54 }
 0xc4f   :  { %v9027_v56 = vpop.f32.mrb[64].mxu0 }
 0xc50   :  { %v9028_v57 = vpop.f32.mrb[65].mxu0 }
 0xc51   :  { %v9029_v59 = vadd.f32 %v9028_v57, %v9027_v56  ;;  %v9030_v45 = vpop.f32.mrb[66].mxu0  ;;  %v7868_v57 = vld [vmem:[#allocation14 + $0x4] ss:$8 sm:$0x7] }
 0xc52   :  { %v9031_v32 = vpop.f32.mrb[67].mxu0 }
 0xc53   :  { %v7814_v20 = vadd.f32 %v9029_v59, %v7773_v22  ;;  %v9032_v9 = vadd.f32 %v9031_v32, %v9030_v45  ;;  %v7870_v59 = vld [vmem:[#allocation14 + $0x5] ss:$8 sm:$0x7]  ;;  %v7917_v45 = vrot.slane %v7868_v57, %v10952_v53  ;;  %v7921_v32 = vrot.slane %v7868_v57, %v10955_v54 }
 0xc55   :  { %v7817_v15 = vadd.f32 %v9032_v9, %v7776_v41 }
 0xc6f   :  { %v9049_v43 = vpop.f32.mrb[68].mxu0 }
 0xc70   :  { %v9050_v4 = vpop.f32.mrb[69].mxu0 }
 0xc71   :  { %v9051_v5 = vadd.f32 %v9050_v4, %v9049_v43  ;;  %v9052_v6 = vpop.f32.mrb[70].mxu0  ;;  %v7943_v43 = vrot.slane %v7870_v59, %v10955_v54 }
 0xc72   :  { %v9053_v2 = vpop.f32.mrb[71].mxu0 }
 0xc73   :  { %v7855_v34 = vadd.f32 %v9051_v5, %v7814_v20  ;;  %v9054_v16 = vadd.f32 %v9053_v2, %v9052_v6  ;;  %v7925_v20 = vrot.slane %v7868_v57, %v10949_v51 }
 0xc75   :  { %v7858_v58 = vadd.f32 %v9054_v16, %v7817_v15  ;;  %v7863_v29 = vadd.f32 %v7855_v34, %v11064_v3  ;;  %v7939_v15 = vrot.slane %v7870_v59, %v10952_v53  ;;  %v7947_v34 = vrot.slane %v7870_v59, %v10949_v51 }
 0xc77   :  { %v7866_v31 = vadd.f32 %v7858_v58, %v11062_v63 }
 0xcf1   :  { %v7606_v8 = vpop.f32.mrb[40].mxu1 }
 0xcf2   :  { %v9151_v13 = vadd.f32 %v7606_v8, %v5809_v26  ;;  %v7608_v30 = vpop.f32.mrb[41].mxu1 }
 0xcf3   :  { %v9152_v7 = vadd.f32 %v7608_v30, %v5813_v23  ;;  %v7610_v21 = vpop.f32.mrb[42].mxu1 }
 0xcf4   :  { %v7861_v17 = vadd.f32 %v9151_v13, %v11036_v10  ;;  %v9153_v61 = vadd.f32 %v7610_v21, %v5809_v26  ;;  %v7612_v18 = vpop.f32.mrb[43].mxu1 }
 0xcf5   :  { %v7862_v24 = vadd.f32 %v9152_v7, %v11032_v12  ;;  %v9154_v14 = vadd.f32 %v7612_v18, %v5813_v23 }
 0xcf6   :  { %v7864_v27 = vadd.f32 %v9153_v61, %v11038_v60 }
 0xcf7   :  { %v7865_v28 = vadd.f32 %v9154_v14, %v11034_v19  ;;  %v7871_v1 = vadd.f32 %v7862_v24, %v7861_v17 }
 0xcf9   :  { %v7872_v25 = vadd.f32 %v7871_v1, %v7863_v29  ;;  %v7875_v33 = vadd.f32 %v7865_v28, %v7864_v27 }
 0xcfb   :  { %7873 = vadd.xlane.f32.xlu0 %v7872_v25  ;;  %v7876_v0 = vadd.f32 %v7875_v33, %v7866_v31 }
 0xcfd   :  { %7877 = vadd.xlane.f32.xlu1 %v7876_v0 }
 0xd88   :  { %v7874_v10 = vpop.xlane.xlu0 %7873 }
 0xd89   :  { %v7879_v35 = vmul.f32 0.0026041667, %v7874_v10 }
 0xd8a   :  { %v7878_v62 = vpop.xlane.xlu1 %7877 }
 0xd8b   :  { %v7881_v36 = vsub.f32 %v7861_v17, %v7879_v35  ;;  %v7882_v12 = vsub.f32 %v7862_v24, %v7879_v35  ;;  %v7880_v37 = vmul.f32 0.0026041667, %v7878_v62  ;;  %v7883_v38 = vsub.f32 %v7863_v29, %v7879_v35 }
 0xd8d   :  { %v7884_v60 = vsub.f32 %v7864_v27, %v7880_v37  ;;  %v7885_v49 = vsub.f32 %v7865_v28, %v7880_v37  ;;  %v7886_v19 = vsub.f32 %v7866_v31, %v7880_v37  ;;  %v7887_v39 = vmul.f32 %v7881_v36, %v7881_v36 }
 0xd8e   :  { %v7888_v3 = vmul.f32 %v7882_v12, %v7882_v12  ;;  %v7889_v44 = vmul.f32 %v7883_v38, %v7883_v38 }
 0xd8f   :  { %v7890_v40 = vmul.f32 %v7884_v60, %v7884_v60  ;;  %v7891_v42 = vmul.f32 %v7885_v49, %v7885_v49  ;;  %v7892_v46 = vmul.f32 %v7886_v19, %v7886_v19 }
 0xd90   :  { %v7893_v63 = vadd.f32 %v7888_v3, %v7887_v39 }
 0xd91   :  { %v7897_v47 = vadd.f32 %v7891_v42, %v7890_v40 }
 0xd92   :  { %v7894_v11 = vadd.f32 %v7893_v63, %v7889_v44 }
 0xd93   :  { %v7898_v22 = vadd.f32 %v7897_v47, %v7892_v46 }
 0xd94   :  { %7895 = vadd.xlane.f32.xlu0 %v7894_v11 }
 0xd95   :  { %7899 = vadd.xlane.f32.xlu1 %v7898_v22 }
 0xe21   :  { %v7896_v48 = vpop.xlane.xlu0 %7895 }
 0xe22   :  { %v7901_v50 = vmul.f32 0.0026041667, %v7896_v48  ;;  %v7900_v52 = vpop.xlane.xlu1 %7899 }
 0xe23   :  { %v7902_v41 = vmul.f32 0.0026041667, %v7900_v52 }
 0xe24   :  { %v7903_v55 = vadd.f32 1e-05, %v7901_v50 }
 0xe25   :  { %v7904_v56 = vadd.f32 1e-05, %v7902_v41 }
 0xe26   :  { %10478 = vrsqrt.f32 %v7903_v55 }
 0xe27   :  { %10480 = vrsqrt.f32 %v7904_v56 }
 0xe30   :  { %v10479_v9 = vpop.eup %10478 }
 0xe31   :  { %v10481_v4 = vpop.eup %10480  ;;  %v7907_v5 = vmul.f32 %v10479_v9, %v7881_v36  ;;  %v7908_v6 = vmul.f32 %v10479_v9, %v7882_v12  ;;  %v7909_v2 = vmul.f32 %v10479_v9, %v7883_v38 }
 0xe32   :  { %v7910_v16 = vmul.f32 %v10481_v4, %v7884_v60  ;;  %v7911_v58 = vmul.f32 %v10481_v4, %v7885_v49  ;;  %v7912_v26 = vmul.f32 %v10481_v4, %v7886_v19 }
 0xe33   :  { %v7929_v23 = vmul.f32 %v7917_v45, %v7907_v5  ;;  %v7930_v8 = vmul.f32 %v7921_v32, %v7908_v6  ;;  %v7931_v13 = vmul.f32 %v7925_v20, %v7909_v2 }
 0xe34   :  { %v7932_v30 = vmul.f32 %v7917_v45, %v7910_v16  ;;  %v7933_v7 = vmul.f32 %v7921_v32, %v7911_v58  ;;  %v7934_v21 = vmul.f32 %v7925_v20, %v7912_v26 }
 0xe35   :  { %v7951_v53 = vadd.f32 %v7939_v15, %v7929_v23  ;;  %v7952_v17 = vadd.f32 %v7943_v43, %v7930_v8  ;;  %v7953_v54 = vadd.f32 %v7947_v34, %v7931_v13 }
 0xe36   :  { %v7954_v61 = vadd.f32 %v7939_v15, %v7932_v30  ;;  %v7955_v18 = vadd.f32 %v7943_v43, %v7933_v7  ;;  %v7956_v24 = vadd.f32 %v7947_v34, %v7934_v21 }
 0xe37   :  { %7957 = vst [vmem:[#allocation15] sm:$0xff] %v7951_v53  ;;  %7958 = vst [vmem:[#allocation15 + $0x8] sm:$0xff] %v7952_v17 }
 0xe38   :  { %7959 = vst [vmem:[#allocation15 + $0x10] sm:$0xff] %v7953_v54  ;;  %7960 = vst [vmem:[#allocation15 + $0x18] sm:$0xff] %v7954_v61 }
 0xe39   :  { %7961 = vst [vmem:[#allocation15 + $0x20] sm:$0xff] %v7955_v18  ;;  %7962 = vst [vmem:[#allocation15 + $0x28] sm:$0xff] %v7956_v24 }
 0xe3a   :  { %10653 = shalt.err (!%p10650_p4)
}
 0xe3b   :  { %s10654_s18 = scalar_lea.hbm %s11201_s7, 768 }
 0xe3c   :  { %p10655_p5 = scmp.ne.s32.totalorder %s11201_s7, %s10654_s18  ;;  %p10658_p6 = scmp.lt.u32.totalorder %s10654_s18, %s11201_s7 }
 0xe3e   :  { %p10660_p7 = pnand %p10658_p6, %p10655_p5 }
 0xe40   :  { %10663 = shalt.err (!%p10660_p7)
}
 0xe41   :  { %7974 = dma.vmem_to_hbm [thread:$0]  %s7969_s8, 768, %s11201_s7, [#allocation5], %s10682_s5, %s10682_s5, %s10683_s25  }
 0xe42   :  { %10672 = dma.done.wait [#allocation5], 768  }
 0xe43   :  { %10673 = vsyncadd [#allocation5], 4294966528 }
 0xe44   :  { %7978 = vsyncpa [#allocation4], 1 }
 0xe45   :  { %7979 = vsyncpa [#allocation7], 1 }
 0xe46   :  { %7980 = vsyncpa [#allocation10], 1 }
 0xe47   :  { %7981 = vsyncpa [#allocation13], 1 }
 0xe48   :  { %7982 = vsyncpa [#allocation5], 1 }

</bundles_post_ra>
